<compile_context>
chip_gen: v5e
topology: v5e:2x2
jax: 0.10.0
libtpu: 0.0.40
codegen_flags: <defaults>
</compile_context>

<pallas_src>
import functools

import jax
import jax.numpy as jnp
from jax import lax
from jax.experimental import pallas as pl
from jax.experimental.pallas import tpu as pltpu

_EPS = 1e-5
# 48 MiB: fits v7x's 64 MiB/TC with margin; raise toward 96 MiB on v5e/v6e.
_VMEM_LIMIT = 48 * 1024 * 1024


def _round_up(n, m):
    return ((n + m - 1) // m) * m


def _fold_bn(s, ss, gamma, beta, count):
    # Fold training-mode BN (biased variance) into one scale/shift per channel.
    # NOTE: E[x^2]-E[x]^2 in f32 can cancel for |mean| >> std; acceptable here.
    mean = s / count
    var = jnp.maximum(ss / count - mean * mean, 0.0)
    scale = gamma * lax.rsqrt(var + _EPS)
    shift = beta - mean * scale
    return scale, shift


# --------------------------------------------------------------------------
# pass 1: conv1 (1x1) + bn1 batch statistics + halo columns for the k=3 conv
# --------------------------------------------------------------------------
def _conv1_stats_kernel(x_ref, w1_ref, yraw_ref, hf_ref, hl_ref, s_ref, ss_ref,
                        *, tile, length):
    t = pl.program_id(1)
    pos = lax.broadcasted_iota(jnp.int32, (1, tile), 1) + t * tile

    y = jnp.dot(w1_ref[...], x_ref[...].astype(jnp.bfloat16),
                preferred_element_type=jnp.float32)                # (gw, T)
    yb = y.astype(jnp.bfloat16)
    yraw_ref[...] = yb
    hf_ref[...] = yb[:, 0:1]                 # first column  (right halo src)
    hl_ref[...] = yb[:, tile - 1:tile]       # last  column  (left  halo src)

    # statistics from the bf16-rounded values pass 2 will actually read,
    # with columns past L masked out (input past L is undefined).
    yf = jnp.where(pos < length, yb.astype(jnp.float32), 0.0)

    @pl.when(t == 0)
    def _():
        s_ref[...] = jnp.zeros_like(s_ref)
        ss_ref[...] = jnp.zeros_like(ss_ref)

    s_ref[...] += jnp.sum(yf, axis=1, keepdims=True)
    ss_ref[...] += jnp.sum(yf * yf, axis=1, keepdims=True)


# --------------------------------------------------------------------------
# pass 2: bn1 + relu, SplitAttn.conv (k=3, pad=1) as three accumulated bf16
#         dots against lane-shifted copies (pltpu.roll + halo patch),
#         plus bn0 batch statistics.
# --------------------------------------------------------------------------
def _conv2_stats_kernel(yraw_ref, hl_ref, hr_ref, sc1_ref, sh1_ref, w2_ref,
                        uraw_ref, s_ref, ss_ref, *, tile, length):
    t = pl.program_id(1)
    lane = lax.broadcasted_iota(jnp.int32, (1, tile), 1)
    pos = lane + t * tile

    scale = sc1_ref[...]
    shift = sh1_ref[...]

    def bn1_relu(v):
        return jnp.maximum(v * scale + shift, 0.0)

    y = bn1_relu(yraw_ref[...].astype(jnp.float32))                # (gw, T)
    yl = bn1_relu(hl_ref[...].astype(jnp.float32))                 # (gw, 1)
    yr = bn1_relu(hr_ref[...].astype(jnp.float32))                 # (gw, 1)

    # shifted copies via XLU roll; halo columns patch the tile edges
    y_m1 = jnp.where(lane == 0, yl, pltpu.roll(y, 1, axis=1))          # y[l-1]
    y_p1 = jnp.where(lane == tile - 1, yr, pltpu.roll(y, tile - 1, axis=1))

    # conv zero padding at sequence edges + exclusion of padded lane columns,
    # so u_raw is exactly zero where l >= L (keeps the statistics exact).
    y_c = jnp.where(pos < length, y, 0.0)
    y_m1 = jnp.where((pos >= 1) & (pos < length), y_m1, 0.0)
    y_p1 = jnp.where(pos < length - 1, y_p1, 0.0)

    u = jnp.dot(w2_ref[0], y_m1.astype(jnp.bfloat16),
                preferred_element_type=jnp.float32)
    u += jnp.dot(w2_ref[1], y_c.astype(jnp.bfloat16),
                 preferred_element_type=jnp.float32)
    u += jnp.dot(w2_ref[2], y_p1.astype(jnp.bfloat16),
                 preferred_element_type=jnp.float32)
    ub = u.astype(jnp.bfloat16)
    uraw_ref[...] = ub
    uf = ub.astype(jnp.float32)      # stats consistent with stored bf16

    @pl.when(t == 0)
    def _():
        s_ref[...] = jnp.zeros_like(s_ref)
        ss_ref[...] = jnp.zeros_like(ss_ref)

    s_ref[...] += jnp.sum(uf, axis=1, keepdims=True)
    ss_ref[...] += jnp.sum(uf * uf, axis=1, keepdims=True)


# --------------------------------------------------------------------------
# pass 3: bn0 + relu, per-batch GAP sums (lane reduction) and per-batch
#         second moments M_b = u_b @ u_b^T (bf16 operands, f32 accumulate).
# --------------------------------------------------------------------------
def _gap_moment_kernel(uraw_ref, sc0_ref, sh0_ref, gap_ref, m_ref,
                       *, tile, length):
    t = pl.program_id(1)
    pos = lax.broadcasted_iota(jnp.int32, (1, tile), 1) + t * tile

    u = jnp.maximum(uraw_ref[...].astype(jnp.float32) * sc0_ref[...]
                    + sh0_ref[...], 0.0)
    u = jnp.where(pos < length, u, 0.0)         # drop padded columns

    @pl.when(t == 0)
    def _():
        gap_ref[...] = jnp.zeros_like(gap_ref)
        m_ref[...] = jnp.zeros_like(m_ref)

    gap_ref[...] += jnp.sum(u, axis=1, keepdims=True)
    ub = u.astype(jnp.bfloat16)
    m_ref[...] += lax.dot_general(ub, ub, (((1,), (1,)), ((), ())),
                                  preferred_element_type=jnp.float32)


# --------------------------------------------------------------------------
# pass 4: bn0 + relu, attention gate, conv3 (1x1), bn3, residual add, relu
# --------------------------------------------------------------------------
def _conv3_out_kernel(uraw_ref, x_ref, sc0_ref, sh0_ref, attn_ref, w3_ref,
                      sc3_ref, sh3_ref, o_ref):
    u = jnp.maximum(uraw_ref[...].astype(jnp.float32) * sc0_ref[...]
                    + sh0_ref[...], 0.0)
    u = u * attn_ref[...]                       # per-(channel, batch) gate
    z = jnp.dot(w3_ref[...], u.astype(jnp.bfloat16),
                preferred_element_type=jnp.float32)                # (Cout, T)
    o_ref[...] = jnp.maximum(z * sc3_ref[...] + sh3_ref[...] + x_ref[...], 0.0)


# --------------------------------------------------------------------------
# wrapper
# --------------------------------------------------------------------------
def resnest_bottleneck_forward(x, params, *, tile_target=512):
    """x: (B, Cin, L) float32 (PyTorch NCL).  Returns (B, Cin, L) float32."""
    B, Cin, L = x.shape
    gw = params['w1'].shape[0]
    Cout = params['w3'].shape[0]
    assert Cout == Cin, "identity shortcut requires inplanes == 4 * planes"
    assert tile_target % 128 == 0

    T = min(tile_target, _round_up(L, 128))     # lane tile, multiple of 128
    Lp = _round_up(L, T)                        # padded per-batch length
    TPB = Lp // T                               # tiles per batch
    NT = B * TPB
    count = float(B * L)                        # true element count for BN

    grid = (B, TPB)
    tile_map = lambda b, t: (b, 0, t)
    batch_map = lambda b, t: (b, 0, 0)
    per_tile_map = lambda b, t: (b * TPB + t, 0, 0)
    halo_l_map = lambda b, t: (b * TPB + jnp.maximum(t - 1, 0), 0, 0)
    halo_r_map = lambda b, t: (b * TPB + jnp.minimum(t + 1, TPB - 1), 0, 0)
    rep2 = lambda b, t: (0, 0)
    rep3 = lambda b, t: (0, 0, 0)

    acc_params = pltpu.CompilerParams(
        dimension_semantics=("parallel", "arbitrary"),
        vmem_limit_bytes=_VMEM_LIMIT)
    par_params = pltpu.CompilerParams(
        dimension_semantics=("parallel", "parallel"),
        vmem_limit_bytes=_VMEM_LIMIT)

    xf = x.astype(jnp.float32)                  # read in place, no relayout

    # bf16 copies of the conv weights (MXU operands)
    w1b = params['w1'].astype(jnp.bfloat16)                        # (gw, Cin)
    w2b = params['w2'].astype(jnp.bfloat16)                        # (3, gw, gw)
    w3b = params['w3'].astype(jnp.bfloat16)                        # (Cout, gw)

    # ---- pass 1 -------------------------------------------------------------
    yraw, hfirst, hlast, s1, ss1 = pl.pallas_call(
        functools.partial(_conv1_stats_kernel, tile=T, length=L),
        grid=grid,
        in_specs=[pl.BlockSpec((None, Cin, T), tile_map),
                  pl.BlockSpec((gw, Cin), rep2)],
        out_specs=(pl.BlockSpec((None, gw, T), tile_map),
                   pl.BlockSpec((None, gw, 1), per_tile_map),
                   pl.BlockSpec((None, gw, 1), per_tile_map),
                   pl.BlockSpec((None, gw, 1), batch_map),
                   pl.BlockSpec((None, gw, 1), batch_map)),
        out_shape=(jax.ShapeDtypeStruct((B, gw, Lp), jnp.bfloat16),
                   jax.ShapeDtypeStruct((NT, gw, 1), jnp.bfloat16),
                   jax.ShapeDtypeStruct((NT, gw, 1), jnp.bfloat16),
                   jax.ShapeDtypeStruct((B, gw, 1), jnp.float32),
                   jax.ShapeDtypeStruct((B, gw, 1), jnp.float32)),
        compiler_params=acc_params,
    )(xf, w1b)
    sc1, sh1 = _fold_bn(jnp.sum(s1, 0), jnp.sum(ss1, 0),
                        params['g1'], params['b1'], count)

    # ---- pass 2 -------------------------------------------------------------
    uraw, s0, ss0 = pl.pallas_call(
        functools.partial(_conv2_stats_kernel, tile=T, length=L),
        grid=grid,
        in_specs=[pl.BlockSpec((None, gw, T), tile_map),
                  pl.BlockSpec((None, gw, 1), halo_l_map),   # last col of t-1
                  pl.BlockSpec((None, gw, 1), halo_r_map),   # first col of t+1
                  pl.BlockSpec((gw, 1), rep2),
                  pl.BlockSpec((gw, 1), rep2),
                  pl.BlockSpec((3, gw, gw), rep3)],
        out_specs=(pl.BlockSpec((None, gw, T), tile_map),
                   pl.BlockSpec((None, gw, 1), batch_map),
                   pl.BlockSpec((None, gw, 1), batch_map)),
        out_shape=(jax.ShapeDtypeStruct((B, gw, Lp), jnp.bfloat16),
                   jax.ShapeDtypeStruct((B, gw, 1), jnp.float32),
                   jax.ShapeDtypeStruct((B, gw, 1), jnp.float32)),
        compiler_params=acc_params,
    )(yraw, hlast, hfirst, sc1, sh1, w2b)
    sc0, sh0 = _fold_bn(jnp.sum(s0, 0), jnp.sum(ss0, 0),
                        params['g0'], params['b0'], count)

    # ---- pass 3 -------------------------------------------------------------
    gap_sum, moment = pl.pallas_call(
        functools.partial(_gap_moment_kernel, tile=T, length=L),
        grid=grid,
        in_specs=[pl.BlockSpec((None, gw, T), tile_map),
                  pl.BlockSpec((gw, 1), rep2),
                  pl.BlockSpec((gw, 1), rep2)],
        out_specs=(pl.BlockSpec((None, gw, 1), batch_map),
                   pl.BlockSpec((None, gw, gw), batch_map)),
        out_shape=(jax.ShapeDtypeStruct((B, gw, 1), jnp.float32),
                   jax.ShapeDtypeStruct((B, gw, gw), jnp.float32)),
        compiler_params=acc_params,
    )(uraw, sc0, sh0)

    # ---- SplitAttn MLP on the tiny (gw, B) pooled tensor (jnp glue) --------
    gap_mean = gap_sum[:, :, 0].T / L                              # (gw, B)
    a = params['wf1'] @ gap_mean + params['bf1']                   # (attn, B)
    amean = jnp.mean(a, axis=1, keepdims=True)
    avar = jnp.mean((a - amean) ** 2, axis=1, keepdims=True)
    a = jnp.maximum((a - amean) * lax.rsqrt(avar + _EPS) * params['ga']
                    + params['ba'], 0.0)
    attn = jax.nn.sigmoid(params['wf2'] @ a + params['bf2'])       # (gw, B)

    # bn3 statistics from GAP + second moments (no extra data pass):
    #   z_b = (w3 * attn_b) @ u_b  =>  E[z]   = w3 @ mean_b(attn * gap_mean)
    #                                  E[z^2] = sum_b diag(W_b M_b W_b^T)/(B*L)
    w3f = params['w3']
    mean3 = w3f @ jnp.mean(attn * gap_mean, axis=1, keepdims=True)  # (Cout, 1)
    wt = w3f[None, :, :] * attn.T[:, None, :]                       # (B,Cout,gw)
    esq3 = (jnp.einsum('bog,bgh,boh->o', wt, moment, wt) / count)[:, None]
    var3 = jnp.maximum(esq3 - mean3 * mean3, 0.0)
    sc3 = params['g3'] * lax.rsqrt(var3 + _EPS)
    sh3 = params['b3'] - mean3 * sc3

    # ---- pass 4 -------------------------------------------------------------
    attn_in = attn.T.reshape(B, gw, 1)
    out3 = pl.pallas_call(
        _conv3_out_kernel,
        grid=grid,
        in_specs=[pl.BlockSpec((None, gw, T), tile_map),
                  pl.BlockSpec((None, Cin, T), tile_map),
                  pl.BlockSpec((gw, 1), rep2),
                  pl.BlockSpec((gw, 1), rep2),
                  pl.BlockSpec((None, gw, 1), batch_map),
                  pl.BlockSpec((Cout, gw), rep2),
                  pl.BlockSpec((Cout, 1), rep2),
                  pl.BlockSpec((Cout, 1), rep2)],
        out_specs=pl.BlockSpec((None, Cout, T), tile_map),
        out_shape=jax.ShapeDtypeStruct((B, Cout, Lp), jnp.float32),
        compiler_params=par_params,
    )(uraw, xf, sc0, sh0, attn_in, w3b, sc3, sh3)

    return out3 if Lp == L else out3[:, :, :L]


# --------------------------------------------------------------------------
# pure-JAX reference (f32) of the module's forward, for self-checking
# --------------------------------------------------------------------------
def _reference_forward(x, params):
    L = x.shape[2]

    def bn(t, gamma, beta):
        mean = jnp.mean(t, axis=(0, 2), keepdims=True)
        var = jnp.mean((t - mean) ** 2, axis=(0, 2), keepdims=True)
        return ((t - mean) * lax.rsqrt(var + _EPS) * gamma.reshape(1, -1, 1)
                + beta.reshape(1, -1, 1))

    y = jnp.einsum('oc,bcl->bol', params['w1'], x)
    y = jax.nn.relu(bn(y, params['g1'], params['b1']))
    ypad = jnp.pad(y, ((0, 0), (0, 0), (1, 1)))
    u = (jnp.einsum('oc,bcl->bol', params['w2'][0], ypad[:, :, 0:L]) +
         jnp.einsum('oc,bcl->bol', params['w2'][1], ypad[:, :, 1:L + 1]) +
         jnp.einsum('oc,bcl->bol', params['w2'][2], ypad[:, :, 2:L + 2]))
    u = jax.nn.relu(bn(u, params['g0'], params['b0']))
    gap = jnp.mean(u, axis=2, keepdims=True)
    a = (jnp.einsum('oc,bcl->bol', params['wf1'], gap)
         + params['bf1'].reshape(1, -1, 1))
    a = jax.nn.relu(bn(a, params['ga'], params['ba']))
    a = (jnp.einsum('oc,bcl->bol', params['wf2'], a)
         + params['bf2'].reshape(1, -1, 1))
    u = u * jax.nn.sigmoid(a)
    z = jnp.einsum('oc,bcl->bol', params['w3'], u)
    z = bn(z, params['g3'], params['b3'])
    return jax.nn.relu(z + x)


if __name__ == "__main__":
    # planes=16 -> group_width=16, expansion*planes=64, so inplanes=64 makes
    # the identity shortcut valid (downsample=None); attn_chs = 8.
    # L=1024 with tile_target=512 exercises the multi-tile halo path (TPB=2).
    B, L = 4, 1024
    planes = 16
    inplanes = planes * 4       # 64
    gw = planes                 # group_width (cardinality=1, base_width=64)
    attn_chs = 8

    f32 = jnp.float32
    key = jax.random.PRNGKey(0)
    ks = jax.random.split(key, 16)
    params = {
        # conv1 weight (gw, Cin, 1) -> (gw, Cin)
        'w1':  0.1 * jax.random.normal(ks[0], (gw, inplanes), f32),
        'g1':  1.0 + 0.1 * jax.random.normal(ks[1], (gw, 1), f32),
        'b1':  0.1 * jax.random.normal(ks[2], (gw, 1), f32),
        # SplitAttn.conv weight (gw, gw, 3), stored as (k, out, in)
        'w2':  0.1 * jax.random.normal(ks[3], (3, gw, gw), f32),
        'g0':  1.0 + 0.1 * jax.random.normal(ks[4], (gw, 1), f32),
        'b0':  0.1 * jax.random.normal(ks[5], (gw, 1), f32),
        # SplitAttn.fc1 / bn1 / fc2
        'wf1': 0.1 * jax.random.normal(ks[6], (attn_chs, gw), f32),
        'bf1': 0.1 * jax.random.normal(ks[7], (attn_chs, 1), f32),
        'ga':  1.0 + 0.1 * jax.random.normal(ks[8], (attn_chs, 1), f32),
        'ba':  0.1 * jax.random.normal(ks[9], (attn_chs, 1), f32),
        'wf2': 0.1 * jax.random.normal(ks[10], (gw, attn_chs), f32),
        'bf2': 0.1 * jax.random.normal(ks[11], (gw, 1), f32),
        # conv3 weight (4*planes, gw, 1) -> (Cout, gw)
        'w3':  0.1 * jax.random.normal(ks[12], (inplanes, gw), f32),
        'g3':  1.0 + 0.1 * jax.random.normal(ks[13], (inplanes, 1), f32),
        'b3':  0.1 * jax.random.normal(ks[14], (inplanes, 1), f32),
    }
    x = jax.random.normal(ks[15], (B, inplanes, L), f32)

    out = jax.jit(resnest_bottleneck_forward)(x, params)
    jax.block_until_ready(out)

    assert out.shape == (B, inplanes, L) and out.dtype == jnp.float32
    assert bool(jnp.all(jnp.isfinite(out)))

    # loose tolerance: the kernels use bfloat16 MXU operands (f32 accumulate)
    ref = _reference_forward(x, params)
    max_err = float(jnp.max(jnp.abs(out - ref)))
    assert max_err < 2e-1, f"kernel vs reference mismatch: max|err|={max_err}"
    print("KERNEL_OK")
</pallas_src>

<mosaic_0001>
module attributes {stable_mosaic.version = 11 : i64} {
  func.func @_conv1_stats_kernel(%arg0: i32, %arg1: i32, %arg2: memref<1x64x512xf32, #tpu.memory_space<vmem>>, %arg3: memref<16x64xbf16, #tpu.memory_space<vmem>>, %arg4: memref<1x16x512xbf16, #tpu.memory_space<vmem>>, %arg5: memref<1x16x1xbf16, #tpu.memory_space<vmem>>, %arg6: memref<1x16x1xbf16, #tpu.memory_space<vmem>>, %arg7: memref<1x16x1xf32, #tpu.memory_space<vmem>>, %arg8: memref<1x16x1xf32, #tpu.memory_space<vmem>>) attributes {dimension_semantics = [#tpu.dimension_semantics<parallel>, #tpu.dimension_semantics<arbitrary>], iteration_bounds = array<i64: 4, 2>, scalar_prefetch = 0 : i64, scratch_operands = 0 : i64, tpu.core_type = #tpu.core_type<tc>, window_params = [{transform_indices = @transform_0, window_bounds = array<i64: 1, 64, 512>}, {pipeline_mode = #tpu.pipeline_mode<synchronous>, transform_indices = @transform_1, window_bounds = array<i64: 16, 64>}, {transform_indices = @transform_2, window_bounds = array<i64: 1, 16, 512>}, {transform_indices = @transform_3, window_bounds = array<i64: 1, 16, 1>}, {transform_indices = @transform_4, window_bounds = array<i64: 1, 16, 1>}, {transform_indices = @transform_5, window_bounds = array<i64: 1, 16, 1>}, {transform_indices = @transform_6, window_bounds = array<i64: 1, 16, 1>}]} {
    %0 = tpu.iota {dimensions = array<i32: 1>} : vector<1x512xi32>
    %c512_i32 = arith.constant 512 : i32
    %1 = arith.muli %arg1, %c512_i32 : i32
    %2 = vector.broadcast %1 : i32 to vector<1x512xi32>
    %3 = arith.addi %0, %2 : vector<1x512xi32>
    %c0 = arith.constant 0 : index
    %c0_0 = arith.constant 0 : index
    %4 = vector.load %arg3[%c0, %c0_0] : memref<16x64xbf16, #tpu.memory_space<vmem>>, vector<16x64xbf16>
    %c0_1 = arith.constant 0 : index
    %c0_2 = arith.constant 0 : index
    %c0_3 = arith.constant 0 : index
    %5 = vector.load %arg2[%c0_1, %c0_2, %c0_3] : memref<1x64x512xf32, #tpu.memory_space<vmem>>, vector<1x64x512xf32>
    %6 = vector.shape_cast %5 : vector<1x64x512xf32> to vector<64x512xf32>
    %7 = arith.truncf %6 : vector<64x512xf32> to vector<64x512xbf16>
    %cst = arith.constant dense<0.000000e+00> : vector<16x512xf32>
    %8 = tpu.matmul %4, %7, %cst {dimension_numbers = #tpu.dot_dimension_numbers<[1], [0], [0], [1], [0, 0, 1, 1], [], []>} : vector<16x64xbf16>, vector<64x512xbf16>, vector<16x512xf32> -> vector<16x512xf32>
    %9 = arith.truncf %8 : vector<16x512xf32> to vector<16x512xbf16>
    %c0_4 = arith.constant 0 : index
    %c0_5 = arith.constant 0 : index
    %c0_6 = arith.constant 0 : index
    %10 = vector.load %arg4[%c0_4, %c0_5, %c0_6] : memref<1x16x512xbf16, #tpu.memory_space<vmem>>, vector<1x16x512xbf16>
    %11 = vector.shape_cast %10 : vector<1x16x512xbf16> to vector<16x512xbf16>
    %12 = vector.shape_cast %9 : vector<16x512xbf16> to vector<1x16x512xbf16>
    tpu.vector_store %arg4[%c0_4, %c0_5, %c0_6], %12 {strides = array<i32>} : memref<1x16x512xbf16, #tpu.memory_space<vmem>>, vector<1x16x512xbf16>,
    %13 = vector.extract_strided_slice %9 {offsets = [0, 0], sizes = [16, 1], strides = [1, 1]} : vector<16x512xbf16> to vector<16x1xbf16>
    %c0_7 = arith.constant 0 : index
    %c0_8 = arith.constant 0 : index
    %c0_9 = arith.constant 0 : index
    %14 = vector.load %arg5[%c0_7, %c0_8, %c0_9] : memref<1x16x1xbf16, #tpu.memory_space<vmem>>, vector<1x16x1xbf16>
    %15 = vector.shape_cast %14 : vector<1x16x1xbf16> to vector<16x1xbf16>
    %16 = vector.shape_cast %13 : vector<16x1xbf16> to vector<1x16x1xbf16>
    tpu.vector_store %arg5[%c0_7, %c0_8, %c0_9], %16 {strides = array<i32>} : memref<1x16x1xbf16, #tpu.memory_space<vmem>>, vector<1x16x1xbf16>,
    %17 = vector.extract_strided_slice %9 {offsets = [0, 511], sizes = [16, 1], strides = [1, 1]} : vector<16x512xbf16> to vector<16x1xbf16>
    %c0_10 = arith.constant 0 : index
    %c0_11 = arith.constant 0 : index
    %c0_12 = arith.constant 0 : index
    %18 = vector.load %arg6[%c0_10, %c0_11, %c0_12] : memref<1x16x1xbf16, #tpu.memory_space<vmem>>, vector<1x16x1xbf16>
    %19 = vector.shape_cast %18 : vector<1x16x1xbf16> to vector<16x1xbf16>
    %20 = vector.shape_cast %17 : vector<16x1xbf16> to vector<1x16x1xbf16>
    tpu.vector_store %arg6[%c0_10, %c0_11, %c0_12], %20 {strides = array<i32>} : memref<1x16x1xbf16, #tpu.memory_space<vmem>>, vector<1x16x1xbf16>,
    %c1024_i32 = arith.constant 1024 : i32
    %21 = vector.broadcast %c1024_i32 : i32 to vector<1x512xi32>
    %22 = arith.cmpi slt, %3, %21 : vector<1x512xi32>
    %23 = arith.extf %9 : vector<16x512xbf16> to vector<16x512xf32>
    %cst_13 = arith.constant 0.000000e+00 : f32
    %24 = vector.shape_cast %22 : vector<1x512xi1> to vector<1x512xi1>
    %25 = vector.broadcast %24 : vector<1x512xi1> to vector<16x512xi1>
    %26 = vector.broadcast %cst_13 : f32 to vector<16x512xf32>
    %27 = arith.select %25, %23, %26 : vector<16x512xi1>, vector<16x512xf32>
    %c0_i32 = arith.constant 0 : i32
    %28 = arith.cmpi eq, %arg1, %c0_i32 : i32
    %29 = arith.extui %28 : i1 to i32
    %c0_i32_14 = arith.constant 0 : i32
    %30 = arith.cmpi ne, %29, %c0_i32_14 : i32
    scf.if %30 {
      %cst_29 = arith.constant 0.000000e+00 : f32
      %48 = vector.broadcast %cst_29 : f32 to vector<16x1xf32>
      %c0_30 = arith.constant 0 : index
      %c0_31 = arith.constant 0 : index
      %c0_32 = arith.constant 0 : index
      %49 = vector.load %arg7[%c0_30, %c0_31, %c0_32] : memref<1x16x1xf32, #tpu.memory_space<vmem>>, vector<1x16x1xf32>
      %50 = vector.shape_cast %49 : vector<1x16x1xf32> to vector<16x1xf32>
      %51 = vector.shape_cast %48 : vector<16x1xf32> to vector<1x16x1xf32>
      tpu.vector_store %arg7[%c0_30, %c0_31, %c0_32], %51 {strides = array<i32>} : memref<1x16x1xf32, #tpu.memory_space<vmem>>, vector<1x16x1xf32>,
      %cst_33 = arith.constant 0.000000e+00 : f32
      %52 = vector.broadcast %cst_33 : f32 to vector<16x1xf32>
      %c0_34 = arith.constant 0 : index
      %c0_35 = arith.constant 0 : index
      %c0_36 = arith.constant 0 : index
      %53 = vector.load %arg8[%c0_34, %c0_35, %c0_36] : memref<1x16x1xf32, #tpu.memory_space<vmem>>, vector<1x16x1xf32>
      %54 = vector.shape_cast %53 : vector<1x16x1xf32> to vector<16x1xf32>
      %55 = vector.shape_cast %52 : vector<16x1xf32> to vector<1x16x1xf32>
      tpu.vector_store %arg8[%c0_34, %c0_35, %c0_36], %55 {strides = array<i32>} : memref<1x16x1xf32, #tpu.memory_space<vmem>>, vector<1x16x1xf32>,
    } else {
    }
    %c0_15 = arith.constant 0 : index
    %c0_16 = arith.constant 0 : index
    %c0_17 = arith.constant 0 : index
    %31 = vector.load %arg7[%c0_15, %c0_16, %c0_17] : memref<1x16x1xf32, #tpu.memory_space<vmem>>, vector<1x16x1xf32>
    %32 = vector.shape_cast %31 : vector<1x16x1xf32> to vector<16x1xf32>
    %cst_18 = arith.constant dense<0.000000e+00> : vector<16xf32>
    %33 = vector.multi_reduction <add>, %27, %cst_18 [1] : vector<16x512xf32> to vector<16xf32>
    %34 = vector.shape_cast %33 : vector<16xf32> to vector<16x1xf32>
    %35 = arith.addf %32, %34 : vector<16x1xf32>
    %c0_19 = arith.constant 0 : index
    %c0_20 = arith.constant 0 : index
    %c0_21 = arith.constant 0 : index
    %36 = vector.load %arg7[%c0_19, %c0_20, %c0_21] : memref<1x16x1xf32, #tpu.memory_space<vmem>>, vector<1x16x1xf32>
    %37 = vector.shape_cast %36 : vector<1x16x1xf32> to vector<16x1xf32>
    %38 = vector.shape_cast %35 : vector<16x1xf32> to vector<1x16x1xf32>
    tpu.vector_store %arg7[%c0_19, %c0_20, %c0_21], %38 {strides = array<i32>} : memref<1x16x1xf32, #tpu.memory_space<vmem>>, vector<1x16x1xf32>,
    %c0_22 = arith.constant 0 : index
    %c0_23 = arith.constant 0 : index
    %c0_24 = arith.constant 0 : index
    %39 = vector.load %arg8[%c0_22, %c0_23, %c0_24] : memref<1x16x1xf32, #tpu.memory_space<vmem>>, vector<1x16x1xf32>
    %40 = vector.shape_cast %39 : vector<1x16x1xf32> to vector<16x1xf32>
    %41 = arith.mulf %27, %27 : vector<16x512xf32>
    %cst_25 = arith.constant dense<0.000000e+00> : vector<16xf32>
    %42 = vector.multi_reduction <add>, %41, %cst_25 [1] : vector<16x512xf32> to vector<16xf32>
    %43 = vector.shape_cast %42 : vector<16xf32> to vector<16x1xf32>
    %44 = arith.addf %40, %43 : vector<16x1xf32>
    %c0_26 = arith.constant 0 : index
    %c0_27 = arith.constant 0 : index
    %c0_28 = arith.constant 0 : index
    %45 = vector.load %arg8[%c0_26, %c0_27, %c0_28] : memref<1x16x1xf32, #tpu.memory_space<vmem>>, vector<1x16x1xf32>
    %46 = vector.shape_cast %45 : vector<1x16x1xf32> to vector<16x1xf32>
    %47 = vector.shape_cast %44 : vector<16x1xf32> to vector<1x16x1xf32>
    tpu.vector_store %arg8[%c0_26, %c0_27, %c0_28], %47 {strides = array<i32>} : memref<1x16x1xf32, #tpu.memory_space<vmem>>, vector<1x16x1xf32>,
    return
  }
  func.func @transform_0(%arg0: i32, %arg1: i32) -> (i32, i32, i32) {
    %c0_i32 = arith.constant 0 : i32
    %c0_i32_0 = arith.constant 0 : i32
    return %arg0, %c0_i32, %arg1 : i32, i32, i32
  }
  func.func @transform_1(%arg0: i32, %arg1: i32) -> (i32, i32) {
    %c0_i32 = arith.constant 0 : i32
    %c0_i32_0 = arith.constant 0 : i32
    %c0_i32_1 = arith.constant 0 : i32
    return %c0_i32, %c0_i32_0 : i32, i32
  }
  func.func @transform_2(%arg0: i32, %arg1: i32) -> (i32, i32, i32) {
    %c0_i32 = arith.constant 0 : i32
    %c0_i32_0 = arith.constant 0 : i32
    return %arg0, %c0_i32, %arg1 : i32, i32, i32
  }
  func.func @transform_3(%arg0: i32, %arg1: i32) -> (i32, i32, i32) {
    %c2_i32 = arith.constant 2 : i32
    %0 = arith.muli %arg0, %c2_i32 : i32
    %1 = arith.addi %0, %arg1 : i32
    %c0_i32 = arith.constant 0 : i32
    %c0_i32_0 = arith.constant 0 : i32
    %c0_i32_1 = arith.constant 0 : i32
    return %1, %c0_i32, %c0_i32_0 : i32, i32, i32
  }
  func.func @transform_4(%arg0: i32, %arg1: i32) -> (i32, i32, i32) {
    %c2_i32 = arith.constant 2 : i32
    %0 = arith.muli %arg0, %c2_i32 : i32
    %1 = arith.addi %0, %arg1 : i32
    %c0_i32 = arith.constant 0 : i32
    %c0_i32_0 = arith.constant 0 : i32
    %c0_i32_1 = arith.constant 0 : i32
    return %1, %c0_i32, %c0_i32_0 : i32, i32, i32
  }
  func.func @transform_5(%arg0: i32, %arg1: i32) -> (i32, i32, i32) {
    %c0_i32 = arith.constant 0 : i32
    %c0_i32_0 = arith.constant 0 : i32
    %c0_i32_1 = arith.constant 0 : i32
    return %arg0, %c0_i32, %c0_i32_0 : i32, i32, i32
  }
  func.func @transform_6(%arg0: i32, %arg1: i32) -> (i32, i32, i32) {
    %c0_i32 = arith.constant 0 : i32
    %c0_i32_0 = arith.constant 0 : i32
    %c0_i32_1 = arith.constant 0 : i32
    return %arg0, %c0_i32, %c0_i32_0 : i32, i32, i32
  }
}

module attributes {stable_mosaic.version = 11 : i64} {
  func.func @_gap_moment_kernel(%arg0: i32, %arg1: i32, %arg2: memref<1x16x512xbf16, #tpu.memory_space<vmem>>, %arg3: memref<16x1xf32, #tpu.memory_space<vmem>>, %arg4: memref<16x1xf32, #tpu.memory_space<vmem>>, %arg5: memref<1x16x1xf32, #tpu.memory_space<vmem>>, %arg6: memref<1x16x16xf32, #tpu.memory_space<vmem>>) attributes {dimension_semantics = [#tpu.dimension_semantics<parallel>, #tpu.dimension_semantics<arbitrary>], iteration_bounds = array<i64: 4, 2>, scalar_prefetch = 0 : i64, scratch_operands = 0 : i64, tpu.core_type = #tpu.core_type<tc>, window_params = [{transform_indices = @transform_0, window_bounds = array<i64: 1, 16, 512>}, {pipeline_mode = #tpu.pipeline_mode<synchronous>, transform_indices = @transform_1, window_bounds = array<i64: 16, 1>}, {pipeline_mode = #tpu.pipeline_mode<synchronous>, transform_indices = @transform_2, window_bounds = array<i64: 16, 1>}, {transform_indices = @transform_3, window_bounds = array<i64: 1, 16, 1>}, {transform_indices = @transform_4, window_bounds = array<i64: 1, 16, 16>}]} {
    %0 = tpu.iota {dimensions = array<i32: 1>} : vector<1x512xi32>
    %c512_i32 = arith.constant 512 : i32
    %1 = arith.muli %arg1, %c512_i32 : i32
    %2 = vector.broadcast %1 : i32 to vector<1x512xi32>
    %3 = arith.addi %0, %2 : vector<1x512xi32>
    %c0 = arith.constant 0 : index
    %c0_0 = arith.constant 0 : index
    %c0_1 = arith.constant 0 : index
    %4 = vector.load %arg2[%c0, %c0_0, %c0_1] : memref<1x16x512xbf16, #tpu.memory_space<vmem>>, vector<1x16x512xbf16>
    %5 = vector.shape_cast %4 : vector<1x16x512xbf16> to vector<16x512xbf16>
    %6 = arith.extf %5 : vector<16x512xbf16> to vector<16x512xf32>
    %c0_2 = arith.constant 0 : index
    %c0_3 = arith.constant 0 : index
    %7 = vector.load %arg3[%c0_2, %c0_3] : memref<16x1xf32, #tpu.memory_space<vmem>>, vector<16x1xf32>
    %8 = vector.broadcast %7 : vector<16x1xf32> to vector<16x512xf32>
    %9 = arith.mulf %6, %8 : vector<16x512xf32>
    %c0_4 = arith.constant 0 : index
    %c0_5 = arith.constant 0 : index
    %10 = vector.load %arg4[%c0_4, %c0_5] : memref<16x1xf32, #tpu.memory_space<vmem>>, vector<16x1xf32>
    %11 = vector.broadcast %10 : vector<16x1xf32> to vector<16x512xf32>
    %12 = arith.addf %9, %11 : vector<16x512xf32>
    %cst = arith.constant 0.000000e+00 : f32
    %13 = vector.broadcast %cst : f32 to vector<16x512xf32>
    %14 = arith.maximumf %12, %13 : vector<16x512xf32>
    %c1024_i32 = arith.constant 1024 : i32
    %15 = vector.broadcast %c1024_i32 : i32 to vector<1x512xi32>
    %16 = arith.cmpi slt, %3, %15 : vector<1x512xi32>
    %cst_6 = arith.constant 0.000000e+00 : f32
    %17 = vector.shape_cast %16 : vector<1x512xi1> to vector<1x512xi1>
    %18 = vector.broadcast %17 : vector<1x512xi1> to vector<16x512xi1>
    %19 = vector.broadcast %cst_6 : f32 to vector<16x512xf32>
    %20 = arith.select %18, %14, %19 : vector<16x512xi1>, vector<16x512xf32>
    %c0_i32 = arith.constant 0 : i32
    %21 = arith.cmpi eq, %arg1, %c0_i32 : i32
    %22 = arith.extui %21 : i1 to i32
    %c0_i32_7 = arith.constant 0 : i32
    %23 = arith.cmpi ne, %22, %c0_i32_7 : i32
    scf.if %23 {
      %cst_22 = arith.constant 0.000000e+00 : f32
      %40 = vector.broadcast %cst_22 : f32 to vector<16x1xf32>
      %c0_23 = arith.constant 0 : index
      %c0_24 = arith.constant 0 : index
      %c0_25 = arith.constant 0 : index
      %41 = vector.load %arg5[%c0_23, %c0_24, %c0_25] : memref<1x16x1xf32, #tpu.memory_space<vmem>>, vector<1x16x1xf32>
      %42 = vector.shape_cast %41 : vector<1x16x1xf32> to vector<16x1xf32>
      %43 = vector.shape_cast %40 : vector<16x1xf32> to vector<1x16x1xf32>
      tpu.vector_store %arg5[%c0_23, %c0_24, %c0_25], %43 {strides = array<i32>} : memref<1x16x1xf32, #tpu.memory_space<vmem>>, vector<1x16x1xf32>,
      %cst_26 = arith.constant 0.000000e+00 : f32
      %44 = vector.broadcast %cst_26 : f32 to vector<16x16xf32>
      %c0_27 = arith.constant 0 : index
      %c0_28 = arith.constant 0 : index
      %c0_29 = arith.constant 0 : index
      %45 = vector.load %arg6[%c0_27, %c0_28, %c0_29] : memref<1x16x16xf32, #tpu.memory_space<vmem>>, vector<1x16x16xf32>
      %46 = vector.shape_cast %45 : vector<1x16x16xf32> to vector<16x16xf32>
      %47 = vector.shape_cast %44 : vector<16x16xf32> to vector<1x16x16xf32>
      tpu.vector_store %arg6[%c0_27, %c0_28, %c0_29], %47 {strides = array<i32>} : memref<1x16x16xf32, #tpu.memory_space<vmem>>, vector<1x16x16xf32>,
    } else {
    }
    %c0_8 = arith.constant 0 : index
    %c0_9 = arith.constant 0 : index
    %c0_10 = arith.constant 0 : index
    %24 = vector.load %arg5[%c0_8, %c0_9, %c0_10] : memref<1x16x1xf32, #tpu.memory_space<vmem>>, vector<1x16x1xf32>
    %25 = vector.shape_cast %24 : vector<1x16x1xf32> to vector<16x1xf32>
    %cst_11 = arith.constant dense<0.000000e+00> : vector<16xf32>
    %26 = vector.multi_reduction <add>, %20, %cst_11 [1] : vector<16x512xf32> to vector<16xf32>
    %27 = vector.shape_cast %26 : vector<16xf32> to vector<16x1xf32>
    %28 = arith.addf %25, %27 : vector<16x1xf32>
    %c0_12 = arith.constant 0 : index
    %c0_13 = arith.constant 0 : index
    %c0_14 = arith.constant 0 : index
    %29 = vector.load %arg5[%c0_12, %c0_13, %c0_14] : memref<1x16x1xf32, #tpu.memory_space<vmem>>, vector<1x16x1xf32>
    %30 = vector.shape_cast %29 : vector<1x16x1xf32> to vector<16x1xf32>
    %31 = vector.shape_cast %28 : vector<16x1xf32> to vector<1x16x1xf32>
    tpu.vector_store %arg5[%c0_12, %c0_13, %c0_14], %31 {strides = array<i32>} : memref<1x16x1xf32, #tpu.memory_space<vmem>>, vector<1x16x1xf32>,
    %32 = arith.truncf %20 : vector<16x512xf32> to vector<16x512xbf16>
    %c0_15 = arith.constant 0 : index
    %c0_16 = arith.constant 0 : index
    %c0_17 = arith.constant 0 : index
    %33 = vector.load %arg6[%c0_15, %c0_16, %c0_17] : memref<1x16x16xf32, #tpu.memory_space<vmem>>, vector<1x16x16xf32>
    %34 = vector.shape_cast %33 : vector<1x16x16xf32> to vector<16x16xf32>
    %cst_18 = arith.constant dense<0.000000e+00> : vector<16x16xf32>
    %35 = tpu.matmul %32, %32, %cst_18 {dimension_numbers = #tpu.dot_dimension_numbers<[1], [1], [0], [0], [0, 0, 1, 0], [], []>} : vector<16x512xbf16>, vector<16x512xbf16>, vector<16x16xf32> -> vector<16x16xf32>
    %36 = arith.addf %34, %35 : vector<16x16xf32>
    %c0_19 = arith.constant 0 : index
    %c0_20 = arith.constant 0 : index
    %c0_21 = arith.constant 0 : index
    %37 = vector.load %arg6[%c0_19, %c0_20, %c0_21] : memref<1x16x16xf32, #tpu.memory_space<vmem>>, vector<1x16x16xf32>
    %38 = vector.shape_cast %37 : vector<1x16x16xf32> to vector<16x16xf32>
    %39 = vector.shape_cast %36 : vector<16x16xf32> to vector<1x16x16xf32>
    tpu.vector_store %arg6[%c0_19, %c0_20, %c0_21], %39 {strides = array<i32>} : memref<1x16x16xf32, #tpu.memory_space<vmem>>, vector<1x16x16xf32>,
    return
  }
  func.func @transform_0(%arg0: i32, %arg1: i32) -> (i32, i32, i32) {
    %c0_i32 = arith.constant 0 : i32
    %c0_i32_0 = arith.constant 0 : i32
    return %arg0, %c0_i32, %arg1 : i32, i32, i32
  }
  func.func @transform_1(%arg0: i32, %arg1: i32) -> (i32, i32) {
    %c0_i32 = arith.constant 0 : i32
    %c0_i32_0 = arith.constant 0 : i32
    %c0_i32_1 = arith.constant 0 : i32
    return %c0_i32, %c0_i32_0 : i32, i32
  }
  func.func @transform_2(%arg0: i32, %arg1: i32) -> (i32, i32) {
    %c0_i32 = arith.constant 0 : i32
    %c0_i32_0 = arith.constant 0 : i32
    %c0_i32_1 = arith.constant 0 : i32
    return %c0_i32, %c0_i32_0 : i32, i32
  }
  func.func @transform_3(%arg0: i32, %arg1: i32) -> (i32, i32, i32) {
    %c0_i32 = arith.constant 0 : i32
    %c0_i32_0 = arith.constant 0 : i32
    %c0_i32_1 = arith.constant 0 : i32
    return %arg0, %c0_i32, %c0_i32_0 : i32, i32, i32
  }
  func.func @transform_4(%arg0: i32, %arg1: i32) -> (i32, i32, i32) {
    %c0_i32 = arith.constant 0 : i32
    %c0_i32_0 = arith.constant 0 : i32
    %c0_i32_1 = arith.constant 0 : i32
    return %arg0, %c0_i32, %c0_i32_0 : i32, i32, i32
  }
}

module attributes {stable_mosaic.version = 11 : i64} {
  func.func @_conv2_stats_kernel(%arg0: i32, %arg1: i32, %arg2: memref<1x16x512xbf16, #tpu.memory_space<vmem>>, %arg3: memref<1x16x1xbf16, #tpu.memory_space<vmem>>, %arg4: memref<1x16x1xbf16, #tpu.memory_space<vmem>>, %arg5: memref<16x1xf32, #tpu.memory_space<vmem>>, %arg6: memref<16x1xf32, #tpu.memory_space<vmem>>, %arg7: memref<3x16x16xbf16, #tpu.memory_space<vmem>>, %arg8: memref<1x16x512xbf16, #tpu.memory_space<vmem>>, %arg9: memref<1x16x1xf32, #tpu.memory_space<vmem>>, %arg10: memref<1x16x1xf32, #tpu.memory_space<vmem>>) attributes {dimension_semantics = [#tpu.dimension_semantics<parallel>, #tpu.dimension_semantics<arbitrary>], iteration_bounds = array<i64: 4, 2>, scalar_prefetch = 0 : i64, scratch_operands = 0 : i64, tpu.core_type = #tpu.core_type<tc>, window_params = [{transform_indices = @transform_0, window_bounds = array<i64: 1, 16, 512>}, {transform_indices = @transform_1, window_bounds = array<i64: 1, 16, 1>}, {transform_indices = @transform_2, window_bounds = array<i64: 1, 16, 1>}, {pipeline_mode = #tpu.pipeline_mode<synchronous>, transform_indices = @transform_3, window_bounds = array<i64: 16, 1>}, {pipeline_mode = #tpu.pipeline_mode<synchronous>, transform_indices = @transform_4, window_bounds = array<i64: 16, 1>}, {pipeline_mode = #tpu.pipeline_mode<synchronous>, transform_indices = @transform_5, window_bounds = array<i64: 3, 16, 16>}, {transform_indices = @transform_6, window_bounds = array<i64: 1, 16, 512>}, {transform_indices = @transform_7, window_bounds = array<i64: 1, 16, 1>}, {transform_indices = @transform_8, window_bounds = array<i64: 1, 16, 1>}]} {
    %0 = tpu.iota {dimensions = array<i32: 1>} : vector<1x512xi32>
    %c512_i32 = arith.constant 512 : i32
    %1 = arith.muli %arg1, %c512_i32 : i32
    %2 = vector.broadcast %1 : i32 to vector<1x512xi32>
    %3 = arith.addi %0, %2 : vector<1x512xi32>
    %c0 = arith.constant 0 : index
    %c0_0 = arith.constant 0 : index
    %4 = vector.load %arg5[%c0, %c0_0] : memref<16x1xf32, #tpu.memory_space<vmem>>, vector<16x1xf32>
    %c0_1 = arith.constant 0 : index
    %c0_2 = arith.constant 0 : index
    %5 = vector.load %arg6[%c0_1, %c0_2] : memref<16x1xf32, #tpu.memory_space<vmem>>, vector<16x1xf32>
    %c0_3 = arith.constant 0 : index
    %c0_4 = arith.constant 0 : index
    %c0_5 = arith.constant 0 : index
    %6 = vector.load %arg2[%c0_3, %c0_4, %c0_5] : memref<1x16x512xbf16, #tpu.memory_space<vmem>>, vector<1x16x512xbf16>
    %7 = vector.shape_cast %6 : vector<1x16x512xbf16> to vector<16x512xbf16>
    %8 = arith.extf %7 : vector<16x512xbf16> to vector<16x512xf32>
    %9 = vector.broadcast %4 : vector<16x1xf32> to vector<16x512xf32>
    %10 = arith.mulf %8, %9 : vector<16x512xf32>
    %11 = vector.broadcast %5 : vector<16x1xf32> to vector<16x512xf32>
    %12 = arith.addf %10, %11 : vector<16x512xf32>
    %cst = arith.constant 0.000000e+00 : f32
    %13 = vector.broadcast %cst : f32 to vector<16x512xf32>
    %14 = arith.maximumf %12, %13 : vector<16x512xf32>
    %c0_6 = arith.constant 0 : index
    %c0_7 = arith.constant 0 : index
    %c0_8 = arith.constant 0 : index
    %15 = vector.load %arg3[%c0_6, %c0_7, %c0_8] : memref<1x16x1xbf16, #tpu.memory_space<vmem>>, vector<1x16x1xbf16>
    %16 = vector.shape_cast %15 : vector<1x16x1xbf16> to vector<16x1xbf16>
    %17 = arith.extf %16 : vector<16x1xbf16> to vector<16x1xf32>
    %18 = arith.mulf %17, %4 : vector<16x1xf32>
    %19 = arith.addf %18, %5 : vector<16x1xf32>
    %cst_9 = arith.constant 0.000000e+00 : f32
    %20 = vector.broadcast %cst_9 : f32 to vector<16x1xf32>
    %21 = arith.maximumf %19, %20 : vector<16x1xf32>
    %c0_10 = arith.constant 0 : index
    %c0_11 = arith.constant 0 : index
    %c0_12 = arith.constant 0 : index
    %22 = vector.load %arg4[%c0_10, %c0_11, %c0_12] : memref<1x16x1xbf16, #tpu.memory_space<vmem>>, vector<1x16x1xbf16>
    %23 = vector.shape_cast %22 : vector<1x16x1xbf16> to vector<16x1xbf16>
    %24 = arith.extf %23 : vector<16x1xbf16> to vector<16x1xf32>
    %25 = arith.mulf %24, %4 : vector<16x1xf32>
    %26 = arith.addf %25, %5 : vector<16x1xf32>
    %cst_13 = arith.constant 0.000000e+00 : f32
    %27 = vector.broadcast %cst_13 : f32 to vector<16x1xf32>
    %28 = arith.maximumf %26, %27 : vector<16x1xf32>
    %c0_i32 = arith.constant 0 : i32
    %29 = vector.broadcast %c0_i32 : i32 to vector<1x512xi32>
    %30 = arith.cmpi eq, %0, %29 : vector<1x512xi32>
    %c1_i32 = arith.constant 1 : i32
    %31 = tpu.dynamic_rotate %14 by %c1_i32 dim 1 : vector<16x512xf32>, i32 -> vector<16x512xf32>
    %32 = vector.shape_cast %30 : vector<1x512xi1> to vector<1x512xi1>
    %33 = vector.broadcast %32 : vector<1x512xi1> to vector<16x512xi1>
    %34 = vector.shape_cast %21 : vector<16x1xf32> to vector<16x1xf32>
    %35 = vector.broadcast %34 : vector<16x1xf32> to vector<16x512xf32>
    %36 = arith.select %33, %35, %31 : vector<16x512xi1>, vector<16x512xf32>
    %c511_i32 = arith.constant 511 : i32
    %37 = vector.broadcast %c511_i32 : i32 to vector<1x512xi32>
    %38 = arith.cmpi eq, %0, %37 : vector<1x512xi32>
    %c511_i32_14 = arith.constant 511 : i32
    %39 = tpu.dynamic_rotate %14 by %c511_i32_14 dim 1 : vector<16x512xf32>, i32 -> vector<16x512xf32>
    %40 = vector.shape_cast %38 : vector<1x512xi1> to vector<1x512xi1>
    %41 = vector.broadcast %40 : vector<1x512xi1> to vector<16x512xi1>
    %42 = vector.shape_cast %28 : vector<16x1xf32> to vector<16x1xf32>
    %43 = vector.broadcast %42 : vector<16x1xf32> to vector<16x512xf32>
    %44 = arith.select %41, %43, %39 : vector<16x512xi1>, vector<16x512xf32>
    %c1024_i32 = arith.constant 1024 : i32
    %45 = vector.broadcast %c1024_i32 : i32 to vector<1x512xi32>
    %46 = arith.cmpi slt, %3, %45 : vector<1x512xi32>
    %cst_15 = arith.constant 0.000000e+00 : f32
    %47 = vector.shape_cast %46 : vector<1x512xi1> to vector<1x512xi1>
    %48 = vector.broadcast %47 : vector<1x512xi1> to vector<16x512xi1>
    %49 = vector.broadcast %cst_15 : f32 to vector<16x512xf32>
    %50 = arith.select %48, %14, %49 : vector<16x512xi1>, vector<16x512xf32>
    %c1_i32_16 = arith.constant 1 : i32
    %51 = vector.broadcast %c1_i32_16 : i32 to vector<1x512xi32>
    %52 = arith.cmpi sge, %3, %51 : vector<1x512xi32>
    %c1024_i32_17 = arith.constant 1024 : i32
    %53 = vector.broadcast %c1024_i32_17 : i32 to vector<1x512xi32>
    %54 = arith.cmpi slt, %3, %53 : vector<1x512xi32>
    %55 = arith.andi %52, %54 : vector<1x512xi1>
    %cst_18 = arith.constant 0.000000e+00 : f32
    %56 = vector.shape_cast %55 : vector<1x512xi1> to vector<1x512xi1>
    %57 = vector.broadcast %56 : vector<1x512xi1> to vector<16x512xi1>
    %58 = vector.broadcast %cst_18 : f32 to vector<16x512xf32>
    %59 = arith.select %57, %36, %58 : vector<16x512xi1>, vector<16x512xf32>
    %c1023_i32 = arith.constant 1023 : i32
    %60 = vector.broadcast %c1023_i32 : i32 to vector<1x512xi32>
    %61 = arith.cmpi slt, %3, %60 : vector<1x512xi32>
    %cst_19 = arith.constant 0.000000e+00 : f32
    %62 = vector.shape_cast %61 : vector<1x512xi1> to vector<1x512xi1>
    %63 = vector.broadcast %62 : vector<1x512xi1> to vector<16x512xi1>
    %64 = vector.broadcast %cst_19 : f32 to vector<16x512xf32>
    %65 = arith.select %63, %44, %64 : vector<16x512xi1>, vector<16x512xf32>
    %c0_20 = arith.constant 0 : index
    %c0_21 = arith.constant 0 : index
    %c0_22 = arith.constant 0 : index
    %66 = vector.load %arg7[%c0_20, %c0_21, %c0_22] : memref<3x16x16xbf16, #tpu.memory_space<vmem>>, vector<1x16x16xbf16>
    %67 = vector.shape_cast %66 : vector<1x16x16xbf16> to vector<16x16xbf16>
    %68 = arith.truncf %59 : vector<16x512xf32> to vector<16x512xbf16>
    %cst_23 = arith.constant dense<0.000000e+00> : vector<16x512xf32>
    %69 = tpu.matmul %67, %68, %cst_23 {dimension_numbers = #tpu.dot_dimension_numbers<[1], [0], [0], [1], [0, 0, 1, 1], [], []>} : vector<16x16xbf16>, vector<16x512xbf16>, vector<16x512xf32> -> vector<16x512xf32>
    %c1 = arith.constant 1 : index
    %c0_24 = arith.constant 0 : index
    %c0_25 = arith.constant 0 : index
    %70 = vector.load %arg7[%c1, %c0_24, %c0_25] : memref<3x16x16xbf16, #tpu.memory_space<vmem>>, vector<1x16x16xbf16>
    %71 = vector.shape_cast %70 : vector<1x16x16xbf16> to vector<16x16xbf16>
    %72 = arith.truncf %50 : vector<16x512xf32> to vector<16x512xbf16>
    %cst_26 = arith.constant dense<0.000000e+00> : vector<16x512xf32>
    %73 = tpu.matmul %71, %72, %cst_26 {dimension_numbers = #tpu.dot_dimension_numbers<[1], [0], [0], [1], [0, 0, 1, 1], [], []>} : vector<16x16xbf16>, vector<16x512xbf16>, vector<16x512xf32> -> vector<16x512xf32>
    %74 = arith.addf %69, %73 : vector<16x512xf32>
    %c2 = arith.constant 2 : index
    %c0_27 = arith.constant 0 : index
    %c0_28 = arith.constant 0 : index
    %75 = vector.load %arg7[%c2, %c0_27, %c0_28] : memref<3x16x16xbf16, #tpu.memory_space<vmem>>, vector<1x16x16xbf16>
    %76 = vector.shape_cast %75 : vector<1x16x16xbf16> to vector<16x16xbf16>
    %77 = arith.truncf %65 : vector<16x512xf32> to vector<16x512xbf16>
    %cst_29 = arith.constant dense<0.000000e+00> : vector<16x512xf32>
    %78 = tpu.matmul %76, %77, %cst_29 {dimension_numbers = #tpu.dot_dimension_numbers<[1], [0], [0], [1], [0, 0, 1, 1], [], []>} : vector<16x16xbf16>, vector<16x512xbf16>, vector<16x512xf32> -> vector<16x512xf32>
    %79 = arith.addf %74, %78 : vector<16x512xf32>
    %80 = arith.truncf %79 : vector<16x512xf32> to vector<16x512xbf16>
    %c0_30 = arith.constant 0 : index
    %c0_31 = arith.constant 0 : index
    %c0_32 = arith.constant 0 : index
    %81 = vector.load %arg8[%c0_30, %c0_31, %c0_32] : memref<1x16x512xbf16, #tpu.memory_space<vmem>>, vector<1x16x512xbf16>
    %82 = vector.shape_cast %81 : vector<1x16x512xbf16> to vector<16x512xbf16>
    %83 = vector.shape_cast %80 : vector<16x512xbf16> to vector<1x16x512xbf16>
    tpu.vector_store %arg8[%c0_30, %c0_31, %c0_32], %83 {strides = array<i32>} : memref<1x16x512xbf16, #tpu.memory_space<vmem>>, vector<1x16x512xbf16>,
    %84 = arith.extf %80 : vector<16x512xbf16> to vector<16x512xf32>
    %c0_i32_33 = arith.constant 0 : i32
    %85 = arith.cmpi eq, %arg1, %c0_i32_33 : i32
    %86 = arith.extui %85 : i1 to i32
    %c0_i32_34 = arith.constant 0 : i32
    %87 = arith.cmpi ne, %86, %c0_i32_34 : i32
    scf.if %87 {
      %cst_49 = arith.constant 0.000000e+00 : f32
      %105 = vector.broadcast %cst_49 : f32 to vector<16x1xf32>
      %c0_50 = arith.constant 0 : index
      %c0_51 = arith.constant 0 : index
      %c0_52 = arith.constant 0 : index
      %106 = vector.load %arg9[%c0_50, %c0_51, %c0_52] : memref<1x16x1xf32, #tpu.memory_space<vmem>>, vector<1x16x1xf32>
      %107 = vector.shape_cast %106 : vector<1x16x1xf32> to vector<16x1xf32>
      %108 = vector.shape_cast %105 : vector<16x1xf32> to vector<1x16x1xf32>
      tpu.vector_store %arg9[%c0_50, %c0_51, %c0_52], %108 {strides = array<i32>} : memref<1x16x1xf32, #tpu.memory_space<vmem>>, vector<1x16x1xf32>,
      %cst_53 = arith.constant 0.000000e+00 : f32
      %109 = vector.broadcast %cst_53 : f32 to vector<16x1xf32>
      %c0_54 = arith.constant 0 : index
      %c0_55 = arith.constant 0 : index
      %c0_56 = arith.constant 0 : index
      %110 = vector.load %arg10[%c0_54, %c0_55, %c0_56] : memref<1x16x1xf32, #tpu.memory_space<vmem>>, vector<1x16x1xf32>
      %111 = vector.shape_cast %110 : vector<1x16x1xf32> to vector<16x1xf32>
      %112 = vector.shape_cast %109 : vector<16x1xf32> to vector<1x16x1xf32>
      tpu.vector_store %arg10[%c0_54, %c0_55, %c0_56], %112 {strides = array<i32>} : memref<1x16x1xf32, #tpu.memory_space<vmem>>, vector<1x16x1xf32>,
    } else {
    }
    %c0_35 = arith.constant 0 : index
    %c0_36 = arith.constant 0 : index
    %c0_37 = arith.constant 0 : index
    %88 = vector.load %arg9[%c0_35, %c0_36, %c0_37] : memref<1x16x1xf32, #tpu.memory_space<vmem>>, vector<1x16x1xf32>
    %89 = vector.shape_cast %88 : vector<1x16x1xf32> to vector<16x1xf32>
    %cst_38 = arith.constant dense<0.000000e+00> : vector<16xf32>
    %90 = vector.multi_reduction <add>, %84, %cst_38 [1] : vector<16x512xf32> to vector<16xf32>
    %91 = vector.shape_cast %90 : vector<16xf32> to vector<16x1xf32>
    %92 = arith.addf %89, %91 : vector<16x1xf32>
    %c0_39 = arith.constant 0 : index
    %c0_40 = arith.constant 0 : index
    %c0_41 = arith.constant 0 : index
    %93 = vector.load %arg9[%c0_39, %c0_40, %c0_41] : memref<1x16x1xf32, #tpu.memory_space<vmem>>, vector<1x16x1xf32>
    %94 = vector.shape_cast %93 : vector<1x16x1xf32> to vector<16x1xf32>
    %95 = vector.shape_cast %92 : vector<16x1xf32> to vector<1x16x1xf32>
    tpu.vector_store %arg9[%c0_39, %c0_40, %c0_41], %95 {strides = array<i32>} : memref<1x16x1xf32, #tpu.memory_space<vmem>>, vector<1x16x1xf32>,
    %c0_42 = arith.constant 0 : index
    %c0_43 = arith.constant 0 : index
    %c0_44 = arith.constant 0 : index
    %96 = vector.load %arg10[%c0_42, %c0_43, %c0_44] : memref<1x16x1xf32, #tpu.memory_space<vmem>>, vector<1x16x1xf32>
    %97 = vector.shape_cast %96 : vector<1x16x1xf32> to vector<16x1xf32>
    %98 = arith.mulf %84, %84 : vector<16x512xf32>
    %cst_45 = arith.constant dense<0.000000e+00> : vector<16xf32>
    %99 = vector.multi_reduction <add>, %98, %cst_45 [1] : vector<16x512xf32> to vector<16xf32>
    %100 = vector.shape_cast %99 : vector<16xf32> to vector<16x1xf32>
    %101 = arith.addf %97, %100 : vector<16x1xf32>
    %c0_46 = arith.constant 0 : index
    %c0_47 = arith.constant 0 : index
    %c0_48 = arith.constant 0 : index
    %102 = vector.load %arg10[%c0_46, %c0_47, %c0_48] : memref<1x16x1xf32, #tpu.memory_space<vmem>>, vector<1x16x1xf32>
    %103 = vector.shape_cast %102 : vector<1x16x1xf32> to vector<16x1xf32>
    %104 = vector.shape_cast %101 : vector<16x1xf32> to vector<1x16x1xf32>
    tpu.vector_store %arg10[%c0_46, %c0_47, %c0_48], %104 {strides = array<i32>} : memref<1x16x1xf32, #tpu.memory_space<vmem>>, vector<1x16x1xf32>,
    return
  }
  func.func @transform_0(%arg0: i32, %arg1: i32) -> (i32, i32, i32) {
    %c0_i32 = arith.constant 0 : i32
    %c0_i32_0 = arith.constant 0 : i32
    return %arg0, %c0_i32, %arg1 : i32, i32, i32
  }
  func.func @transform_1(%arg0: i32, %arg1: i32) -> (i32, i32, i32) {
    %c2_i32 = arith.constant 2 : i32
    %0 = arith.muli %arg0, %c2_i32 : i32
    %c1_i32 = arith.constant 1 : i32
    %1 = arith.subi %arg1, %c1_i32 : i32
    %c0_i32 = arith.constant 0 : i32
    %2 = arith.maxsi %1, %c0_i32 : i32
    %3 = arith.addi %0, %2 : i32
    %c0_i32_0 = arith.constant 0 : i32
    %c0_i32_1 = arith.constant 0 : i32
    %c0_i32_2 = arith.constant 0 : i32
    return %3, %c0_i32_0, %c0_i32_1 : i32, i32, i32
  }
  func.func @transform_2(%arg0: i32, %arg1: i32) -> (i32, i32, i32) {
    %c2_i32 = arith.constant 2 : i32
    %0 = arith.muli %arg0, %c2_i32 : i32
    %c1_i32 = arith.constant 1 : i32
    %1 = arith.addi %arg1, %c1_i32 : i32
    %c1_i32_0 = arith.constant 1 : i32
    %2 = arith.minsi %1, %c1_i32_0 : i32
    %3 = arith.addi %0, %2 : i32
    %c0_i32 = arith.constant 0 : i32
    %c0_i32_1 = arith.constant 0 : i32
    %c0_i32_2 = arith.constant 0 : i32
    return %3, %c0_i32, %c0_i32_1 : i32, i32, i32
  }
  func.func @transform_3(%arg0: i32, %arg1: i32) -> (i32, i32) {
    %c0_i32 = arith.constant 0 : i32
    %c0_i32_0 = arith.constant 0 : i32
    %c0_i32_1 = arith.constant 0 : i32
    return %c0_i32, %c0_i32_0 : i32, i32
  }
  func.func @transform_4(%arg0: i32, %arg1: i32) -> (i32, i32) {
    %c0_i32 = arith.constant 0 : i32
    %c0_i32_0 = arith.constant 0 : i32
    %c0_i32_1 = arith.constant 0 : i32
    return %c0_i32, %c0_i32_0 : i32, i32
  }
  func.func @transform_5(%arg0: i32, %arg1: i32) -> (i32, i32, i32) {
    %c0_i32 = arith.constant 0 : i32
    %c0_i32_0 = arith.constant 0 : i32
    %c0_i32_1 = arith.constant 0 : i32
    %c0_i32_2 = arith.constant 0 : i32
    return %c0_i32, %c0_i32_0, %c0_i32_1 : i32, i32, i32
  }
  func.func @transform_6(%arg0: i32, %arg1: i32) -> (i32, i32, i32) {
    %c0_i32 = arith.constant 0 : i32
    %c0_i32_0 = arith.constant 0 : i32
    return %arg0, %c0_i32, %arg1 : i32, i32, i32
  }
  func.func @transform_7(%arg0: i32, %arg1: i32) -> (i32, i32, i32) {
    %c0_i32 = arith.constant 0 : i32
    %c0_i32_0 = arith.constant 0 : i32
    %c0_i32_1 = arith.constant 0 : i32
    return %arg0, %c0_i32, %c0_i32_0 : i32, i32, i32
  }
  func.func @transform_8(%arg0: i32, %arg1: i32) -> (i32, i32, i32) {
    %c0_i32 = arith.constant 0 : i32
    %c0_i32_0 = arith.constant 0 : i32
    %c0_i32_1 = arith.constant 0 : i32
    return %arg0, %c0_i32, %c0_i32_0 : i32, i32, i32
  }
}

module attributes {stable_mosaic.version = 11 : i64} {
  func.func @_conv3_out_kernel(%arg0: i32, %arg1: i32, %arg2: memref<1x16x512xbf16, #tpu.memory_space<vmem>>, %arg3: memref<1x64x512xf32, #tpu.memory_space<vmem>>, %arg4: memref<16x1xf32, #tpu.memory_space<vmem>>, %arg5: memref<16x1xf32, #tpu.memory_space<vmem>>, %arg6: memref<1x16x1xf32, #tpu.memory_space<vmem>>, %arg7: memref<64x16xbf16, #tpu.memory_space<vmem>>, %arg8: memref<64x1xf32, #tpu.memory_space<vmem>>, %arg9: memref<64x1xf32, #tpu.memory_space<vmem>>, %arg10: memref<1x64x512xf32, #tpu.memory_space<vmem>>) attributes {dimension_semantics = [#tpu.dimension_semantics<parallel>, #tpu.dimension_semantics<parallel>], iteration_bounds = array<i64: 4, 2>, scalar_prefetch = 0 : i64, scratch_operands = 0 : i64, tpu.core_type = #tpu.core_type<tc>, window_params = [{transform_indices = @transform_0, window_bounds = array<i64: 1, 16, 512>}, {transform_indices = @transform_1, window_bounds = array<i64: 1, 64, 512>}, {pipeline_mode = #tpu.pipeline_mode<synchronous>, transform_indices = @transform_2, window_bounds = array<i64: 16, 1>}, {pipeline_mode = #tpu.pipeline_mode<synchronous>, transform_indices = @transform_3, window_bounds = array<i64: 16, 1>}, {transform_indices = @transform_4, window_bounds = array<i64: 1, 16, 1>}, {pipeline_mode = #tpu.pipeline_mode<synchronous>, transform_indices = @transform_5, window_bounds = array<i64: 64, 16>}, {pipeline_mode = #tpu.pipeline_mode<synchronous>, transform_indices = @transform_6, window_bounds = array<i64: 64, 1>}, {pipeline_mode = #tpu.pipeline_mode<synchronous>, transform_indices = @transform_7, window_bounds = array<i64: 64, 1>}, {transform_indices = @transform_8, window_bounds = array<i64: 1, 64, 512>}]} {
    %c0 = arith.constant 0 : index
    %c0_0 = arith.constant 0 : index
    %c0_1 = arith.constant 0 : index
    %0 = vector.load %arg2[%c0, %c0_0, %c0_1] : memref<1x16x512xbf16, #tpu.memory_space<vmem>>, vector<1x16x512xbf16>
    %1 = vector.shape_cast %0 : vector<1x16x512xbf16> to vector<16x512xbf16>
    %2 = arith.extf %1 : vector<16x512xbf16> to vector<16x512xf32>
    %c0_2 = arith.constant 0 : index
    %c0_3 = arith.constant 0 : index
    %3 = vector.load %arg4[%c0_2, %c0_3] : memref<16x1xf32, #tpu.memory_space<vmem>>, vector<16x1xf32>
    %4 = vector.broadcast %3 : vector<16x1xf32> to vector<16x512xf32>
    %5 = arith.mulf %2, %4 : vector<16x512xf32>
    %c0_4 = arith.constant 0 : index
    %c0_5 = arith.constant 0 : index
    %6 = vector.load %arg5[%c0_4, %c0_5] : memref<16x1xf32, #tpu.memory_space<vmem>>, vector<16x1xf32>
    %7 = vector.broadcast %6 : vector<16x1xf32> to vector<16x512xf32>
    %8 = arith.addf %5, %7 : vector<16x512xf32>
    %cst = arith.constant 0.000000e+00 : f32
    %9 = vector.broadcast %cst : f32 to vector<16x512xf32>
    %10 = arith.maximumf %8, %9 : vector<16x512xf32>
    %c0_6 = arith.constant 0 : index
    %c0_7 = arith.constant 0 : index
    %c0_8 = arith.constant 0 : index
    %11 = vector.load %arg6[%c0_6, %c0_7, %c0_8] : memref<1x16x1xf32, #tpu.memory_space<vmem>>, vector<1x16x1xf32>
    %12 = vector.shape_cast %11 : vector<1x16x1xf32> to vector<16x1xf32>
    %13 = vector.broadcast %12 : vector<16x1xf32> to vector<16x512xf32>
    %14 = arith.mulf %10, %13 : vector<16x512xf32>
    %c0_9 = arith.constant 0 : index
    %c0_10 = arith.constant 0 : index
    %15 = vector.load %arg7[%c0_9, %c0_10] : memref<64x16xbf16, #tpu.memory_space<vmem>>, vector<64x16xbf16>
    %16 = arith.truncf %14 : vector<16x512xf32> to vector<16x512xbf16>
    %cst_11 = arith.constant dense<0.000000e+00> : vector<64x512xf32>
    %17 = tpu.matmul %15, %16, %cst_11 {dimension_numbers = #tpu.dot_dimension_numbers<[1], [0], [0], [1], [0, 0, 1, 1], [], []>} : vector<64x16xbf16>, vector<16x512xbf16>, vector<64x512xf32> -> vector<64x512xf32>
    %c0_12 = arith.constant 0 : index
    %c0_13 = arith.constant 0 : index
    %18 = vector.load %arg8[%c0_12, %c0_13] : memref<64x1xf32, #tpu.memory_space<vmem>>, vector<64x1xf32>
    %19 = vector.broadcast %18 : vector<64x1xf32> to vector<64x512xf32>
    %20 = arith.mulf %17, %19 : vector<64x512xf32>
    %c0_14 = arith.constant 0 : index
    %c0_15 = arith.constant 0 : index
    %21 = vector.load %arg9[%c0_14, %c0_15] : memref<64x1xf32, #tpu.memory_space<vmem>>, vector<64x1xf32>
    %22 = vector.broadcast %21 : vector<64x1xf32> to vector<64x512xf32>
    %23 = arith.addf %20, %22 : vector<64x512xf32>
    %c0_16 = arith.constant 0 : index
    %c0_17 = arith.constant 0 : index
    %c0_18 = arith.constant 0 : index
    %24 = vector.load %arg3[%c0_16, %c0_17, %c0_18] : memref<1x64x512xf32, #tpu.memory_space<vmem>>, vector<1x64x512xf32>
    %25 = vector.shape_cast %24 : vector<1x64x512xf32> to vector<64x512xf32>
    %26 = arith.addf %23, %25 : vector<64x512xf32>
    %cst_19 = arith.constant 0.000000e+00 : f32
    %27 = vector.broadcast %cst_19 : f32 to vector<64x512xf32>
    %28 = arith.maximumf %26, %27 : vector<64x512xf32>
    %c0_20 = arith.constant 0 : index
    %c0_21 = arith.constant 0 : index
    %c0_22 = arith.constant 0 : index
    %29 = vector.load %arg10[%c0_20, %c0_21, %c0_22] : memref<1x64x512xf32, #tpu.memory_space<vmem>>, vector<1x64x512xf32>
    %30 = vector.shape_cast %29 : vector<1x64x512xf32> to vector<64x512xf32>
    %31 = vector.shape_cast %28 : vector<64x512xf32> to vector<1x64x512xf32>
    tpu.vector_store %arg10[%c0_20, %c0_21, %c0_22], %31 {strides = array<i32>} : memref<1x64x512xf32, #tpu.memory_space<vmem>>, vector<1x64x512xf32>,
    return
  }
  func.func @transform_0(%arg0: i32, %arg1: i32) -> (i32, i32, i32) {
    %c0_i32 = arith.constant 0 : i32
    %c0_i32_0 = arith.constant 0 : i32
    return %arg0, %c0_i32, %arg1 : i32, i32, i32
  }
  func.func @transform_1(%arg0: i32, %arg1: i32) -> (i32, i32, i32) {
    %c0_i32 = arith.constant 0 : i32
    %c0_i32_0 = arith.constant 0 : i32
    return %arg0, %c0_i32, %arg1 : i32, i32, i32
  }
  func.func @transform_2(%arg0: i32, %arg1: i32) -> (i32, i32) {
    %c0_i32 = arith.constant 0 : i32
    %c0_i32_0 = arith.constant 0 : i32
    %c0_i32_1 = arith.constant 0 : i32
    return %c0_i32, %c0_i32_0 : i32, i32
  }
  func.func @transform_3(%arg0: i32, %arg1: i32) -> (i32, i32) {
    %c0_i32 = arith.constant 0 : i32
    %c0_i32_0 = arith.constant 0 : i32
    %c0_i32_1 = arith.constant 0 : i32
    return %c0_i32, %c0_i32_0 : i32, i32
  }
  func.func @transform_4(%arg0: i32, %arg1: i32) -> (i32, i32, i32) {
    %c0_i32 = arith.constant 0 : i32
    %c0_i32_0 = arith.constant 0 : i32
    %c0_i32_1 = arith.constant 0 : i32
    return %arg0, %c0_i32, %c0_i32_0 : i32, i32, i32
  }
  func.func @transform_5(%arg0: i32, %arg1: i32) -> (i32, i32) {
    %c0_i32 = arith.constant 0 : i32
    %c0_i32_0 = arith.constant 0 : i32
    %c0_i32_1 = arith.constant 0 : i32
    return %c0_i32, %c0_i32_0 : i32, i32
  }
  func.func @transform_6(%arg0: i32, %arg1: i32) -> (i32, i32) {
    %c0_i32 = arith.constant 0 : i32
    %c0_i32_0 = arith.constant 0 : i32
    %c0_i32_1 = arith.constant 0 : i32
    return %c0_i32, %c0_i32_0 : i32, i32
  }
  func.func @transform_7(%arg0: i32, %arg1: i32) -> (i32, i32) {
    %c0_i32 = arith.constant 0 : i32
    %c0_i32_0 = arith.constant 0 : i32
    %c0_i32_1 = arith.constant 0 : i32
    return %c0_i32, %c0_i32_0 : i32, i32
  }
  func.func @transform_8(%arg0: i32, %arg1: i32) -> (i32, i32, i32) {
    %c0_i32 = arith.constant 0 : i32
    %c0_i32_0 = arith.constant 0 : i32
    return %arg0, %c0_i32, %arg1 : i32, i32, i32
  }
}

</mosaic_0001>

<bundles_post_ra>
// kernel: resnest_bottleneck_forward.4
= control target key start
LH: loop header
LB: loop body
LE: loop exit
PB: predicated region body
PF: predicated region fallthrough
CT: control target
= control target key end

     0   :  { %12 = vsyncpa [#allocation3], 0  ;;  %s1335_s0 = inlined_call_operand.hbm [shape: f32[4,64,1024], index: 0, kind: input, shape index: {}]   ;;  %s1336_s1 = inlined_call_operand.vmem [shape: bf16[16,64], index: 1, kind: input, shape index: {}]   ;;  %s1337_s2 = inlined_call_operand.vmem [shape: bf16[4,16,1024], index: 2, kind: output, shape index: {0}]   ;;  %s1338_s3 = inlined_call_operand.vmem [shape: bf16[8,16,1], index: 3, kind: output, shape index: {1}]   ;;  %s1339_s4 = inlined_call_operand.vmem [shape: bf16[8,16,1], index: 4, kind: output, shape index: {2}]   ;;  %s1340_s5 = inlined_call_operand.vmem [shape: f32[4,16,1], index: 5, kind: output, shape index: {3}]   ;;  %s1341_s6 = inlined_call_operand.vmem [shape: f32[4,16,1], index: 6, kind: output, shape index: {4}]  }
   0x1   :  { %14 = vsyncpa [#allocation3 + $0x1], 0  ;;  %s1103_s21 = smov 0   ;;  %s1105_s22 = smov 0  }
   0x2   :  { %s1107_s23 = smov 0   ;;  %s1109_s24 = smov 0  }
   0x3   :  { %s1111_s25 = smov 0   ;;  %s1113_s26 = smov 0  }
   0x4   :  { %s1115_s27 = smov 0   ;;  %s1117_s28 = smov 0  }
   0x5 LB: > { %1346 = sst [smem:[#allocation6_spill]] %s1041_s23  ;;  %s843_s29 = sadd.s32 4294967295, %s1061_s28   ;;  %s1061_s28 = sphi %s1117_s28, %s20_s28   ;;  %s1057_s27 = sphi %s1115_s27, %s1363_s27   ;;  %s1053_s26 = sphi %s1113_s26, %s1357_s26   ;;  %s1049_s25 = sphi %s1111_s25, %s1362_s25   ;;  %s1045_s24 = sphi %s1109_s24, %s1361_s24   ;;  %s1041_s23 = sphi %s1107_s23, %s1355_s23   ;;  %s1037_s22 = sphi %s1105_s22, %s1360_s22   ;;  %s1033_s21 = sphi %s1103_s21, %s1359_s21  }
   0x6   : > { %1347 = sst [smem:[#allocation7_spill]] %s1053_s26  ;;  %s29_s30 = sadd.s32 1, %s1053_s26 }
   0x7   : > { %p30_p0 = scmp.ge.s32.totalorder %s29_s30, 2  ;;  %s32_s7 = sadd.s32 1, %s1057_s27 }
   0x8   : > { %s41_s8 = sadd.s32 1, %s1041_s23  ;;  %p48_p1 = scmp.ne.s32.totalorder %s1041_s23, %s1037_s22 }
   0x9   : > { %s1365_s30 = smov (%p30_p0, %s29_s30), 0  ;;  %s1367_s7 = smov (!%p30_p0, %s32_s7), %s1057_s27 }
   0xa   : > { %1348 = sst [smem:[#allocation8_spill]] %s1365_s30  ;;  %s37_s9 = ssub.s32 %s1053_s26, %s1365_s30 }
   0xb   : > { %p49_p2 = scmp.eq.s32.totalorder %s1061_s28, 0  ;;  %p34_p3 = scmp.ge.s32.totalorder %s1367_s7, 4 }
   0xc   : > { %p54_p4 = scmp.ne.s32.totalorder %s1037_s22, %s1033_s21  ;;  %p55_p6 = scmp.eq.s32.totalorder %s843_s29, 0 }
   0xd   : > { %p1157_p5 = por %p49_p2, %p48_p1  ;;  %s1369_s7 = smov (%p34_p3, %s1367_s7), 0 }
   0xe   : > { %1350 = sst [smem:[#allocation9_spill]] %s1369_s7  ;;  %p1163_p7 = por %p55_p6, %p54_p4 }
   0xf   : > { %p101_p8 = scmp.eq.s32.totalorder %s843_s29, 7  ;;  %s36_s12 = ssub.s32 %s1057_s27, %s1369_s7 }
  0x10   : > { %s38_s13 = sor.u32 %s37_s9, %s36_s12  ;;  %p895_p11 = scmp.lt.s32.totalorder %s1061_s28, 8 }
  0x11   : > { %p1172_p9 = por %p101_p8, %p48_p1  ;;  %p39_p10 = scmp.eq.s32.totalorder %s38_s13, 0 }
  0x12   : > { %s242_s15 = sand.u32 1, %s1041_s23   ;;  %s852_s16 = sshll.u32 %s1053_s26, 2 }
  0x13   : > { %s1180_s17 = scalar_select %p39_p10, %s1041_s23, %s41_s8  }
  0x14   : > { %s851_s18 = sshll.u32 %s242_s15, 8  ;;  %s853_s19 = sshll.u32 %s1057_s27, 6 }
  0x15   : > { %1353 = sst [smem:[#allocation10_spill]] %s1180_s17  ;;  %s251_s20 = sadd.s32 %s853_s19, %s852_s16 }
  0x16   : > { %s246_s21 = scalar_lea.vmem [#allocation2], %s851_s18  ;;  %s854_s7 = sshll.u32 %s251_s20, 3 }
  0x17   : > { %s256_s29 = sshll.u32 %s246_s21, 4  ;;  %s253_s30 = scalar_lea.hbm %s1335_s0, %s854_s7  ;;  %s257_s29 = int_to_ptr.vmem [resolvable:$true] %s256_s29 }
  0x18   : > { %p892_p12 = pnand %p895_p11, %p1157_p5  ;;  %s254_s13 = sshll.u32 %s253_s30, 4  ;;  %s255_s13 = int_to_ptr.hbm [resolvable:$true] %s254_s13 }
  0x19   : > { %s243_s26 = scalar_lea.sflag [#allocation3], %s242_s15  ;;  %s1063_s8 = smov 1024  }
  0x1a   : > { %s1064_s17 = smov 512   ;;  %s1065_s23 = smov 32  }
  0x1b   : > { %894 = dma.hbm_to_vmem [thread:$0]  (!%p892_p12), %s255_s13, 4096, %s257_s29, %s243_s26, %s1063_s8, %s1064_s17, %s1065_s23  }
  0x1c   : > { %p855_p13 = scmp.ge.s32.totalorder %s1061_s28, 1  ;;  %p264_p0 = scmp.lt.s32.totalorder %s1061_s28, 9 }
  0x1e   : > { %p265_p1 = pnand %p855_p13, %p264_p0 }
  0x1f   : > { %s1191_s16 = sand.u32 (!%p265_p1), 1, %s1037_s22  }
  0x20   : > { %268 = sbr.rel (%p265_p1) target bundleno = 460 (0x1cc), region = 28  ;;  %s856_s7 = sshll.u32 (!%p265_p1), %s1191_s16, 8 }
  0x21   : > { %s271_s10 = scalar_lea.sflag (!%p265_p1), [#allocation3], %s1191_s16  ;;  %s1195_s18 = scalar_lea.vmem (!%p265_p1), [#allocation2], %s856_s7 }
  0x25   : > { %1028 = dma.done.wait (%p1163_p7), %s271_s10, 4096  }
  0x26   : > { %1030 = vsyncadd (%p1163_p7), %s271_s10, 4294963200  ;;  %p347_p2 = scmp.lt.s32.totalorder %s1049_s25, 3  ;;  %v397_v0 = vld [vmem:[%s1195_s18 + $0xd0] sm:$0xff]  ;;  %v398_v2 = vld [vmem:[%s1195_s18 + $0xd8] sm:$0xff]  ;;  %vm424_vm0 = vcmask 523264   ;;  %v358_v49 = vlaneseq  ;;  %s858_s9 = sshll.u32 %s1049_s25, 1 }
  0x27   : > { %v401_v1 = vld [vmem:[%s1195_s18 + $0xf0] sm:$0xff]  ;;  %v402_v4 = vld [vmem:[%s1195_s18 + $0xf8] sm:$0xff]  ;;  %v395_v16 = vld [vmem:[%s1195_s18 + $0xc0] sm:$0xff]  ;;  %s330_s12 = sadd.s32 %s1045_s24, %s858_s9  ;;  %s868_s13 = sshll.u32 %s1045_s24, 9  ;;  %vm492_vm3 = vcmask 3072  }
  0x28   : > { %s348_s23 = scalar_select %p347_p2, %s1049_s25, 3  ;;  %v417_v3 = vpack.c.bf16 %v401_v1, %v397_v0  ;;  %v389_v5 = vld [vmem:[%s1195_s18 + $0x90] sm:$0xff]  ;;  %v418_v7 = vpack.c.bf16 %v402_v4, %v398_v2  ;;  %v390_v8 = vld [vmem:[%s1195_s18 + $0x98] sm:$0xff]  ;;  %v399_v17 = vld [vmem:[%s1195_s18 + $0xe0] sm:$0xff]  ;;  %v359_v50 = vand.u32 127, %v358_v49  ;;  %v364_v53 = vstv %s868_s13 }
  0x29   : > { %v393_v6 = vld [vmem:[%s1195_s18 + $0xb0] sm:$0xff]  ;;  %v394_v9 = vld [vmem:[%s1195_s18 + $0xb8] sm:$0xff]  ;;  %v396_v18 = vld [vmem:[%s1195_s18 + $0xc8] sm:$0xff]  ;;  %v415_v21 = vpack.c.bf16 %v399_v17, %v395_v16  ;;  %p331_p3 = scmp.lt.s32.totalorder %s330_s12, 7  ;;  %s857_s8 = sshll.u32 %s1191_s16, 5 }
  0x2a   : > { %s886_s26 = sshll.u32 %s348_s23, 4  ;;  %460 = vmatpush.bf16.msra.mxu2 %v417_v3  ;;  %v413_v10 = vpack.c.bf16 %v393_v6, %v389_v5  ;;  %474 = vmatpush.bf16.msra.mxu3 %v418_v7  ;;  %v414_v11 = vpack.c.bf16 %v394_v9, %v390_v8  ;;  %v381_v12 = vld [vmem:[%s1195_s18 + $0x50] sm:$0xff]  ;;  %v382_v14 = vld [vmem:[%s1195_s18 + $0x58] sm:$0xff]  ;;  %v400_v19 = vld [vmem:[%s1195_s18 + $0xe8] sm:$0xff]  ;;  %v361_v51 = vadd.s32 256, %v359_v50  ;;  %v362_v52 = vadd.s32 384, %v359_v50 }
  0x2b   : > { %s1206_s17 = scalar_lea.vmem %s1340_s5, %s886_s26  ;;  %s1211_s20 = scalar_lea.vmem %s1341_s6, %s886_s26  ;;  %v385_v13 = vld [vmem:[%s1195_s18 + $0x70] sm:$0xff]  ;;  %v386_v15 = vld [vmem:[%s1195_s18 + $0x78] sm:$0xff]  ;;  %v416_v22 = vpack.c.bf16 %v400_v19, %v396_v18  ;;  %v387_v23 = vld [vmem:[%s1195_s18 + $0x80] sm:$0xff]  ;;  %432 = vmatpush.bf16.msra.mxu0 %v415_v21  ;;  %v360_v54 = vadd.s32 128, %v359_v50  ;;  %v365_v57 = vadd.s32 %v364_v53, %v359_v50 }
  0x2c   : > { %v409_v20 = vpack.c.bf16 %v385_v13, %v381_v12  ;;  %v391_v24 = vld [vmem:[%s1195_s18 + $0xa0] sm:$0xff]  ;;  %v388_v25 = vld [vmem:[%s1195_s18 + $0x88] sm:$0xff]  ;;  %v410_v26 = vpack.c.bf16 %v386_v15, %v382_v14  ;;  %v373_v27 = vld [vmem:[%s1195_s18 + $0x10] sm:$0xff]  ;;  %s1371_s12 = smov (!%p331_p3, %s330_s12), 7  ;;  %v367_v55 = vadd.s32 %v364_v53, %v361_v51  ;;  %v368_v56 = vadd.s32 %v364_v53, %v362_v52  ;;  %s1262_s16 = scalar_lea.vmem [#allocation4], %s857_s8 }
  0x2d   : > { %v377_v28 = vld [vmem:[%s1195_s18 + $0x30] sm:$0xff]  ;;  %v392_v29 = vld [vmem:[%s1195_s18 + $0xa8] sm:$0xff]  ;;  %v374_v30 = vld [vmem:[%s1195_s18 + $0x18] sm:$0xff]  ;;  %446 = vmatpush.bf16.msra.mxu1 %v416_v22  ;;  %v411_v32 = vpack.c.bf16 %v391_v24, %v387_v23  ;;  %v366_v58 = vadd.s32 %v364_v53, %v360_v54  ;;  %s884_s7 = sshll.u32 %s1371_s12, 3  ;;  %vm507_vm4 = vcmp.lt.s32.totalorder %v365_v57, 1024  ;;  %s1066_s26 = smov 1  }
  0x2e   : > { %461 = vmatpush.bf16.msra.mxu2 %v413_v10  ;;  %475 = vmatpush.bf16.msra.mxu3 %v414_v11  ;;  %v378_v31 = vld [vmem:[%s1195_s18 + $0x38] sm:$0xff]  ;;  %v412_v33 = vpack.c.bf16 %v392_v29, %v388_v25  ;;  %v379_v34 = vld [vmem:[%s1195_s18 + $0x40] sm:$0xff]  ;;  %v380_v36 = vld [vmem:[%s1195_s18 + $0x48] sm:$0xff]  ;;  %v405_v38 = vpack.c.bf16 %v377_v28, %v373_v27  ;;  %vm509_vm1 = vcmp.lt.s32.totalorder %v367_v55, 1024  ;;  %vm510_vm2 = vcmp.lt.s32.totalorder %v368_v56, 1024  ;;  %s1260_s23 = scalar_lea.vmem %s1338_s3, %s884_s7  ;;  %s344_s11 = scalar_lea.vmem %s1339_s4, %s884_s7 }
  0x2f   : > { %v383_v35 = vld [vmem:[%s1195_s18 + $0x60] sm:$0xff]  ;;  %v384_v37 = vld [vmem:[%s1195_s18 + $0x68] sm:$0xff]  ;;  %v406_v39 = vpack.c.bf16 %v378_v31, %v374_v30  ;;  %433 = vmatpush.bf16.msra.mxu0 %v411_v32  ;;  %vm508_vm5 = vcmp.lt.s32.totalorder %v366_v58, 1024  ;;  %p877_p4 = scmp.ne.s32.totalorder %s1045_s24, 0 }
  0x30   : > { %v888_v40 = vld [vmem:[%s1336_s1] sm:$0xff]  ;;  %v407_v41 = vpack.c.bf16 %v383_v35, %v379_v34  ;;  %v408_v42 = vpack.c.bf16 %v384_v37, %v380_v36  ;;  %v372_v45 = vld [vmem:[%s1195_s18 + $0x8] sm:$0xff] }
  0x31   : > { %447 = vmatpush.bf16.msra.mxu1 %v412_v33  ;;  %v371_v43 = vld [vmem:[%s1195_s18] sm:$0xff]  ;;  %v376_v46 = vld [vmem:[%s1195_s18 + $0x28] sm:$0xff] }
  0x32   : > { %462 = vmatpush.bf16.msra.mxu2 %v409_v20  ;;  %476 = vmatpush.bf16.msra.mxu3 %v410_v26  ;;  %v375_v44 = vld [vmem:[%s1195_s18 + $0x20] sm:$0xff]  ;;  %v404_v48 = vpack.c.bf16 %v376_v46, %v372_v45 }
  0x33   : > { %434 = vmatpush.bf16.msra.mxu0 %v407_v41  ;;  %v403_v47 = vpack.c.bf16 %v375_v44, %v371_v43 }
  0x35   : > { %448 = vmatpush.bf16.msra.mxu1 %v408_v42 }
  0x36   : > { %463 = vmatpush.bf16.msra.mxu2 %v405_v38  ;;  %477 = vmatpush.bf16.msra.mxu3 %v406_v39 }
  0x37   : > { %435 = vmatpush.bf16.msra.mxu0 %v403_v47 }
  0x39   : > { %875 = vmatmul.msk.bf16.vlgmr.msra.gmra.mxu2 %vm424_vm0, %v888_v40  ;;  %876 = vmatmul.msk.bf16.vlgmr.msra.gmra.mxu3 %vm424_vm0, %v888_v40 }
  0x3a   : > { %449 = vmatpush.bf16.msra.mxu1 %v404_v48  ;;  %873 = vmatmul.msk.bf16.vlgmr.msra.gmra.mxu0 %vm424_vm0, %v888_v40 }
  0x3d   : > { %874 = vmatmul.msk.bf16.vlgmr.msra.gmra.mxu1 %vm424_vm0, %v888_v40 }
  0xb7   : > { %v437_v60 = vpop.f32.mrf.mxu0 }
  0xba   : > { %v451_v62 = vpop.f32.mrf.mxu1 }
  0xbb   : > { %v484_v0 = vpack.c.bf16 %v451_v62, %v437_v60 }
  0xbc   : > { %v465_v59 = vpop.f32.mrf.mxu2  ;;  %v479_v61 = vpop.f32.mrf.mxu3 }
  0xbd   : > { %v485_v63 = vpack.c.bf16 %v479_v61, %v465_v59  ;;  %v511_v3 = vunpack.c.l.bf16 %v484_v0  ;;  %v512_v4 = vunpack.c.h.bf16 %v484_v0  ;;  %488 = vst [vmem:[%s1262_s16] sm:$0xff] %v484_v0 }
  0xbe   : > { %493 = vst.msk [vmem:[%s1260_s23] sm:$0xf] %vm492_vm3, %v484_v0 }
  0xbf   : > { %489 = vst [vmem:[%s1262_s16 + $0x8] sm:$0xff] %v485_v63  ;;  %v513_v1 = vunpack.c.l.bf16 %v485_v63  ;;  %v514_v2 = vunpack.c.h.bf16 %v485_v63  ;;  %497 = vrot.lane.b32.xlu0 %v485_v63, %s1066_s26  ;;  %v527_v7 = vsel %vm507_vm4, %v511_v3, 0.0  ;;  %v528_v8 = vsel %vm508_vm5, %v512_v4, 0.0  ;;  %v439_v10 = vpop.f32.mrf.mxu0 }
  0xc1   : > { %v529_v5 = vsel %vm509_vm1, %v513_v1, 0.0  ;;  %v530_v6 = vsel %vm510_vm2, %v514_v2, 0.0 }
  0xc2   : > { %v453_v12 = vpop.f32.mrf.mxu1 }
  0xc3   : > { %v486_v14 = vpack.c.bf16 %v453_v12, %v439_v10 }
  0xc4   : > { %v467_v9 = vpop.f32.mrf.mxu2  ;;  %v481_v11 = vpop.f32.mrf.mxu3 }
  0xc5   : > { %v487_v13 = vpack.c.bf16 %v481_v11, %v467_v9  ;;  %v515_v17 = vunpack.c.l.bf16 %v486_v14  ;;  %v516_v18 = vunpack.c.h.bf16 %v486_v14  ;;  %490 = vst [vmem:[%s1262_s16 + $0x10] sm:$0xff] %v486_v14 }
  0xc6   : > { %494 = vst.msk [vmem:[%s1260_s23 + $0x4] sm:$0xf] %vm492_vm3, %v486_v14 }
  0xc7   : > { %491 = vst [vmem:[%s1262_s16 + $0x18] sm:$0xff] %v487_v13  ;;  %v517_v15 = vunpack.c.l.bf16 %v487_v13  ;;  %v518_v16 = vunpack.c.h.bf16 %v487_v13  ;;  %499 = vrot.lane.b32.xlu0 %v487_v13, %s1066_s26  ;;  %v531_v21 = vsel %vm507_vm4, %v515_v17, 0.0  ;;  %v532_v22 = vsel %vm508_vm5, %v516_v18, 0.0 }
  0xc9   : > { %v533_v19 = vsel %vm509_vm1, %v517_v15, 0.0  ;;  %v534_v20 = vsel %vm510_vm2, %v518_v16, 0.0 }
 0x131   : > { %v498_v23 = vpop.permute.xlu0 %497 }
 0x132   : > { %v501_v24 = vrot.slane %v498_v23, 4 }
 0x134   : > { %505 = vst.msk [vmem:[%s344_s11] sm:$0xf] %vm492_vm3, %v501_v24 }
 0x138   : > { %538 = sbr.rel (%p877_p4) target bundleno = 322 (0x142), region = 36 }
 0x139   : > { %v500_v25 = vpop.permute.xlu0 %499 }
 0x13a   : > { %v502_v26 = vrot.slane %v500_v25, 4 }
 0x13c   : > { %506 = vst.msk [vmem:[%s344_s11 + $0x4] sm:$0xf] %vm492_vm3, %v502_v26 }
 0x13d   : > { %vm539_vm6 = vcmask 7168   ;;  %v1067_v27 = vmov 0.0  }
 0x13e   : > { %540 = vst.msk [vmem:[%s1206_s17] sm:$0xff] %vm539_vm6, %v1067_v27 }
 0x13f   : > { %541 = vst.msk [vmem:[%s1206_s17 + $0x8] sm:$0xff] %vm539_vm6, %v1067_v27 }
 0x140   : > { %542 = vst.msk [vmem:[%s1211_s20] sm:$0xff] %vm539_vm6, %v1067_v27 }
 0x141   : > { %543 = vst.msk [vmem:[%s1211_s20 + $0x8] sm:$0xff] %vm539_vm6, %v1067_v27 }
 0x142 PF: > { %v563_v28 = vmul.f32 %v527_v7, %v527_v7  ;;  %v564_v29 = vmul.f32 %v528_v8, %v528_v8  ;;  %v565_v30 = vmul.f32 %v529_v5, %v529_v5  ;;  %v546_v31 = vadd.f32 %v528_v8, %v527_v7  ;;  %s879_s19 = sshll.u32 (%p1172_p9), %s1045_s24, 2  ;;  %s880_s21 = sshll.u32 (%p1172_p9), %s1049_s25, 4  ;;  %v633_v60 = vld [vmem:[%s1262_s16] sm:$0xff] (%p1172_p9)  ;;  %v635_v61 = vld [vmem:[%s1262_s16 + $0x8] sm:$0xff] (%p1172_p9)  ;;  %v637_v62 = vld [vmem:[%s1262_s16 + $0x10] sm:$0xff] (%p1172_p9) }
 0x143   : > { %v567_v32 = vmul.f32 %v531_v21, %v531_v21  ;;  %v568_v33 = vmul.f32 %v532_v22, %v532_v22  ;;  %v566_v34 = vmul.f32 %v530_v6, %v530_v6  ;;  %v551_v37 = vadd.f32 %v532_v22, %v531_v21  ;;  %s618_s29 = sadd.s32 (%p1172_p9), %s880_s21, %s879_s19  ;;  %v639_v63 = vld [vmem:[%s1262_s16 + $0x18] sm:$0xff] (%p1172_p9) }
 0x144   : > { %v571_v35 = vadd.f32 %v564_v29, %v563_v28  ;;  %v547_v36 = vadd.f32 %v546_v31, %v529_v5  ;;  %v569_v39 = vmul.f32 %v533_v19, %v533_v19  ;;  %v570_v44 = vmul.f32 %v534_v20, %v534_v20  ;;  %s881_s9 = sshll.u32 (%p1172_p9), %s618_s29, 2 }
 0x145   : > { %v576_v40 = vadd.f32 %v568_v33, %v567_v32  ;;  %v552_v43 = vadd.f32 %v551_v37, %v533_v19  ;;  %v544_v48 = vld [vmem:[%s1206_s17] sm:$0xff]  ;;  %vm558_vm7 = vcmask 7168  }
 0x146   : > { %v572_v38 = vadd.f32 %v571_v35, %v565_v30  ;;  %v548_v41 = vadd.f32 %v547_v36, %v530_v6  ;;  %v545_v54 = vld [vmem:[%s1206_s17 + $0x8] sm:$0xff] }
 0x147   : > { %v577_v45 = vadd.f32 %v576_v40, %v569_v39  ;;  %v553_v46 = vadd.f32 %v552_v43, %v534_v20  ;;  %v561_v49 = vld [vmem:[%s1211_s20] sm:$0xff] }
 0x148   : > { %v573_v42 = vadd.f32 %v572_v38, %v566_v34  ;;  %549 = vadd.xlane.f32.xlu0 %v548_v41  ;;  %v562_v55 = vld [vmem:[%s1211_s20 + $0x8] sm:$0xff] }
 0x149   : > { %v578_v47 = vadd.f32 %v577_v45, %v570_v44 }
 0x14a   : > { %574 = vadd.xlane.f32.xlu1 %v573_v42 }
 0x150   : > { %554 = vadd.xlane.f32.xlu0 %v553_v46 }
 0x152   : > { %579 = vadd.xlane.f32.xlu1 %v578_v47 }
 0x1bb   : > { %v550_v50 = vpop.xlane.xlu0 %549 }
 0x1bc   : > { %v556_v52 = vadd.f32 %v550_v50, %v544_v48 }
 0x1bd   : > { %v575_v51 = vpop.xlane.xlu1 %574 }
 0x1be   : > { %v581_v53 = vadd.f32 %v575_v51, %v561_v49  ;;  %559 = vst.msk [vmem:[%s1206_s17] sm:$0xff] %vm558_vm7, %v556_v52 }
 0x1c0   : > { %583 = vst.msk [vmem:[%s1211_s20] sm:$0xff] %vm558_vm7, %v581_v53 }
 0x1c3   : > { %v555_v56 = vpop.xlane.xlu0 %554 }
 0x1c4   : > { %v557_v58 = vadd.f32 %v555_v56, %v545_v54  ;;  %615 = sbr.rel (!%p1172_p9) target bundleno = 460 (0x1cc), region = 40 }
 0x1c5   : > { %v580_v57 = vpop.xlane.xlu1 %579 }
 0x1c6   : > { %v582_v59 = vadd.f32 %v580_v57, %v562_v55  ;;  %560 = vst.msk [vmem:[%s1206_s17 + $0x8] sm:$0xff] %vm558_vm7, %v557_v58  ;;  %s620_s17 = scalar_lea.vmem (%p1172_p9), %s1337_s2, %s881_s9 }
 0x1c7   : > { %634 = vst [vmem:[%s620_s17] sm:$0xff] (%p1172_p9), %v633_v60 }
 0x1c8   : > { %584 = vst.msk [vmem:[%s1211_s20 + $0x8] sm:$0xff] %vm558_vm7, %v582_v59 }
 0x1c9   : > { %636 = vst [vmem:[%s620_s17 + $0x8] sm:$0xff] %v635_v61 }
 0x1ca   : > { %638 = vst [vmem:[%s620_s17 + $0x20] sm:$0xff] %v637_v62 }
 0x1cb   : > { %640 = vst [vmem:[%s620_s17 + $0x28] sm:$0xff] %v639_v63 }
 0x1cc PF: > { %s20_s28 = sadd.s32 1, %s1061_s28   ;;  %s1354_s24 = sld [smem:[#allocation6_spill]] }
 0x1cd   : > { %p17_p5 = scmp.ge.s32.totalorder %s20_s28, 10   ;;  %s1355_s23 = sld [smem:[#allocation10_spill]] }
 0x1ce   : > { %s1356_s25 = sld [smem:[#allocation7_spill]]  ;;  %s1359_s21 = smov %s1037_s22 }
 0x1cf   : > { %s1357_s26 = sld [smem:[#allocation8_spill]] }
 0x1d0   : > { %s1358_s14 = sld [smem:[#allocation9_spill]] }
 0x1d2   : > { %s1360_s22 = smov %s1354_s24  ;;  %19 = sbr.rel (!%p17_p5) target bundleno = 5 (0x5), region = 143 }
 0x1d4   : > { %s1361_s24 = smov %s1356_s25  ;;  %s1362_s25 = smov %s1057_s27 }
 0x1d6   : > { %s1363_s27 = smov %s1358_s14 }
 0x1d7   :  { %708 = vsyncpa [#allocation3], 1 }
 0x1d8   :  { %710 = vsyncpa [#allocation3 + $0x1], 1 }

// kernel: resnest_bottleneck_forward.6
= control target key start
LH: loop header
LB: loop body
LE: loop exit
PB: predicated region body
PF: predicated region fallthrough
CT: control target
= control target key end

     0   :  { %s735_s15 = smov 0   ;;  %s737_s16 = smov 0   ;;  %s899_s0 = inlined_call_operand.vmem [shape: bf16[4,16,1024], index: 0, kind: input, shape index: {}]   ;;  %s900_s1 = inlined_call_operand.vmem [shape: f32[16,1], index: 1, kind: input, shape index: {}]   ;;  %s901_s2 = inlined_call_operand.vmem [shape: f32[16,1], index: 2, kind: input, shape index: {}]   ;;  %s902_s3 = inlined_call_operand.vmem [shape: f32[4,16,1], index: 3, kind: output, shape index: {0}]   ;;  %s903_s4 = inlined_call_operand.vmem [shape: f32[4,16,16], index: 4, kind: output, shape index: {1}]  }
   0x1   :  { %s739_s17 = smov 0   ;;  %s741_s18 = smov 0  }
   0x2   :  { %s743_s19 = smov 0   ;;  %s745_s20 = smov 0  }
   0x3   :  { %s747_s21 = smov 0  }
   0x4 LB: > { %s24_s22 = sadd.s32 1, %s698_s19  ;;  %s27_s23 = sadd.s32 1, %s702_s20  ;;  %s706_s21 = sphi %s747_s21, %s15_s21   ;;  %s702_s20 = sphi %s745_s20, %s911_s20   ;;  %s698_s19 = sphi %s743_s19, %s910_s19   ;;  %s694_s18 = sphi %s741_s18, %s909_s18   ;;  %s690_s17 = sphi %s739_s17, %s908_s17   ;;  %s686_s16 = sphi %s737_s16, %s907_s16   ;;  %s682_s15 = sphi %s735_s15, %s906_s15  }
   0x5   : > { %p25_p0 = scmp.ge.s32.totalorder %s24_s22, 2  ;;  %p43_p1 = scmp.ne.s32.totalorder %s686_s16, %s682_s15 }
   0x6   : > { %p44_p2 = scmp.eq.s32.totalorder %s706_s21, 0  ;;  %s36_s27 = sadd.s32 1, %s686_s16 }
   0x7   : > { %s913_s22 = smov (%p25_p0, %s24_s22), 0  ;;  %s915_s23 = smov (!%p25_p0, %s27_s23), %s702_s20 }
   0x8   : > { %p45_p3 = por %p44_p2, %p43_p1  ;;  %p29_p4 = scmp.ge.s32.totalorder %s915_s23, 4 }
   0x9   : > { %s32_s24 = ssub.s32 %s698_s19, %s913_s22  ;;  %p551_p6 = scmp.ge.s32.totalorder %s706_s21, 8 }
   0xa   : > { %s917_s23 = smov (%p29_p4, %s915_s23), 0 }
   0xb   : > { %s31_s25 = ssub.s32 %s702_s20, %s917_s23  ;;  %169 = sbr.rel (%p551_p6) target bundleno = 27 (0x1b), region = 24 }
   0xc   : > { %s33_s26 = sor.u32 %s32_s24, %s31_s25 }
   0xd   : > { %p34_p5 = scmp.eq.s32.totalorder %s33_s26, 0 }
   0xf   : > { %s786_s28 = scalar_select %p34_p5, %s686_s16, %s36_s27  }
  0x10   : > { %172 = sbr.rel (!%p45_p3) target bundleno = 27 (0x1b), region = 28  ;;  %s174_s29 = sand.u32 (%p45_p3), 1, %s686_s16  }
  0x11   : > { %s553_s30 = sshll.u32 (%p45_p3), %s698_s19, 2  ;;  %s552_s5 = sshll.u32 (%p45_p3), %s174_s29, 5 }
  0x12   : > { %s554_s6 = sshll.u32 (%p45_p3), %s702_s20, 4  ;;  %s176_s12 = scalar_lea.vmem (%p45_p3), [#allocation2], %s552_s5 }
  0x13   : > { %s179_s7 = sadd.s32 (%p45_p3), %s554_s6, %s553_s30 }
  0x14   : > { %s555_s8 = sshll.u32 (%p45_p3), %s179_s7, 2 }
  0x15   : > { %s181_s11 = scalar_lea.vmem %s899_s0, %s555_s8 }
  0x16   : > { %v194_v0 = vld [vmem:[%s181_s11] sm:$0xff]  ;;  %v196_v1 = vld [vmem:[%s181_s11 + $0x8] sm:$0xff] }
  0x17   : > { %v198_v2 = vld [vmem:[%s181_s11 + $0x20] sm:$0xff]  ;;  %195 = vst [vmem:[%s176_s12] sm:$0xff] %v194_v0  ;;  %v200_v3 = vld [vmem:[%s181_s11 + $0x28] sm:$0xff] }
  0x18   : > { %197 = vst [vmem:[%s176_s12 + $0x8] sm:$0xff] %v196_v1 }
  0x19   : > { %199 = vst [vmem:[%s176_s12 + $0x10] sm:$0xff] %v198_v2 }
  0x1a   : > { %201 = vst [vmem:[%s176_s12 + $0x18] sm:$0xff] %v200_v3 }
  0x1b PF: > { %p556_p7 = scmp.ge.s32.totalorder %s706_s21, 1  ;;  %p206_p8 = scmp.lt.s32.totalorder %s706_s21, 9 }
  0x1d   : > { %p207_p9 = pnand %p556_p7, %p206_p8 }
  0x1e   : > { %p244_p10 = scmp.lt.s32.totalorder (!%p207_p9), %s694_s18, 3  ;;  %s562_s13 = sshll.u32 (!%p207_p9), %s690_s17, 9 }
  0x1f   : > { %210 = sbr.rel (%p207_p9) target bundleno = 330 (0x14a), region = 51  ;;  %p563_p11 = scmp.ne.s32.totalorder (!%p207_p9), %s690_s17, 0 }
  0x24   : > { %v298_v4 = vld [vmem:[%s901_s2] sm:$0xff]  ;;  %v708_v6 = vmov 0   ;;  %s919_s18 = smov (!%p244_p10, %s694_s18), 3  ;;  %v299_v7 = vld [vmem:[%s901_s2 + $0x8] sm:$0xff]  ;;  %v255_v9 = vlaneseq  ;;  %v261_v16 = vstv %s562_s13 }
  0x25   : > { %v278_v5 = vld [vmem:[%s900_s1] sm:$0xff]  ;;  %651 = vset.pattern.permute.xlu1 %v708_v6  ;;  %650 = vset.pattern.permute.xlu0 %v708_v6  ;;  %s590_s26 = sshll.u32 %s919_s18, 4  ;;  %v279_v8 = vld [vmem:[%s900_s1 + $0x8] sm:$0xff]  ;;  %s213_s18 = sand.u32 1, %s682_s15  }
  0x26   : > { %302 = vperm.xlu1 %651, %v298_v4   ;;  %282 = vperm.xlu0 %650, %v278_v5   ;;  %s808_s30 = scalar_lea.vmem %s902_s3, %s590_s26  ;;  %s813_s7 = scalar_lea.vmem %s903_s4, %s590_s26  ;;  %v256_v10 = vand.u32 127, %v255_v9 }
  0x27   : > { %s557_s12 = sshll.u32 %s213_s18, 5 }
  0x28   : > { %s215_s14 = scalar_lea.vmem [#allocation2], %s557_s12  ;;  %v257_v13 = vadd.s32 128, %v256_v10  ;;  %v258_v14 = vadd.s32 256, %v256_v10  ;;  %v259_v15 = vadd.s32 384, %v256_v10  ;;  %v262_v21 = vadd.s32 %v261_v16, %v256_v10 }
  0x29   : > { %v266_v11 = vld [vmem:[%s215_s14] sm:$0xff]  ;;  %v267_v12 = vld [vmem:[%s215_s14 + $0x8] sm:$0xff]  ;;  %v268_v31 = vld [vmem:[%s215_s14 + $0x10] sm:$0xff] }
  0x2a   : > { %v270_v17 = vunpack.c.l.bf16 %v266_v11  ;;  %v271_v18 = vunpack.c.h.bf16 %v266_v11  ;;  %v272_v19 = vunpack.c.l.bf16 %v267_v12  ;;  %v273_v20 = vunpack.c.h.bf16 %v267_v12  ;;  %v269_v32 = vld [vmem:[%s215_s14 + $0x18] sm:$0xff] }
  0x2b   : > { %v823_v22 = vadd.s32 %v261_v16, %v257_v13  ;;  %v825_v23 = vadd.s32 %v261_v16, %v258_v14  ;;  %v827_v24 = vadd.s32 %v261_v16, %v259_v15  ;;  %vm326_vm0 = vcmp.lt.s32.totalorder %v262_v21, 1024 }
  0x2c   : > { %v274_v37 = vunpack.c.l.bf16 %v268_v31  ;;  %v275_v38 = vunpack.c.h.bf16 %v268_v31  ;;  %v276_v39 = vunpack.c.l.bf16 %v269_v32  ;;  %v277_v40 = vunpack.c.h.bf16 %v269_v32 }
  0x2d   : > { %vm327_vm1 = vcmp.lt.s32.totalorder %v823_v22, 1024  ;;  %vm328_vm2 = vcmp.lt.s32.totalorder %v825_v23, 1024  ;;  %vm329_vm3 = vcmp.lt.s32.totalorder %v827_v24, 1024 }
  0x2e   : > { %307 = vperm.xlu1 %651, %v299_v7   ;;  %287 = vperm.xlu0 %650, %v279_v8  }
  0x98   : > { %v303_v25 = vpop.permute.xlu1 %302  ;;  %v283_v26 = vpop.permute.xlu0 %282 }
  0x99   : > { %v290_v27 = vmul.f32 %v283_v26, %v270_v17  ;;  %v291_v28 = vmul.f32 %v283_v26, %v271_v18  ;;  %v292_v29 = vmul.f32 %v283_v26, %v272_v19  ;;  %v293_v30 = vmul.f32 %v283_v26, %v273_v20 }
  0x9b   : > { %v310_v33 = vadd.f32 %v303_v25, %v290_v27  ;;  %v311_v34 = vadd.f32 %v303_v25, %v291_v28  ;;  %v312_v35 = vadd.f32 %v303_v25, %v292_v29  ;;  %v313_v36 = vadd.f32 %v303_v25, %v293_v30 }
  0x9d   : > { %v318_v41 = vmax.f32 %v310_v33, 0.0  ;;  %v319_v42 = vmax.f32 %v311_v34, 0.0  ;;  %v320_v43 = vmax.f32 %v312_v35, 0.0  ;;  %v321_v44 = vmax.f32 %v313_v36, 0.0 }
  0x9f   : > { %v338_v45 = vsel %vm326_vm0, %v318_v41, 0.0  ;;  %v339_v46 = vsel %vm327_vm1, %v319_v42, 0.0  ;;  %v340_v47 = vsel %vm328_vm2, %v320_v43, 0.0  ;;  %v341_v48 = vsel %vm329_vm3, %v321_v44, 0.0 }
  0xa0   : > { %v288_v49 = vpop.permute.xlu0 %287  ;;  %v308_v54 = vpop.permute.xlu1 %307 }
  0xa1   : > { %v294_v50 = vmul.f32 %v288_v49, %v274_v37  ;;  %v295_v51 = vmul.f32 %v288_v49, %v275_v38  ;;  %v296_v52 = vmul.f32 %v288_v49, %v276_v39  ;;  %v297_v53 = vmul.f32 %v288_v49, %v277_v40 }
  0xa3   : > { %v314_v55 = vadd.f32 %v308_v54, %v294_v50  ;;  %v315_v56 = vadd.f32 %v308_v54, %v295_v51  ;;  %v316_v57 = vadd.f32 %v308_v54, %v296_v52  ;;  %v317_v58 = vadd.f32 %v308_v54, %v297_v53  ;;  %349 = sbr.rel (%p563_p11) target bundleno = 173 (0xad), region = 59 }
  0xa5   : > { %v322_v59 = vmax.f32 %v314_v55, 0.0  ;;  %v323_v60 = vmax.f32 %v315_v56, 0.0  ;;  %v324_v61 = vmax.f32 %v316_v57, 0.0  ;;  %v325_v62 = vmax.f32 %v317_v58, 0.0 }
  0xa7   : > { %v342_v63 = vsel %vm326_vm0, %v322_v59, 0.0  ;;  %v343_v0 = vsel %vm327_vm1, %v323_v60, 0.0  ;;  %v344_v1 = vsel %vm328_vm2, %v324_v61, 0.0  ;;  %v345_v2 = vsel %vm329_vm3, %v325_v62, 0.0 }
  0xa8   : > { %vm350_vm4 = vcmask 7168   ;;  %vm353_vm5 = vcmask 130048   ;;  %v709_v3 = vmov 0.0  }
  0xa9   : > { %351 = vst.msk [vmem:[%s808_s30] sm:$0xff] %vm350_vm4, %v709_v3 }
  0xaa   : > { %352 = vst.msk [vmem:[%s808_s30 + $0x8] sm:$0xff] %vm350_vm4, %v709_v3 }
  0xab   : > { %354 = vst.msk [vmem:[%s813_s7] sm:$0xff] %vm353_vm5, %v709_v3 }
  0xac   : > { %355 = vst.msk [vmem:[%s813_s7 + $0x8] sm:$0xff] %vm353_vm5, %v709_v3 }
  0xad PF: > { %vm853_vm6 = vmpackc.low %vm326_vm0, %vm326_vm0  ;;  %v565_v5 = vpack.c.bf16 %v322_v59, %v318_v41  ;;  %v571_v6 = vpack.c.bf16 %v323_v60, %v319_v42  ;;  %v577_v7 = vpack.c.bf16 %v324_v61, %v320_v43  ;;  %v583_v8 = vpack.c.bf16 %v325_v62, %v321_v44 }
  0xae   : > { %vm570_vm7 = vmpackc.low %vm327_vm1, %vm327_vm1  ;;  %v358_v9 = vadd.f32 %v339_v46, %v338_v45  ;;  %v363_v11 = vadd.f32 %v343_v0, %v342_v63  ;;  %vm370_vm10 = vcmask 7168   ;;  %vm437_vm11 = vcmask 130048  }
  0xaf   : > { %566 = vmatpush.bf16.xpose.msk.msra.mxu0 %vm853_vm6, %v565_v5  ;;  %572 = vmatpush.bf16.xpose.msk.msra.mxu1 %vm570_vm7, %v571_v6  ;;  %vm576_vm8 = vmpackc.low %vm328_vm2, %vm328_vm2 }
  0xb0   : > { %578 = vmatpush.bf16.xpose.msk.msra.mxu2 %vm576_vm8, %v577_v7  ;;  %vm582_vm9 = vmpackc.low %vm329_vm3, %vm329_vm3  ;;  %v359_v10 = vadd.f32 %v358_v9, %v340_v47  ;;  %v364_v13 = vadd.f32 %v363_v11, %v344_v1  ;;  %v356_v15 = vld [vmem:[%s808_s30] sm:$0xff] }
  0xb1   : > { %584 = vmatpush.bf16.xpose.msk.msra.mxu3 %vm582_vm9, %v583_v8  ;;  %v357_v18 = vld [vmem:[%s808_s30 + $0x8] sm:$0xff] }
  0xb2   : > { %v360_v12 = vadd.f32 %v359_v10, %v341_v48  ;;  %v365_v14 = vadd.f32 %v364_v13, %v345_v2  ;;  %v377_v27 = vld [vmem:[%s813_s7] sm:$0xff] }
  0xb3   : > { %v378_v35 = vld [vmem:[%s813_s7 + $0x8] sm:$0xff] }
  0xb4   : > { %361 = vadd.xlane.f32.xlu0 %v360_v12 }
  0xb6   : > { %569 = vmatmul.msk.bf16.vlgmr.msra.gmra.mxu0 %vm853_vm6, %v565_v5  ;;  %575 = vmatmul.msk.bf16.vlgmr.msra.gmra.mxu1 %vm570_vm7, %v571_v6 }
  0xb7   : > { %581 = vmatmul.msk.bf16.vlgmr.msra.gmra.mxu2 %vm576_vm8, %v577_v7 }
  0xb8   : > { %587 = vmatmul.msk.bf16.vlgmr.msra.gmra.mxu3 %vm582_vm9, %v583_v8 }
  0xbc   : > { %366 = vadd.xlane.f32.xlu0 %v365_v14 }
 0x127   : > { %v362_v16 = vpop.xlane.xlu0 %361 }
 0x128   : > { %v368_v17 = vadd.f32 %v362_v16, %v356_v15 }
 0x12a   : > { %371 = vst.msk [vmem:[%s808_s30] sm:$0xff] %vm370_vm10, %v368_v17 }
 0x12f   : > { %v367_v19 = vpop.xlane.xlu0 %366 }
 0x130   : > { %v369_v20 = vadd.f32 %v367_v19, %v357_v18 }
 0x132   : > { %372 = vst.msk [vmem:[%s808_s30 + $0x8] sm:$0xff] %vm370_vm10, %v369_v20 }
 0x133   : > { %v388_v21 = vpop.f32.mrf.mxu0  ;;  %v402_v22 = vpop.f32.mrf.mxu1 }
 0x134   : > { %v403_v23 = vadd.f32 %v402_v22, %v388_v21 }
 0x13a   : > { %v416_v24 = vpop.f32.mrf.mxu2 }
 0x13b   : > { %v417_v25 = vadd.f32 %v416_v24, %v403_v23  ;;  %v430_v26 = vpop.f32.mrf.mxu3  ;;  %v390_v29 = vpop.f32.mrf.mxu0 }
 0x13c   : > { %v404_v30 = vpop.f32.mrf.mxu1 }
 0x13d   : > { %v431_v28 = vadd.f32 %v430_v26, %v417_v25  ;;  %v405_v32 = vadd.f32 %v404_v30, %v390_v29 }
 0x13f   : > { %v435_v31 = vadd.f32 %v431_v28, %v377_v27 }
 0x141   : > { %438 = vst.msk [vmem:[%s813_s7] sm:$0xff] %vm437_vm11, %v435_v31 }
 0x142   : > { %v418_v33 = vpop.f32.mrf.mxu2 }
 0x143   : > { %v419_v34 = vadd.f32 %v418_v33, %v405_v32  ;;  %v432_v36 = vpop.f32.mrf.mxu3 }
 0x145   : > { %v433_v37 = vadd.f32 %v432_v36, %v419_v34 }
 0x147   : > { %v436_v38 = vadd.f32 %v433_v37, %v378_v35 }
 0x149   : > { %439 = vst.msk [vmem:[%s813_s7 + $0x8] sm:$0xff] %vm437_vm11, %v436_v38 }
 0x14a PF: > { %s15_s21 = sadd.s32 1, %s706_s21   ;;  %s906_s15 = smov %s686_s16 }
 0x14b   : > { %p12_p12 = scmp.ge.s32.totalorder %s15_s21, 10   ;;  %s907_s16 = smov %s786_s28 }
 0x14c   : > { %s908_s17 = smov %s698_s19  ;;  %s909_s18 = smov %s702_s20 }
 0x14d   : > { %s910_s19 = smov %s913_s22  ;;  %s911_s20 = smov %s917_s23 }
 0x14e   :  { %14 = sbr.rel (!%p12_p12) target bundleno = 4 (0x4), region = 106 }

// kernel: resnest_bottleneck_forward.5
= control target key start
LH: loop header
LB: loop body
LE: loop exit
PB: predicated region body
PF: predicated region fallthrough
CT: control target
= control target key end

     0   :  { %s1856_s0 = inlined_call_operand.vmem [shape: bf16[4,16,1024], index: 0, kind: input, shape index: {}]   ;;  %s1857_s1 = inlined_call_operand.vmem [shape: bf16[8,16,1], index: 1, kind: input, shape index: {}]   ;;  %s1858_s2 = inlined_call_operand.vmem [shape: bf16[8,16,1], index: 2, kind: input, shape index: {}]   ;;  %s1859_s3 = inlined_call_operand.vmem [shape: f32[16,1], index: 3, kind: input, shape index: {}]   ;;  %s1860_s4 = inlined_call_operand.vmem [shape: f32[16,1], index: 4, kind: input, shape index: {}]   ;;  %s1861_s5 = inlined_call_operand.vmem [shape: bf16[3,16,16], index: 5, kind: input, shape index: {}]   ;;  %s1862_s6 = inlined_call_operand.vmem [shape: bf16[4,16,1024], index: 6, kind: output, shape index: {0}]   ;;  %s1863_s7 = inlined_call_operand.vmem [shape: f32[4,16,1], index: 7, kind: output, shape index: {1}]   ;;  %s1864_s8 = inlined_call_operand.vmem [shape: f32[4,16,1], index: 8, kind: output, shape index: {2}]  }
   0x1   :  { %1866 = sst [smem:[#allocation5_spill]] %s1856_s0 }
   0x2   :  { %s1566_s27 = smov 0   ;;  %s1568_s28 = smov 0  }
   0x3   :  { %s1570_s29 = smov 0   ;;  %s1572_s30 = smov 0  }
   0x4   :  { %s1574_s9 = smov 0   ;;  %s1576_s10 = smov 0  }
   0x5   :  { %s1578_s11 = smov 0  }
   0x6 LB: > { %s28_s12 = sadd.s32 1, %s1507_s9  ;;  %s31_s13 = sadd.s32 1, %s1511_s10  ;;  %s1515_s11 = sphi %s1578_s11, %s19_s11   ;;  %s1511_s10 = sphi %s1576_s10, %s1882_s10   ;;  %s1507_s9 = sphi %s1574_s9, %s1881_s9   ;;  %s1503_s30 = sphi %s1572_s30, %s1880_s30   ;;  %s1499_s29 = sphi %s1570_s29, %s1879_s29   ;;  %s1495_s28 = sphi %s1568_s28, %s1878_s28   ;;  %s1491_s27 = sphi %s1566_s27, %s1877_s27  }
   0x7   : > { %p29_p0 = scmp.ge.s32.totalorder %s28_s12, 2  ;;  %s1233_s14 = sadd.s32 4294967295, %s1515_s11  }
   0x8   : > { %p47_p1 = scmp.ne.s32.totalorder %s1495_s28, %s1491_s27  ;;  %p48_p2 = scmp.eq.s32.totalorder %s1515_s11, 0 }
   0x9   : > { %s1884_s12 = smov (%p29_p0, %s28_s12), 0  ;;  %s1886_s13 = smov (!%p29_p0, %s31_s13), %s1511_s10 }
   0xa   : > { %p33_p3 = scmp.ge.s32.totalorder %s1886_s13, 4  ;;  %p214_p4 = scmp.eq.s32.totalorder %s1233_s14, 7 }
   0xb   : > { %s36_s15 = ssub.s32 %s1507_s9, %s1884_s12  ;;  %p49_p5 = por %p48_p2, %p47_p1 }
   0xc   : > { %s1888_s13 = smov (%p33_p3, %s1886_s13), 0  ;;  %p1614_p6 = por %p214_p4, %p47_p1 }
   0xd   : > { %1867 = sst [smem:[#allocation4_spill]] %s1888_s13  ;;  %s35_s17 = ssub.s32 %s1511_s10, %s1888_s13 }
   0xe   : > { %s37_s18 = sor.u32 %s36_s15, %s35_s17  ;;  %s40_s19 = sadd.s32 1, %s1495_s28 }
   0xf   : > { %p38_p7 = scmp.eq.s32.totalorder %s37_s18, 0  ;;  %p1242_p8 = scmp.ge.s32.totalorder %s1515_s11, 8 }
  0x11   : > { %s1622_s20 = scalar_select %p38_p7, %s1495_s28, %s40_s19  }
  0x12   : > { %297 = sbr.rel (%p1242_p8) target bundleno = 37 (0x25), region = 28 }
  0x17   : > { %300 = sbr.rel (!%p49_p5) target bundleno = 37 (0x25), region = 32  ;;  %s302_s21 = sand.u32 (%p49_p5), 1, %s1495_s28  }
  0x18   : > { %s1244_s22 = sshll.u32 (%p49_p5), %s1507_s9, 2  ;;  %s1243_s23 = sshll.u32 (%p49_p5), %s302_s21, 5 }
  0x19   : > { %s1245_s24 = sshll.u32 (%p49_p5), %s1511_s10, 4  ;;  %s1869_s0 = sld [smem:[#allocation5_spill]] (%p49_p5) }
  0x1a   : > { %s307_s25 = sadd.s32 (%p49_p5), %s1245_s24, %s1244_s22  ;;  %s304_s17 = scalar_lea.vmem (%p49_p5), [#allocation2], %s1243_s23 }
  0x1b   : > { %s1246_s26 = sshll.u32 (%p49_p5), %s307_s25, 2 }
  0x1f   : > { %s309_s15 = scalar_lea.vmem %s1869_s0, %s1246_s26 }
  0x20   : > { %v322_v0 = vld [vmem:[%s309_s15] sm:$0xff]  ;;  %v324_v1 = vld [vmem:[%s309_s15 + $0x8] sm:$0xff] }
  0x21   : > { %v326_v2 = vld [vmem:[%s309_s15 + $0x20] sm:$0xff]  ;;  %323 = vst [vmem:[%s304_s17] sm:$0xff] %v322_v0  ;;  %v328_v3 = vld [vmem:[%s309_s15 + $0x28] sm:$0xff] }
  0x22   : > { %325 = vst [vmem:[%s304_s17 + $0x8] sm:$0xff] %v324_v1 }
  0x23   : > { %327 = vst [vmem:[%s304_s17 + $0x10] sm:$0xff] %v326_v2 }
  0x24   : > { %329 = vst [vmem:[%s304_s17 + $0x18] sm:$0xff] %v328_v3 }
  0x25 PF: > { %p1247_p9 = scmp.ge.s32.totalorder %s1515_s11, 1  ;;  %p370_p10 = scmp.lt.s32.totalorder %s1515_s11, 9 }
  0x27   : > { %p371_p11 = pnand %p1247_p9, %p370_p10 }
  0x28   : > { %s1251_s22 = sadd.s32 (!%p371_p11), 4294967295, %s1499_s29  ;;  %s456_s23 = sadd.s32 (!%p371_p11), 1, %s1499_s29 }
  0x29   : > { %374 = sbr.rel (%p371_p11) target bundleno = 606 (0x25e), region = 63  ;;  %p442_p12 = scmp.gt.s32.totalorder (!%p371_p11), %s1251_s22, 0 }
  0x2a   : > { %s1250_s24 = sshll.u32 (!%p371_p11), %s1503_s30, 1  ;;  %p457_p13 = scmp.lt.s32.totalorder (!%p371_p11), %s456_s23, 1 }
  0x2b   : > { %p471_p2 = scmp.lt.s32.totalorder (!%p371_p11), %s1503_s30, 3  ;;  %s377_s21 = sand.u32 (!%p371_p11), 1, %s1491_s27  }
  0x2c   : > { %s1518_s27 = smov (!%p371_p11), 1   ;;  %p1326_p3 = scmp.ne.s32.totalorder (!%p371_p11), %s1499_s29, 0 }
  0x2e   : > { %v495_v4 = vld [vmem:[%s1860_s4] sm:$0xff]  ;;  %v1517_v6 = vmov 0   ;;  %s1890_s22 = smov (!%p442_p12, %s1251_s22), 0  ;;  %s1892_s23 = smov (!%p457_p13, %s456_s23), 1  ;;  %v496_v7 = vld [vmem:[%s1860_s4 + $0x8] sm:$0xff]  ;;  %v482_v23 = vlaneseq  ;;  %vm765_vm8 = vcmask 130048  }
  0x2f   : > { %v493_v5 = vld [vmem:[%s1859_s3] sm:$0xff]  ;;  %1409 = vset.pattern.permute.xlu1 %v1517_v6  ;;  %1408 = vset.pattern.permute.xlu0 %v1517_v6  ;;  %s444_s25 = sadd.s32 %s1250_s24, %s1890_s22  ;;  %s459_s26 = sadd.s32 %s1250_s24, %s1892_s23  ;;  %v494_v8 = vld [vmem:[%s1859_s3 + $0x8] sm:$0xff] }
  0x30   : > { %529 = vperm.xlu1 %1409, %v495_v4   ;;  %511 = vperm.xlu0 %1408, %v493_v5   ;;  %p445_p0 = scmp.lt.s32.totalorder %s444_s25, 7  ;;  %p460_p1 = scmp.lt.s32.totalorder %s459_s26, 7  ;;  %v1672_v29 = vand.u32 127, %v482_v23  ;;  %v1338_v23 = vld [vmem:[%s1861_s5 + $0x8] sm:$0xff] }
  0x31   : > { %1430 = vset.pattern.permute.xlu2 %v1517_v6  ;;  %s1261_s24 = sshll.u32 %s1499_s29, 9 }
  0x32   : > { %s1894_s25 = smov (!%p445_p0, %s444_s25), 7  ;;  %s1896_s26 = smov (!%p460_p1, %s459_s26), 7  ;;  %v485_v40 = vadd.s32 256, %v1672_v29  ;;  %v1677_v41 = vadd.s32 384, %v1672_v29  ;;  %v488_v43 = vstv %s1261_s24  ;;  %v484_v47 = vadd.s32 128, %v1672_v29 }
  0x33   : > { %s1333_s13 = sshll.u32 %s1894_s25, 3  ;;  %s1334_s23 = sshll.u32 %s1896_s26, 3  ;;  %v1692_v2 = vadd.s32 %v488_v43, %v1672_v29  ;;  %vm593_vm10 = vcmp.lt.s32.totalorder %v1672_v29, 1 }
  0x34   : > { %s449_s22 = scalar_lea.vmem %s1857_s1, %s1333_s13  ;;  %s464_s14 = scalar_lea.vmem %s1858_s2, %s1334_s23  ;;  %v1682_v53 = vadd.s32 %v488_v43, %v485_v40  ;;  %v1685_v54 = vadd.s32 %v488_v43, %v1677_v41  ;;  %v1687_v59 = vadd.s32 %v488_v43, %v484_v47 }
  0x35   : > { %v1341_v9 = vld [vmem:[%s449_s22] sm:$0xff]   ;;  %s472_s25 = scalar_select %p471_p2, %s1503_s30, 3  ;;  %vm683_vm4 = vcmp.lt.s32.totalorder %v1692_v2, 1024 }
  0x36   : > { %v1342_v10 = vunpack.c.l.bf16 %v1341_v9  ;;  %v1345_v11 = vld [vmem:[%s464_s14] sm:$0xff]   ;;  %v1343_v12 = vunpack.c.h.bf16 %v1341_v9  ;;  %s1667_s22 = sshll.u32 %s377_s21, 5  ;;  %vm685_vm0 = vcmp.lt.s32.totalorder %v1682_v53, 1024  ;;  %vm686_vm1 = vcmp.lt.s32.totalorder %v1685_v54, 1024  ;;  %vm1268_vm7 = vmpackc.low %vm683_vm4, %vm683_vm4  ;;  %s1519_s14 = smov 127  }
  0x37   : > { %v1346_v13 = vunpack.c.l.bf16 %v1345_v11  ;;  %v1347_v14 = vunpack.c.h.bf16 %v1345_v11  ;;  %s1335_s26 = sshll.u32 %s472_s25, 4  ;;  %s379_s23 = scalar_lea.vmem [#allocation2], %s1667_s22  ;;  %vm684_vm2 = vcmp.lt.s32.totalorder %v1687_v59, 1024  ;;  %vm1276_vm3 = vmpackc.low %vm685_vm0, %vm685_vm0  ;;  %vm705_vm9 = vcmp.ge.s32.totalorder %v1682_v53, 1 }
  0x38   : > { %534 = vperm.xlu1 %1409, %v496_v7   ;;  %516 = vperm.xlu0 %1408, %v494_v8   ;;  %v557_v15 = vmul.f32 %v1342_v10, %v493_v5  ;;  %v558_v16 = vmul.f32 %v1343_v12, %v494_v8  ;;  %s1659_s17 = scalar_lea.vmem %s1863_s7, %s1335_s26  ;;  %s1664_s19 = scalar_lea.vmem %s1864_s8, %s1335_s26  ;;  %v497_v26 = vld [vmem:[%s379_s23] sm:$0xff]  ;;  %v498_v27 = vld [vmem:[%s379_s23 + $0x8] sm:$0xff]  ;;  %v499_v38 = vld [vmem:[%s379_s23 + $0x10] sm:$0xff]  ;;  %vm706_vm13 = vcmp.ge.s32.totalorder %v1685_v54, 1  ;;  %vm704_vm14 = vcmp.ge.s32.totalorder %v1687_v59, 1 }
  0x39   : > { %v567_v17 = vmul.f32 %v1346_v13, %v493_v5  ;;  %v568_v18 = vmul.f32 %v1347_v14, %v494_v8  ;;  %v502_v30 = vunpack.c.h.bf16 %v497_v26  ;;  %v503_v33 = vunpack.c.l.bf16 %v498_v27  ;;  %v500_v39 = vld [vmem:[%s379_s23 + $0x18] sm:$0xff]  ;;  %vm1280_vm5 = vmpackc.low %vm686_vm1, %vm686_vm1  ;;  %s1805_s21 = scalar_lea.vmem [#allocation3], %s1667_s22 }
  0x3a   : > { %v559_v19 = vadd.f32 %v557_v15, %v495_v4  ;;  %v560_v20 = vadd.f32 %v558_v16, %v496_v7  ;;  %v504_v34 = vunpack.c.h.bf16 %v498_v27  ;;  %v501_v37 = vunpack.c.l.bf16 %v497_v26  ;;  %vm1272_vm6 = vmpackc.low %vm684_vm2, %vm684_vm2 }
  0x3b   : > { %v569_v21 = vadd.f32 %v567_v17, %v495_v4  ;;  %v570_v22 = vadd.f32 %v568_v18, %v496_v7  ;;  %v505_v48 = vunpack.c.l.bf16 %v499_v38  ;;  %v506_v49 = vunpack.c.h.bf16 %v499_v38  ;;  %vm709_vm11 = vmand %vm705_vm9, %vm685_vm0 }
  0x3c   : > { %v561_v24 = vmax.f32 %v559_v19, 0.0  ;;  %v562_v25 = vmax.f32 %v560_v20, 0.0  ;;  %v507_v50 = vunpack.c.l.bf16 %v500_v39  ;;  %v508_v51 = vunpack.c.h.bf16 %v500_v39  ;;  %vm1296_vm12 = vmpackc.low %vm709_vm11, %vm709_vm11 }
  0x3d   : > { %v571_v35 = vmax.f32 %v569_v21, 0.0  ;;  %v572_v36 = vmax.f32 %v570_v22, 0.0  ;;  %vm1733_vm15 = vmand %vm706_vm13, %vm686_vm1  ;;  %vm703_vm0 = vcmp.ge.s32.totalorder %v1692_v2, 1  ;;  %vm729_vm9 = vcmp.lt.s32.totalorder %v1682_v53, 1023  ;;  %v1339_v53 = vld [vmem:[%s1861_s5 + $0x10] sm:$0xff] }
  0x3e   : > { %v1670_v28 = vpack.i.bf16 %v562_v25, %v561_v24  ;;  %vm1300_vm1 = vmpackc.low %vm1733_vm15, %vm1733_vm15  ;;  %vm631_vm11 = vcmp.eq.s32.totalorder %v1677_v41, 511  ;;  %vm727_vm13 = vcmp.lt.s32.totalorder %v1692_v2, 1023 }
  0x3f   : > { %v1679_v42 = vpack.i.bf16 %v572_v36, %v571_v35 }
  0xa2   : > { %v530_v31 = vpop.permute.xlu1 %529  ;;  %v512_v32 = vpop.permute.xlu0 %511 }
  0xa3   : > { %v520_v44 = vmul.f32 %v512_v32, %v502_v30  ;;  %v521_v45 = vmul.f32 %v512_v32, %v503_v33  ;;  %v522_v46 = vmul.f32 %v512_v32, %v504_v34  ;;  %v519_v52 = vmul.f32 %v512_v32, %v501_v37  ;;  %v1337_v34 = vld [vmem:[%s1861_s5] sm:$0xff] }
  0xa5   : > { %v540_v55 = vadd.f32 %v530_v31, %v522_v46  ;;  %v539_v57 = vadd.f32 %v530_v31, %v521_v45  ;;  %v538_v58 = vadd.f32 %v530_v31, %v520_v44  ;;  %v537_v0 = vadd.f32 %v530_v31, %v519_v52 }
  0xa7   : > { %v548_v7 = vmax.f32 %v540_v55, 0.0  ;;  %v547_v8 = vmax.f32 %v539_v57, 0.0  ;;  %v546_v9 = vmax.f32 %v538_v58, 0.0  ;;  %v545_v14 = vmax.f32 %v537_v0, 0.0 }
  0xaa   : > { %v517_v56 = vpop.permute.xlu0 %516  ;;  %v535_v1 = vpop.permute.xlu1 %534 }
  0xab   : > { %v523_v60 = vmul.f32 %v517_v56, %v505_v48  ;;  %v524_v61 = vmul.f32 %v517_v56, %v506_v49  ;;  %v525_v62 = vmul.f32 %v517_v56, %v507_v50  ;;  %v526_v63 = vmul.f32 %v517_v56, %v508_v51 }
  0xad   : > { %v541_v3 = vadd.f32 %v535_v1, %v523_v60  ;;  %v544_v4 = vadd.f32 %v535_v1, %v526_v63  ;;  %v543_v5 = vadd.f32 %v535_v1, %v525_v62  ;;  %v542_v6 = vadd.f32 %v535_v1, %v524_v61 }
  0xaf   : > { %v549_v10 = vmax.f32 %v541_v3, 0.0  ;;  %v552_v11 = vmax.f32 %v544_v4, 0.0  ;;  %v551_v12 = vmax.f32 %v543_v5, 0.0  ;;  %v550_v13 = vmax.f32 %v542_v6, 0.0 }
  0xb1   : > { %v1420_v15 = vpack.i.bf16 %v552_v11, %v548_v7  ;;  %v1277_v16 = vpack.c.bf16 %v551_v12, %v547_v8  ;;  %v1281_v17 = vpack.c.bf16 %v552_v11, %v548_v7  ;;  %v1410_v18 = vpack.i.bf16 %v550_v13, %v546_v9 }
  0xb2   : > { %v1273_v19 = vpack.c.bf16 %v550_v13, %v546_v9  ;;  %v1425_v20 = vpack.i.bf16 %v549_v10, %v545_v14  ;;  %v1269_v21 = vpack.c.bf16 %v549_v10, %v545_v14  ;;  %v1415_v22 = vpack.i.bf16 %v551_v12, %v547_v8 }
  0xb3   : > { %1421 = vrot.lane.b32.xlu0 %v1420_v15, %s1518_s27  ;;  %1278 = vmatpush.bf16.msk.msra.mxu2 %vm1276_vm3, %v1277_v16  ;;  %vm1740_vm3 = vmand %vm704_vm14, %vm684_vm2  ;;  %vm728_vm14 = vcmp.lt.s32.totalorder %v1687_v59, 1023 }
  0xb4   : > { %1282 = vmatpush.bf16.msk.msra.mxu3 %vm1280_vm5, %v1281_v17  ;;  %1411 = vrot.lane.b32.xlu2 %v1410_v18, %s1518_s27  ;;  %vm573_vm5 = vcmp.eq.s32.totalorder %v1672_v29, 0  ;;  %vm1754_vm2 = vmand %vm703_vm0, %vm683_vm4 }
  0xb5   : > { %1274 = vmatpush.bf16.msk.msra.mxu1 %vm1272_vm6, %v1273_v19  ;;  %1426 = vrot.lane.b32.xlu1 %v1425_v20, %s1518_s27  ;;  %vm1292_vm4 = vmpackc.low %vm1740_vm3, %vm1740_vm3 }
  0xb6   : > { %1270 = vmatpush.bf16.msk.msra.mxu0 %vm1268_vm7, %v1269_v21  ;;  %1279 = vmatmul.msk.bf16.vlgmr.msra.gmra.mxu2 %vm765_vm8, %v1338_v23  ;;  %vm1288_vm6 = vmpackc.low %vm1754_vm2, %vm1754_vm2  ;;  %vm648_vm7 = vcmp.lt.s32.totalorder %v1672_v29, 127 }
  0xb7   : > { %1283 = vmatmul.msk.bf16.vlgmr.msra.gmra.mxu3 %vm765_vm8, %v1338_v23  ;;  %vm1310_vm0 = vmpackc.low %vm727_vm13, %vm727_vm13 }
  0xb8   : > { %1275 = vmatmul.msk.bf16.vlgmr.msra.gmra.mxu1 %vm765_vm8, %v1338_v23  ;;  %vm1314_vm3 = vmpackc.low %vm728_vm14, %vm728_vm14 }
  0xb9   : > { %1271 = vmatmul.msk.bf16.vlgmr.msra.gmra.mxu0 %vm765_vm8, %v1338_v23 }
  0xbb   : > { %1437 = vrot.lane.b32.xlu0 %v1425_v20, %s1519_s14 }
  0xbc   : > { %1416 = vrot.lane.b32.xlu2 %v1415_v22, %s1518_s27 }
  0xbd   : > { %1442 = vrot.lane.b32.xlu1 %v1420_v15, %s1519_s14 }
  0xc3   : > { %1452 = vperm.xlu0 %1408, %v1679_v42  }
  0xc4   : > { %1432 = vperm.xlu2 %1430, %v1670_v28  }
  0xc5   : > { %1457 = vrot.lane.b32.xlu1 %v1410_v18, %s1519_s14 }
  0xcc   : > { %1447 = vrot.lane.b32.xlu2 %v1415_v22, %s1519_s14 }
 0x10e   : > { %v1412_v24 = vpop.permute.xlu2 %1411 }
 0x10f   : > { %v1414_v26 = vunpack.i.h.bf16 %v1412_v24  ;;  %v1413_v27 = vunpack.i.l.bf16 %v1412_v24 }
 0x116   : > { %v1417_v25 = vpop.permute.xlu2 %1416 }
 0x117   : > { %v1419_v28 = vunpack.i.h.bf16 %v1417_v25  ;;  %v1418_v30 = vunpack.i.l.bf16 %v1417_v25 }
 0x119   : > { %v596_v31 = vsel %vm593_vm10, %v1413_v27, %v1418_v30  ;;  %v597_v32 = vsel %vm593_vm10, %v1414_v26, %v1419_v28 }
 0x11a   : > { %v1297_v33 = vpack.c.bf16 %v597_v32, %v596_v31 }
 0x11c   : > { %1298 = vmatpush.bf16.msk.msrb.mxu2 %vm1296_vm12, %v1297_v33  ;;  %vm730_vm12 = vcmp.lt.s32.totalorder %v1685_v54, 1023 }
 0x11d   : > { %vm1322_vm15 = vmpackc.low %vm730_vm12, %vm730_vm12 }
 0x11e   : > { %v1433_v35 = vpop.permute.xlu2 %1432 }
 0x11f   : > { %1299 = vmatmul.msk.bf16.vlgmr.msrb.gmra.mxu2 %vm765_vm8, %v1337_v34  ;;  %v1435_v42 = vunpack.i.h.bf16 %v1433_v35  ;;  %v1434_v43 = vunpack.i.l.bf16 %v1433_v35 }
 0x125   : > { %v1422_v37 = vpop.permute.xlu0 %1421 }
 0x126   : > { %v1424_v38 = vunpack.i.h.bf16 %v1422_v37  ;;  %v1423_v39 = vunpack.i.l.bf16 %v1422_v37  ;;  %v1448_v62 = vpop.permute.xlu2 %1447 }
 0x127   : > { %v1427_v44 = vpop.permute.xlu1 %1426  ;;  %v1450_v1 = vunpack.i.h.bf16 %v1448_v62  ;;  %v1449_v3 = vunpack.i.l.bf16 %v1448_v62 }
 0x128   : > { %v1429_v45 = vunpack.i.h.bf16 %v1427_v44  ;;  %v1428_v46 = vunpack.i.l.bf16 %v1427_v44  ;;  %v594_v47 = vsel %vm593_vm10, %v1418_v30, %v1423_v39  ;;  %v595_v48 = vsel %vm593_vm10, %v1419_v28, %v1424_v38 }
 0x129   : > { %v1301_v50 = vpack.c.bf16 %v595_v48, %v594_v47 }
 0x12a   : > { %v601_v51 = vsel %vm593_vm10, %v1424_v38, %v1429_v45  ;;  %v600_v52 = vsel %vm593_vm10, %v1423_v39, %v1428_v46  ;;  %v598_v55 = vsel %vm593_vm10, %v1428_v46, %v1413_v27  ;;  %v599_v56 = vsel %vm593_vm10, %v1429_v45, %v1414_v26  ;;  %vm1318_vm10 = vmpackc.low %vm729_vm9, %vm729_vm9 }
 0x12b   : > { %v1293_v57 = vpack.c.bf16 %v599_v56, %v598_v55  ;;  %1302 = vmatpush.bf16.msk.msrb.mxu3 %vm1300_vm1, %v1301_v50  ;;  %v620_v58 = vsel %vm573_vm5, %v1434_v43, %v600_v52  ;;  %v624_v60 = vsel %vm573_vm5, %v1435_v42, %v601_v51 }
 0x12c   : > { %v1289_v61 = vpack.c.bf16 %v624_v60, %v620_v58 }
 0x12d   : > { %1294 = vmatpush.bf16.msk.msrb.mxu1 %vm1292_vm4, %v1293_v57  ;;  %v1438_v63 = vpop.permute.xlu0 %1437 }
 0x12e   : > { %1290 = vmatpush.bf16.msk.msrb.mxu0 %vm1288_vm6, %v1289_v61  ;;  %1303 = vmatmul.msk.bf16.vlgmr.msrb.gmra.mxu3 %vm765_vm8, %v1337_v34  ;;  %v1440_v8 = vunpack.i.h.bf16 %v1438_v63  ;;  %v1439_v9 = vunpack.i.l.bf16 %v1438_v63 }
 0x12f   : > { %v1443_v0 = vpop.permute.xlu1 %1442 }
 0x130   : > { %v1445_v4 = vunpack.i.h.bf16 %v1443_v0  ;;  %v1444_v5 = vunpack.i.l.bf16 %v1443_v0  ;;  %1295 = vmatmul.msk.bf16.vlgmr.msrb.gmra.mxu1 %vm765_vm8, %v1337_v34 }
 0x131   : > { %1291 = vmatmul.msk.bf16.vlgmr.msrb.gmra.mxu0 %vm765_vm8, %v1337_v34 }
 0x132   : > { %v650_v6 = vsel %vm648_vm7, %v1450_v1, %v1445_v4  ;;  %v649_v7 = vsel %vm648_vm7, %v1449_v3, %v1444_v5  ;;  %v656_v14 = vsel %vm648_vm7, %v1445_v4, %v1440_v8  ;;  %v655_v15 = vsel %vm648_vm7, %v1444_v5, %v1439_v9 }
 0x133   : > { %v1319_v10 = vpack.c.bf16 %v650_v6, %v649_v7 }
 0x135   : > { %1320 = vmatpush.bf16.msk.msra.mxu2 %vm1318_vm10, %v1319_v10  ;;  %v1453_v11 = vpop.permute.xlu0 %1452  ;;  %v792_v25 = vpop.f32.mrf.mxu1 }
 0x136   : > { %v1455_v12 = vunpack.i.h.bf16 %v1453_v11  ;;  %v1454_v13 = vunpack.i.l.bf16 %v1453_v11  ;;  %v778_v26 = vpop.f32.mrf.mxu0 }
 0x137   : > { %v1458_v16 = vpop.permute.xlu1 %1457 }
 0x138   : > { %v678_v17 = vsel %vm631_vm11, %v1454_v13, %v655_v15  ;;  %v682_v18 = vsel %vm631_vm11, %v1455_v12, %v656_v14  ;;  %v1460_v19 = vunpack.i.h.bf16 %v1458_v16  ;;  %v1459_v41 = vunpack.i.l.bf16 %v1458_v16  ;;  %1321 = vmatmul.msk.bf16.vlgmr.msra.gmra.mxu2 %vm765_vm8, %v1339_v53 }
 0x139   : > { %v1323_v54 = vpack.c.bf16 %v682_v18, %v678_v17  ;;  %v806_v24 = vpop.f32.mrf.mxu2 }
 0x13a   : > { %v652_v2 = vsel %vm648_vm7, %v1460_v19, %v1450_v1  ;;  %v654_v20 = vsel %vm648_vm7, %v1440_v8, %v1460_v19  ;;  %v651_v21 = vsel %vm648_vm7, %v1459_v41, %v1449_v3  ;;  %v653_v59 = vsel %vm648_vm7, %v1439_v9, %v1459_v41  ;;  %v820_v27 = vpop.f32.mrf.mxu3 }
 0x13b   : > { %v1311_v22 = vpack.c.bf16 %v654_v20, %v653_v59  ;;  %v1315_v23 = vpack.c.bf16 %v652_v2, %v651_v21  ;;  %1324 = vmatpush.bf16.msk.msra.mxu3 %vm1322_vm15, %v1323_v54 }
 0x13d   : > { %1312 = vmatpush.bf16.msk.msra.mxu0 %vm1310_vm0, %v1311_v22  ;;  %1316 = vmatpush.bf16.msk.msra.mxu1 %vm1314_vm3, %v1315_v23  ;;  %v794_v30 = vpop.f32.mrf.mxu1 }
 0x13e   : > { %1325 = vmatmul.msk.bf16.vlgmr.msra.gmra.mxu3 %vm765_vm8, %v1339_v53  ;;  %v780_v29 = vpop.f32.mrf.mxu0 }
 0x140   : > { %1317 = vmatmul.msk.bf16.vlgmr.msra.gmra.mxu1 %vm765_vm8, %v1339_v53 }
 0x141   : > { %1313 = vmatmul.msk.bf16.vlgmr.msra.gmra.mxu0 %vm765_vm8, %v1339_v53  ;;  %v808_v28 = vpop.f32.mrf.mxu2 }
 0x142   : > { %v822_v31 = vpop.f32.mrf.mxu3 }
 0x1a2   : > { %v870_v32 = vpop.f32.mrf.mxu2 }
 0x1a3   : > { %v871_v48 = vadd.f32 %v870_v32, %v806_v24 }
 0x1aa   : > { %v872_v36 = vpop.f32.mrf.mxu2 }
 0x1ab   : > { %v873_v6 = vadd.f32 %v872_v36, %v808_v28 }
 0x1ad   : > { %v856_v33 = vpop.f32.mrf.mxu1 }
 0x1ae   : > { %v842_v34 = vpop.f32.mrf.mxu0  ;;  %v857_v40 = vadd.f32 %v856_v33, %v792_v25 }
 0x1af   : > { %v843_v42 = vadd.f32 %v842_v34, %v778_v26 }
 0x1b1   : > { %v884_v35 = vpop.f32.mrf.mxu3 }
 0x1b2   : > { %v885_v49 = vadd.f32 %v884_v35, %v820_v27 }
 0x1b5   : > { %v858_v37 = vpop.f32.mrf.mxu1 }
 0x1b6   : > { %v844_v38 = vpop.f32.mrf.mxu0  ;;  %v859_v58 = vadd.f32 %v858_v37, %v794_v30 }
 0x1b7   : > { %v845_v61 = vadd.f32 %v844_v38, %v780_v29 }
 0x1b9   : > { %v886_v39 = vpop.f32.mrf.mxu3 }
 0x1ba   : > { %v887_v7 = vadd.f32 %v886_v39, %v822_v31 }
 0x1bb   : > { %v941_v43 = vpop.f32.mrf.mxu2 }
 0x1bc   : > { %v962_v52 = vadd.f32 %v941_v43, %v871_v48 }
 0x1bd   : > { %v927_v44 = vpop.f32.mrf.mxu1 }
 0x1be   : > { %v961_v45 = vadd.f32 %v927_v44, %v857_v40  ;;  %v913_v46 = vpop.f32.mrf.mxu0 }
 0x1bf   : > { %v960_v47 = vadd.f32 %v913_v46, %v843_v42 }
 0x1c1   : > { %v968_v50 = vpack.c.bf16 %v961_v45, %v960_v47  ;;  %v955_v51 = vpop.f32.mrf.mxu3 }
 0x1c2   : > { %v963_v55 = vadd.f32 %v955_v51, %v885_v49 }
 0x1c3   : > { %972 = vst [vmem:[%s1805_s21] sm:$0xff] %v968_v50  ;;  %v976_v56 = vunpack.c.l.bf16 %v968_v50  ;;  %v977_v57 = vunpack.c.h.bf16 %v968_v50  ;;  %v943_v4 = vpop.f32.mrf.mxu2 }
 0x1c4   : > { %v969_v60 = vpack.c.bf16 %v963_v55, %v962_v52  ;;  %v966_v10 = vadd.f32 %v943_v4, %v873_v6 }
 0x1c5   : > { %v929_v62 = vpop.f32.mrf.mxu1 }
 0x1c6   : > { %973 = vst [vmem:[%s1805_s21 + $0x8] sm:$0xff] %v969_v60  ;;  %v978_v63 = vunpack.c.l.bf16 %v969_v60  ;;  %v979_v0 = vunpack.c.h.bf16 %v969_v60  ;;  %v965_v1 = vadd.f32 %v929_v62, %v859_v58  ;;  %v915_v3 = vpop.f32.mrf.mxu0 }
 0x1c7   : > { %v964_v5 = vadd.f32 %v915_v3, %v845_v61 }
 0x1c9   : > { %v970_v8 = vpack.c.bf16 %v965_v1, %v964_v5  ;;  %v957_v9 = vpop.f32.mrf.mxu3 }
 0x1ca   : > { %v967_v53 = vadd.f32 %v957_v9, %v887_v7  ;;  %987 = sbr.rel (%p1326_p3) target bundleno = 468 (0x1d4), region = 71 }
 0x1cb   : > { %974 = vst [vmem:[%s1805_s21 + $0x10] sm:$0xff] %v970_v8  ;;  %v980_v11 = vunpack.c.l.bf16 %v970_v8  ;;  %v981_v12 = vunpack.c.h.bf16 %v970_v8 }
 0x1cc   : > { %v971_v13 = vpack.c.bf16 %v967_v53, %v966_v10 }
 0x1ce   : > { %975 = vst [vmem:[%s1805_s21 + $0x18] sm:$0xff] %v971_v13  ;;  %v982_v14 = vunpack.c.l.bf16 %v971_v13  ;;  %v983_v15 = vunpack.c.h.bf16 %v971_v13 }
 0x1cf   : > { %vm988_vm8 = vcmask 7168   ;;  %v1520_v16 = vmov 0.0  }
 0x1d0   : > { %989 = vst.msk [vmem:[%s1659_s17] sm:$0xff] %vm988_vm8, %v1520_v16 }
 0x1d1   : > { %990 = vst.msk [vmem:[%s1659_s17 + $0x8] sm:$0xff] %vm988_vm8, %v1520_v16 }
 0x1d2   : > { %991 = vst.msk [vmem:[%s1664_s19] sm:$0xff] %vm988_vm8, %v1520_v16 }
 0x1d3   : > { %992 = vst.msk [vmem:[%s1664_s19 + $0x8] sm:$0xff] %vm988_vm8, %v1520_v16 }
 0x1d4 PF: > { %v1012_v17 = vmul.f32 %v976_v56, %v976_v56  ;;  %v1013_v18 = vmul.f32 %v977_v57, %v977_v57  ;;  %v1014_v19 = vmul.f32 %v978_v63, %v978_v63  ;;  %v995_v41 = vadd.f32 %v977_v57, %v976_v56  ;;  %s1328_s22 = sshll.u32 (%p1614_p6), %s1499_s29, 2  ;;  %s1329_s23 = sshll.u32 (%p1614_p6), %s1503_s30, 4  ;;  %v1068_v46 = vld [vmem:[%s1805_s21] sm:$0xff] (%p1614_p6)  ;;  %v1070_v47 = vld [vmem:[%s1805_s21 + $0x8] sm:$0xff] (%p1614_p6) }
 0x1d5   : > { %v1016_v54 = vmul.f32 %v980_v11, %v980_v11  ;;  %v1017_v2 = vmul.f32 %v981_v12, %v981_v12  ;;  %v1015_v20 = vmul.f32 %v979_v0, %v979_v0  ;;  %v1000_v22 = vadd.f32 %v981_v12, %v980_v11  ;;  %s1053_s24 = sadd.s32 (%p1614_p6), %s1329_s23, %s1328_s22 }
 0x1d6   : > { %v1020_v21 = vadd.f32 %v1013_v18, %v1012_v17  ;;  %v996_v59 = vadd.f32 %v995_v41, %v978_v63  ;;  %v1018_v24 = vmul.f32 %v982_v14, %v982_v14  ;;  %v1019_v30 = vmul.f32 %v983_v15, %v983_v15  ;;  %s1330_s27 = sshll.u32 (%p1614_p6), %s1053_s24, 2 }
 0x1d7   : > { %v1025_v25 = vadd.f32 %v1017_v2, %v1016_v54  ;;  %v1001_v28 = vadd.f32 %v1000_v22, %v982_v14  ;;  %v993_v33 = vld [vmem:[%s1659_s17] sm:$0xff]  ;;  %vm1007_vm1 = vcmask 7168   ;;  %v1072_v48 = vld [vmem:[%s1805_s21 + $0x10] sm:$0xff] (%p1614_p6) }
 0x1d8   : > { %v1021_v23 = vadd.f32 %v1020_v21, %v1014_v19  ;;  %v997_v26 = vadd.f32 %v996_v59, %v979_v0  ;;  %v994_v39 = vld [vmem:[%s1659_s17 + $0x8] sm:$0xff] }
 0x1d9   : > { %v1026_v29 = vadd.f32 %v1025_v25, %v1018_v24  ;;  %v1002_v31 = vadd.f32 %v1001_v28, %v983_v15  ;;  %v1010_v34 = vld [vmem:[%s1664_s19] sm:$0xff] }
 0x1da   : > { %v1022_v27 = vadd.f32 %v1021_v23, %v1015_v20  ;;  %998 = vadd.xlane.f32.xlu0 %v997_v26  ;;  %v1011_v40 = vld [vmem:[%s1664_s19 + $0x8] sm:$0xff]  ;;  %v1074_v49 = vld [vmem:[%s1805_s21 + $0x18] sm:$0xff] (%p1614_p6) }
 0x1db   : > { %v1027_v32 = vadd.f32 %v1026_v29, %v1019_v30 }
 0x1dc   : > { %1023 = vadd.xlane.f32.xlu1 %v1022_v27 }
 0x1e2   : > { %1003 = vadd.xlane.f32.xlu0 %v1002_v31 }
 0x1e4   : > { %1028 = vadd.xlane.f32.xlu1 %v1027_v32 }
 0x24d   : > { %v999_v35 = vpop.xlane.xlu0 %998 }
 0x24e   : > { %v1005_v37 = vadd.f32 %v999_v35, %v993_v33 }
 0x24f   : > { %v1024_v36 = vpop.xlane.xlu1 %1023 }
 0x250   : > { %v1030_v38 = vadd.f32 %v1024_v36, %v1010_v34  ;;  %1008 = vst.msk [vmem:[%s1659_s17] sm:$0xff] %vm1007_vm1, %v1005_v37 }
 0x252   : > { %1032 = vst.msk [vmem:[%s1664_s19] sm:$0xff] %vm1007_vm1, %v1030_v38 }
 0x255   : > { %v1004_v42 = vpop.xlane.xlu0 %1003 }
 0x256   : > { %v1006_v44 = vadd.f32 %v1004_v42, %v994_v39  ;;  %1050 = sbr.rel (!%p1614_p6) target bundleno = 606 (0x25e), region = 75 }
 0x257   : > { %v1029_v43 = vpop.xlane.xlu1 %1028 }
 0x258   : > { %v1031_v45 = vadd.f32 %v1029_v43, %v1011_v40  ;;  %1009 = vst.msk [vmem:[%s1659_s17 + $0x8] sm:$0xff] %vm1007_vm1, %v1006_v44  ;;  %s1055_s17 = scalar_lea.vmem (%p1614_p6), %s1862_s6, %s1330_s27 }
 0x259   : > { %1069 = vst [vmem:[%s1055_s17] sm:$0xff] (%p1614_p6), %v1068_v46 }
 0x25a   : > { %1033 = vst.msk [vmem:[%s1664_s19 + $0x8] sm:$0xff] %vm1007_vm1, %v1031_v45 }
 0x25b   : > { %1071 = vst [vmem:[%s1055_s17 + $0x8] sm:$0xff] %v1070_v47 }
 0x25c   : > { %1073 = vst [vmem:[%s1055_s17 + $0x20] sm:$0xff] %v1072_v48 }
 0x25d   : > { %1075 = vst [vmem:[%s1055_s17 + $0x28] sm:$0xff] %v1074_v49 }
 0x25e PF: > { %s19_s11 = sadd.s32 1, %s1515_s11   ;;  %s1876_s16 = sld [smem:[#allocation4_spill]] }
 0x25f   : > { %p16_p4 = scmp.ge.s32.totalorder %s19_s11, 10   ;;  %s1877_s27 = smov %s1495_s28 }
 0x260   : > { %s1878_s28 = smov %s1622_s20  ;;  %s1879_s29 = smov %s1507_s9 }
 0x261   : > { %s1880_s30 = smov %s1511_s10  ;;  %s1881_s9 = smov %s1884_s12 }
 0x262   :  { %18 = sbr.rel (!%p16_p4) target bundleno = 6 (0x6), region = 161 }
 0x264   : > { %s1882_s10 = smov %s1876_s16 }

// kernel: resnest_bottleneck_forward.7
= control target key start
LH: loop header
LB: loop body
LE: loop exit
PB: predicated region body
PF: predicated region fallthrough
CT: control target
= control target key end

     0   :  { %s1771_s0 = inlined_call_operand.vmem [shape: bf16[4,16,1024], index: 0, kind: input, shape index: {}]   ;;  %s1772_s1 = inlined_call_operand.hbm [shape: f32[4,64,1024], index: 1, kind: input, shape index: {}]   ;;  %s1773_s2 = inlined_call_operand.vmem [shape: f32[16,1], index: 2, kind: input, shape index: {}]   ;;  %s1774_s3 = inlined_call_operand.vmem [shape: f32[16,1], index: 3, kind: input, shape index: {}]   ;;  %s1775_s4 = inlined_call_operand.vmem [shape: f32[4,16,1], index: 4, kind: input, shape index: {}]   ;;  %s1776_s5 = inlined_call_operand.vmem [shape: bf16[64,16], index: 5, kind: input, shape index: {}]   ;;  %s1777_s6 = inlined_call_operand.vmem [shape: f32[64,1], index: 6, kind: input, shape index: {}]   ;;  %s1778_s7 = inlined_call_operand.vmem [shape: f32[64,1], index: 7, kind: input, shape index: {}]   ;;  %s1779_s8 = inlined_call_operand.hbm [shape: f32[4,64,1024], index: 8, kind: output, shape index: {}]  }
   0x1   :  { %1787 = sst [smem:[#allocation16_spill]] %s1771_s0 }
   0x2   :  { %1788 = sst [smem:[#allocation17_spill]] %s1779_s8 }
   0x3   :  { %13 = vsyncpa [#allocation4], 0 }
   0x4   :  { %15 = vsyncpa [#allocation4 + $0x1], 0 }
   0x5   :  { %16 = vsyncpa [#allocation5], 0 }
   0x6   :  { %18 = vsyncpa [#allocation5 + $0x1], 0  ;;  %s1412_s27 = smov 0   ;;  %s1414_s28 = smov 0  }
   0x7   :  { %s1416_s29 = smov 0   ;;  %s1418_s30 = smov 0  }
   0x8   :  { %s1420_s9 = smov 0   ;;  %s1422_s10 = smov 0  }
   0x9   :  { %s1424_s11 = smov 0   ;;  %s1426_s12 = smov 0  }
   0xa LB: > { %1789 = sst [smem:[#allocation9_spill]] %s1330_s27  ;;  %s1088_s13 = sadd.s32 4294967295, %s1358_s12   ;;  %s1358_s12 = sphi %s1426_s12, %s24_s12   ;;  %s1354_s11 = sphi %s1424_s11, %s1815_s11   ;;  %s1350_s10 = sphi %s1422_s10, %s1814_s10   ;;  %s1346_s9 = sphi %s1420_s9, %s1813_s9   ;;  %s1342_s30 = sphi %s1418_s30, %s1812_s30   ;;  %s1338_s29 = sphi %s1416_s29, %s1811_s29   ;;  %s1334_s28 = sphi %s1414_s28, %s1810_s28   ;;  %s1330_s27 = sphi %s1412_s27, %s1809_s27  }
   0xb   : > { %1790 = sst [smem:[#allocation10_spill]] %s1342_s30  ;;  %s1089_s14 = sadd.s32 4294967294, %s1358_s12  }
   0xc   : > { %s33_s15 = sadd.s32 1, %s1350_s10  ;;  %s36_s16 = sadd.s32 1, %s1354_s11 }
   0xd   : > { %p34_p0 = scmp.ge.s32.totalorder %s33_s15, 2  ;;  %p52_p1 = scmp.ne.s32.totalorder %s1338_s29, %s1334_s28 }
   0xe   : > { %p53_p2 = scmp.eq.s32.totalorder %s1358_s12, 0  ;;  %p86_p5 = scmp.ne.s32.totalorder %s1334_s28, %s1330_s27 }
   0xf   : > { %s1817_s15 = smov (%p34_p0, %s33_s15), 0  ;;  %s1819_s16 = smov (!%p34_p0, %s36_s16), %s1354_s11 }
  0x10   : > { %1791 = sst [smem:[#allocation11_spill]] %s1817_s15  ;;  %s41_s17 = ssub.s32 %s1350_s10, %s1817_s15 }
  0x11   : > { %p1464_p3 = por %p53_p2, %p52_p1  ;;  %p38_p4 = scmp.ge.s32.totalorder %s1819_s16, 4 }
  0x12   : > { %p87_p6 = scmp.eq.s32.totalorder %s1088_s13, 0  ;;  %p243_p7 = scmp.eq.s32.totalorder %s1088_s13, 7 }
  0x13   : > { %s1821_s16 = smov (%p38_p4, %s1819_s16), 0  ;;  %p249_p10 = scmp.eq.s32.totalorder %s1089_s14, 7 }
  0x14   : > { %1793 = sst [smem:[#allocation12_spill]] %s1821_s16  ;;  %p1472_p8 = por %p87_p6, %p86_p5 }
  0x15   : > { %p1476_p9 = por %p243_p7, %p52_p1  ;;  %s40_s21 = ssub.s32 %s1354_s11, %s1821_s16 }
  0x16   : > { %s42_s22 = sor.u32 %s41_s17, %s40_s21  ;;  %s45_s23 = sadd.s32 1, %s1338_s29 }
  0x17   : > { %s1795_s20 = scalar_select %p1476_p9, 1, 0 }
  0x18   : > { %p43_p11 = scmp.eq.s32.totalorder %s42_s22, 0  ;;  %p1483_p12 = por %p249_p10, %p86_p5 }
  0x19   : > { %1796 = sst [smem:[#allocation13_spill]] %s1795_s20  ;;  %p1091_p13 = scmp.ge.s32.totalorder %s1358_s12, 8 }
  0x1a   : > { %s1797_s24 = scalar_select %p1483_p12, 1, 0 }
  0x1b   : > { %s1488_s25 = scalar_select %p43_p11, %s1338_s29, %s45_s23  }
  0x1c   : > { %1798 = sst [smem:[#allocation14_spill]] %s1797_s24  ;;  %280 = sbr.rel (%p1091_p13) target bundleno = 55 (0x37), region = 36 }
  0x1d   : > { %1799 = sst [smem:[#allocation15_spill]] %s1488_s25 }
  0x21   : > { %283 = sbr.rel (!%p1464_p3) target bundleno = 47 (0x2f), region = 40  ;;  %s285_s26 = sand.u32 (%p1464_p3), 1, %s1338_s29  }
  0x22   : > { %s1093_s13 = sshll.u32 (%p1464_p3), %s1350_s10, 2  ;;  %s1092_s14 = sshll.u32 (%p1464_p3), %s285_s26, 5 }
  0x23   : > { %s1094_s17 = sshll.u32 (%p1464_p3), %s1354_s11, 4  ;;  %s1800_s0 = sld [smem:[#allocation16_spill]] (%p1464_p3) }
  0x24   : > { %s290_s21 = sadd.s32 (%p1464_p3), %s1094_s17, %s1093_s13  ;;  %s287_s25 = scalar_lea.vmem (%p1464_p3), [#allocation2], %s1092_s14 }
  0x25   : > { %s1095_s22 = sshll.u32 (%p1464_p3), %s290_s21, 2 }
  0x29   : > { %s292_s23 = scalar_lea.vmem %s1800_s0, %s1095_s22 }
  0x2a   : > { %v305_v0 = vld [vmem:[%s292_s23] sm:$0xff]  ;;  %v307_v1 = vld [vmem:[%s292_s23 + $0x8] sm:$0xff] }
  0x2b   : > { %v309_v2 = vld [vmem:[%s292_s23 + $0x20] sm:$0xff]  ;;  %306 = vst [vmem:[%s287_s25] sm:$0xff] %v305_v0  ;;  %v311_v3 = vld [vmem:[%s292_s23 + $0x28] sm:$0xff] }
  0x2c   : > { %308 = vst [vmem:[%s287_s25 + $0x8] sm:$0xff] %v307_v1 }
  0x2d   : > { %310 = vst [vmem:[%s287_s25 + $0x10] sm:$0xff] %v309_v2 }
  0x2e   : > { %312 = vst [vmem:[%s287_s25 + $0x18] sm:$0xff] %v311_v3 }
  0x2f PF: > { %s319_s26 = sand.u32 1, %s1338_s29   ;;  %s1097_s13 = sshll.u32 %s1350_s10, 2 }
  0x30   : > { %s1096_s17 = sshll.u32 %s319_s26, 8  ;;  %s1098_s21 = sshll.u32 %s1354_s11, 6 }
  0x31   : > { %s328_s15 = sadd.s32 %s1098_s21, %s1097_s13  ;;  %s323_s16 = scalar_lea.vmem [#allocation3], %s1096_s17 }
  0x32   : > { %s333_s22 = sshll.u32 %s323_s16, 4  ;;  %s1099_s0 = sshll.u32 %s328_s15, 3  ;;  %s334_s22 = int_to_ptr.vmem [resolvable:$true] %s333_s22 }
  0x33   : > { %s330_s23 = scalar_lea.hbm %s1772_s1, %s1099_s0  ;;  %s320_s25 = scalar_lea.sflag [#allocation4], %s319_s26 }
  0x34   : > { %s331_s27 = sshll.u32 %s330_s23, 4  ;;  %s1360_s20 = smov 1024   ;;  %s332_s27 = int_to_ptr.hbm [resolvable:$true] %s331_s27 }
  0x35   : > { %s1361_s8 = smov 512   ;;  %s1362_s30 = smov 32  }
  0x36   : > { %1149 = dma.hbm_to_vmem [thread:$0]  (%p1464_p3), %s332_s27, 4096, %s334_s22, %s320_s25, %s1360_s20, %s1361_s8, %s1362_s30  }
  0x37 PF: > { %p1100_p0 = scmp.ge.s32.totalorder %s1358_s12, 1  ;;  %p349_p1 = scmp.lt.s32.totalorder %s1358_s12, 9 }
  0x39   : > { %p350_p2 = pnand %p1100_p0, %p349_p1 }
  0x3a   : > { %s1510_s13 = sand.u32 (!%p350_p2), 1, %s1334_s28  }
  0x3b   : > { %353 = sbr.rel (%p350_p2) target bundleno = 407 (0x197), region = 71  ;;  %s1101_s0 = sshll.u32 (!%p350_p2), %s1510_s13, 5 }
  0x3c   : > { %s1102_s24 = sshll.u32 (!%p350_p2), %s1510_s13, 8  ;;  %s1514_s26 = scalar_lea.vmem (!%p350_p2), [#allocation2], %s1101_s0 }
  0x3d   : > { %s363_s8 = scalar_lea.sflag (!%p350_p2), [#allocation4], %s1510_s13  ;;  %s1519_s27 = scalar_lea.vmem (!%p350_p2), [#allocation3], %s1102_s24 }
  0x40   : > { %1321 = dma.done.wait (%p1472_p8), %s363_s8, 4096  }
  0x41   : > { %1323 = vsyncadd (%p1472_p8), %s363_s8, 4294963200  ;;  %p411_p3 = scmp.lt.s32.totalorder %s1346_s9, 3  ;;  %v1363_v4 = vmov 0   ;;  %v450_v6 = vld [vmem:[%s1774_s3] sm:$0xff]  ;;  %v451_v9 = vld [vmem:[%s1774_s3 + $0x8] sm:$0xff]  ;;  %vm530_vm0 = vcmask 130048  }
  0x42   : > { %1231 = vset.pattern.permute.xlu2 %v1363_v4  ;;  %1230 = vset.pattern.permute.xlu1 %v1363_v4  ;;  %v430_v7 = vld [vmem:[%s1773_s2] sm:$0xff]  ;;  %v431_v10 = vld [vmem:[%s1773_s2 + $0x8] sm:$0xff]  ;;  %v661_v11 = vld [vmem:[%s1777_s6 + $0x10] sm:$0xff]  ;;  %s1638_s23 = scalar_lea.vmem [#allocation6], %s1102_s24  ;;  %s1801_s24 = sld [smem:[#allocation10_spill]] }
  0x43   : > { %1229 = vset.pattern.permute.xlu0 %v1363_v4  ;;  %s412_s30 = scalar_select %p411_p3, %s1346_s9, 3  ;;  %454 = vperm.xlu1 %1230, %v450_v6   ;;  %v660_v12 = vld [vmem:[%s1777_s6 + $0x8] sm:$0xff]  ;;  %v659_v13 = vld [vmem:[%s1777_s6] sm:$0xff]  ;;  %v662_v16 = vld [vmem:[%s1777_s6 + $0x18] sm:$0xff] }
  0x44   : > { %434 = vperm.xlu0 %1229, %v430_v7   ;;  %v664_v14 = vld [vmem:[%s1777_s6 + $0x28] sm:$0xff]  ;;  %v663_v15 = vld [vmem:[%s1777_s6 + $0x20] sm:$0xff]  ;;  %v666_v18 = vld [vmem:[%s1777_s6 + $0x38] sm:$0xff]  ;;  %s1140_s0 = sshll.u32 %s1346_s9, 6  ;;  %s1802_s20 = sld [smem:[#allocation17_spill]] }
  0x45   : > { %s1144_s18 = sshll.u32 %s412_s30, 4  ;;  %v739_v17 = vld [vmem:[%s1778_s7] sm:$0xff]  ;;  %v665_v19 = vld [vmem:[%s1777_s6 + $0x30] sm:$0xff]  ;;  %v742_v20 = vld [vmem:[%s1778_s7 + $0x18] sm:$0xff]  ;;  %s962_s17 = sshll.u32 %s1638_s23, 4  ;;  %s963_s17 = int_to_ptr.vmem [resolvable:$true] %s962_s17 }
  0x46   : > { %s415_s21 = scalar_lea.vmem %s1775_s4, %s1144_s18  ;;  %v741_v21 = vld [vmem:[%s1778_s7 + $0x10] sm:$0xff]  ;;  %v740_v22 = vld [vmem:[%s1778_s7 + $0x8] sm:$0xff]  ;;  %v743_v25 = vld [vmem:[%s1778_s7 + $0x20] sm:$0xff]  ;;  %s948_s16 = scalar_lea.sflag [#allocation5], %s1510_s13 }
  0x47   : > { %v478_v5 = vld [vmem:[%s415_s21] sm:$0xff]  ;;  %v479_v8 = vld [vmem:[%s415_s21 + $0x8] sm:$0xff]  ;;  %v745_v23 = vld [vmem:[%s1778_s7 + $0x30] sm:$0xff] }
  0x48   : > { %482 = vperm.xlu2 %1231, %v478_v5   ;;  %v744_v24 = vld [vmem:[%s1778_s7 + $0x28] sm:$0xff]  ;;  %v746_v26 = vld [vmem:[%s1778_s7 + $0x38] sm:$0xff]  ;;  %v418_v27 = vld [vmem:[%s1514_s26] sm:$0xff]  ;;  %s1139_s25 = sshll.u32 %s1801_s24, 2 }
  0x49   : > { %v419_v28 = vld [vmem:[%s1514_s26 + $0x8] sm:$0xff]  ;;  %v422_v29 = vunpack.c.l.bf16 %v418_v27  ;;  %v423_v30 = vunpack.c.h.bf16 %v418_v27  ;;  %v420_v39 = vld [vmem:[%s1514_s26 + $0x10] sm:$0xff]  ;;  %v421_v40 = vld [vmem:[%s1514_s26 + $0x18] sm:$0xff]  ;;  %s959_s9 = sadd.s32 %s1140_s0, %s1139_s25 }
  0x4a   : > { %v424_v31 = vunpack.c.l.bf16 %v419_v28  ;;  %v425_v32 = vunpack.c.h.bf16 %v419_v28  ;;  %v426_v42 = vunpack.c.l.bf16 %v420_v39  ;;  %v427_v43 = vunpack.c.h.bf16 %v420_v39  ;;  %s1141_s8 = sshll.u32 %s959_s9, 3  ;;  %s1280_s24 = scalar_lea.hbm %s1802_s20, 2048 }
  0x4b   : > { %459 = vperm.xlu1 %1230, %v451_v9   ;;  %v428_v44 = vunpack.c.l.bf16 %v421_v40  ;;  %v429_v45 = vunpack.c.h.bf16 %v421_v40  ;;  %s961_s26 = scalar_lea.hbm %s1802_s20, %s1141_s8 }
  0x4c   : > { %439 = vperm.xlu0 %1229, %v431_v10   ;;  %s964_s15 = sshll.u32 %s961_s26, 4  ;;  %s965_s15 = int_to_ptr.hbm [resolvable:$true] %s964_s15 }
  0x4d   : > { %s1274_s19 = sshra.s32 %s965_s15, 4  ;;  %s1275_s19 = int_to_ptr.hbm [resolvable:$true] %s1274_s19 }
  0x4e   : > { %s1276_s22 = scalar_lea.hbm %s1275_s19, 256  ;;  %p1281_p7 = scmp.lt.s32.totalorder %s1275_s19, %s1802_s20 }
  0x4f   : > { %p1277_p4 = scmp.ne.s32.totalorder %s1275_s19, %s1276_s22  ;;  %p1282_p8 = scmp.lt.s32.totalorder %s1280_s24, %s1276_s22 }
  0x50   : > { %487 = vperm.xlu2 %1231, %v479_v8  }
  0x51   : > { %p1278_p5 = pnand %p1277_p4, %p1476_p9  ;;  %p1283_p10 = por %p1282_p8, %p1281_p7 }
  0x53   : > { %674 = vperm.xlu1 %1230, %v660_v12   ;;  %p1279_p6 = pneg %p1278_p5 }
  0x54   : > { %669 = vperm.xlu0 %1229, %v659_v13  }
  0x55   : > { %p1284_p11 = pnand %p1283_p10, %p1279_p6 }
  0x58   : > { %679 = vperm.xlu2 %1231, %v661_v11  }
  0x5b   : > { %689 = vperm.xlu1 %1230, %v663_v15  }
  0x5c   : > { %684 = vperm.xlu0 %1229, %v662_v16  }
  0x60   : > { %694 = vperm.xlu2 %1231, %v664_v14  }
  0x63   : > { %704 = vperm.xlu1 %1230, %v666_v18   ;;  %v1146_v18 = vld [vmem:[%s1776_s5 + $0x8] sm:$0xff] }
  0x64   : > { %699 = vperm.xlu0 %1229, %v665_v19   ;;  %v1147_v19 = vld [vmem:[%s1776_s5 + $0x10] sm:$0xff] }
  0x68   : > { %749 = vperm.xlu2 %1231, %v739_v17   ;;  %v1145_v17 = vld [vmem:[%s1776_s5] sm:$0xff] }
  0x6b   : > { %759 = vperm.xlu1 %1230, %v741_v21  }
  0x6c   : > { %754 = vperm.xlu0 %1229, %v740_v22  }
  0x70   : > { %764 = vperm.xlu2 %1231, %v742_v20   ;;  %v1148_v20 = vld [vmem:[%s1776_s5 + $0x18] sm:$0xff] }
  0x73   : > { %774 = vperm.xlu1 %1230, %v744_v24  }
  0x74   : > { %769 = vperm.xlu0 %1229, %v743_v25  }
  0x78   : > { %779 = vperm.xlu2 %1231, %v745_v23  }
  0x7c   : > { %784 = vperm.xlu0 %1229, %v746_v26  }
  0xa2   : > { %v483_v41 = vpop.permute.xlu2 %482 }
  0xaa   : > { %v488_v4 = vpop.permute.xlu2 %487 }
  0xb2   : > { %v1622_v22 = vpop.permute.xlu2 %679 }
  0xb5   : > { %v455_v33 = vpop.permute.xlu1 %454 }
  0xb6   : > { %v435_v34 = vpop.permute.xlu0 %434 }
  0xb7   : > { %v442_v35 = vmul.f32 %v435_v34, %v422_v29  ;;  %v443_v36 = vmul.f32 %v435_v34, %v423_v30  ;;  %v444_v37 = vmul.f32 %v435_v34, %v424_v31  ;;  %v445_v38 = vmul.f32 %v435_v34, %v425_v32  ;;  %v820_v34 = vld [vmem:[%s1519_s27 + $0x8] sm:$0xff] }
  0xb9   : > { %v462_v46 = vadd.f32 %v455_v33, %v442_v35  ;;  %v463_v47 = vadd.f32 %v455_v33, %v443_v36  ;;  %v464_v48 = vadd.f32 %v455_v33, %v444_v37  ;;  %v465_v49 = vadd.f32 %v455_v33, %v445_v38  ;;  %v819_v33 = vld [vmem:[%s1519_s27] sm:$0xff] }
  0xba   : > { %v1626_v25 = vpop.permute.xlu2 %694 }
  0xbb   : > { %v470_v56 = vmax.f32 %v462_v46, 0.0  ;;  %v471_v57 = vmax.f32 %v463_v47, 0.0  ;;  %v472_v58 = vmax.f32 %v464_v48, 0.0  ;;  %v473_v59 = vmax.f32 %v465_v49, 0.0  ;;  %v821_v48 = vld [vmem:[%s1519_s27 + $0x10] sm:$0xff]  ;;  %v822_v49 = vld [vmem:[%s1519_s27 + $0x18] sm:$0xff] }
  0xbd   : > { %v460_v55 = vpop.permute.xlu1 %459  ;;  %v490_v5 = vmul.f32 %v483_v41, %v470_v56  ;;  %v491_v6 = vmul.f32 %v483_v41, %v471_v57  ;;  %v492_v7 = vmul.f32 %v483_v41, %v472_v58  ;;  %v493_v8 = vmul.f32 %v483_v41, %v473_v59  ;;  %v824_v56 = vld [vmem:[%s1519_s27 + $0x28] sm:$0xff] }
  0xbe   : > { %v440_v50 = vpop.permute.xlu0 %439 }
  0xbf   : > { %v446_v51 = vmul.f32 %v440_v50, %v426_v42  ;;  %v447_v52 = vmul.f32 %v440_v50, %v427_v43  ;;  %v448_v53 = vmul.f32 %v440_v50, %v428_v44  ;;  %v449_v54 = vmul.f32 %v440_v50, %v429_v45 }
  0xc1   : > { %v466_v60 = vadd.f32 %v460_v55, %v446_v51  ;;  %v467_v61 = vadd.f32 %v460_v55, %v447_v52  ;;  %v468_v62 = vadd.f32 %v460_v55, %v448_v53  ;;  %v469_v63 = vadd.f32 %v460_v55, %v449_v54  ;;  %v823_v55 = vld [vmem:[%s1519_s27 + $0x20] sm:$0xff] }
  0xc2   : > { %v750_v32 = vpop.permute.xlu2 %749 }
  0xc3   : > { %v474_v0 = vmax.f32 %v466_v60, 0.0  ;;  %v475_v1 = vmax.f32 %v467_v61, 0.0  ;;  %v476_v2 = vmax.f32 %v468_v62, 0.0  ;;  %v477_v3 = vmax.f32 %v469_v63, 0.0 }
  0xc5   : > { %v494_v9 = vmul.f32 %v488_v4, %v474_v0  ;;  %v495_v10 = vmul.f32 %v488_v4, %v475_v1  ;;  %v496_v11 = vmul.f32 %v488_v4, %v476_v2  ;;  %v497_v12 = vmul.f32 %v488_v4, %v477_v3  ;;  %v675_v23 = vpop.permute.xlu1 %674 }
  0xc6   : > { %v670_v21 = vpop.permute.xlu0 %669 }
  0xc7   : > { %v506_v13 = vpack.c.bf16 %v494_v9, %v490_v5  ;;  %v507_v14 = vpack.c.bf16 %v495_v10, %v491_v6  ;;  %v508_v15 = vpack.c.bf16 %v496_v11, %v492_v7  ;;  %v509_v16 = vpack.c.bf16 %v497_v12, %v493_v8  ;;  %v825_v9 = vld [vmem:[%s1519_s27 + $0x30] sm:$0xff]  ;;  %v826_v10 = vld [vmem:[%s1519_s27 + $0x38] sm:$0xff] }
  0xc9   : > { %550 = vmatpush.bf16.msra.mxu0 %v506_v13  ;;  %579 = vmatpush.bf16.msra.mxu1 %v507_v14 }
  0xca   : > { %608 = vmatpush.bf16.msra.mxu2 %v508_v15  ;;  %637 = vmatpush.bf16.msra.mxu3 %v509_v16  ;;  %v827_v16 = vld [vmem:[%s1519_s27 + $0x40] sm:$0xff] }
  0xcc   : > { %1122 = vmatmul.msk.bf16.vlgmr.msra.gmra.mxu0 %vm530_vm0, %v1145_v17  ;;  %1126 = vmatmul.msk.bf16.vlgmr.msra.gmra.mxu1 %vm530_vm0, %v1145_v17 }
  0xcd   : > { %1130 = vmatmul.msk.bf16.vlgmr.msra.gmra.mxu2 %vm530_vm0, %v1145_v17  ;;  %1134 = vmatmul.msk.bf16.vlgmr.msra.gmra.mxu3 %vm530_vm0, %v1145_v17  ;;  %v1628_v26 = vpop.permute.xlu1 %689  ;;  %v828_v17 = vld [vmem:[%s1519_s27 + $0x48] sm:$0xff] }
  0xce   : > { %v1624_v24 = vpop.permute.xlu0 %684 }
  0xd5   : > { %v1634_v39 = vpop.permute.xlu1 %704 }
  0xd6   : > { %v1630_v27 = vpop.permute.xlu0 %699 }
  0xdc   : > { %1123 = vmatmul.msk.bf16.gmra.mxu0 %vm530_vm0, %v1146_v18  ;;  %1127 = vmatmul.msk.bf16.gmra.mxu1 %vm530_vm0, %v1146_v18 }
  0xdd   : > { %1131 = vmatmul.msk.bf16.gmra.mxu2 %vm530_vm0, %v1146_v18  ;;  %1135 = vmatmul.msk.bf16.gmra.mxu3 %vm530_vm0, %v1146_v18  ;;  %v760_v13 = vpop.permute.xlu1 %759 }
  0xde   : > { %v755_v52 = vpop.permute.xlu0 %754 }
  0xec   : > { %1124 = vmatmul.msk.bf16.gmra.mxu0 %vm530_vm0, %v1147_v19  ;;  %1128 = vmatmul.msk.bf16.gmra.mxu1 %vm530_vm0, %v1147_v19 }
  0xed   : > { %1132 = vmatmul.msk.bf16.gmra.mxu2 %vm530_vm0, %v1147_v19  ;;  %1136 = vmatmul.msk.bf16.gmra.mxu3 %vm530_vm0, %v1147_v19 }
  0xfc   : > { %1125 = vmatmul.msk.bf16.gmra.mxu0 %vm530_vm0, %v1148_v20  ;;  %1129 = vmatmul.msk.bf16.gmra.mxu1 %vm530_vm0, %v1148_v20 }
  0xfd   : > { %1133 = vmatmul.msk.bf16.gmra.mxu2 %vm530_vm0, %v1148_v20  ;;  %1137 = vmatmul.msk.bf16.gmra.mxu3 %vm530_vm0, %v1148_v20 }
 0x149   : > { %v552_v28 = vpop.f32.mrf.mxu0  ;;  %v581_v29 = vpop.f32.mrf.mxu1 }
 0x14a   : > { %v707_v30 = vmul.f32 %v670_v21, %v552_v28  ;;  %v708_v31 = vmul.f32 %v670_v21, %v581_v29 }
 0x14c   : > { %v787_v35 = vadd.f32 %v750_v32, %v707_v30  ;;  %v788_v36 = vadd.f32 %v750_v32, %v708_v31 }
 0x14e   : > { %v851_v37 = vadd.f32 %v819_v33, %v787_v35  ;;  %v852_v38 = vadd.f32 %v820_v34, %v788_v36 }
 0x150   : > { %v883_v40 = vmax.f32 %v851_v37, 0.0  ;;  %v884_v41 = vmax.f32 %v852_v38, 0.0  ;;  %v610_v42 = vpop.f32.mrf.mxu2  ;;  %v639_v43 = vpop.f32.mrf.mxu3 }
 0x151   : > { %v709_v44 = vmul.f32 %v670_v21, %v610_v42  ;;  %v710_v45 = vmul.f32 %v670_v21, %v639_v43  ;;  %v554_v46 = vpop.f32.mrf.mxu0  ;;  %v583_v47 = vpop.f32.mrf.mxu1 }
 0x152   : > { %915 = vst [vmem:[%s1638_s23] sm:$0xff] %v883_v40  ;;  %v711_v50 = vmul.f32 %v675_v23, %v554_v46  ;;  %v712_v51 = vmul.f32 %v675_v23, %v583_v47  ;;  %v829_v40 = vld [vmem:[%s1519_s27 + $0x50] sm:$0xff]  ;;  %v831_v47 = vld [vmem:[%s1519_s27 + $0x60] sm:$0xff] }
 0x153   : > { %916 = vst [vmem:[%s1638_s23 + $0x8] sm:$0xff] %v884_v41  ;;  %v789_v53 = vadd.f32 %v750_v32, %v709_v44  ;;  %v790_v54 = vadd.f32 %v750_v32, %v710_v45  ;;  %v830_v41 = vld [vmem:[%s1519_s27 + $0x58] sm:$0xff]  ;;  %v765_v44 = vpop.permute.xlu2 %764 }
 0x154   : > { %v791_v57 = vadd.f32 %v755_v52, %v711_v50  ;;  %v792_v58 = vadd.f32 %v755_v52, %v712_v51 }
 0x155   : > { %v853_v59 = vadd.f32 %v821_v48, %v789_v53  ;;  %v854_v60 = vadd.f32 %v822_v49, %v790_v54  ;;  %v832_v48 = vld [vmem:[%s1519_s27 + $0x68] sm:$0xff] }
 0x156   : > { %v855_v61 = vadd.f32 %v823_v55, %v791_v57  ;;  %v856_v62 = vadd.f32 %v824_v56, %v792_v58 }
 0x157   : > { %v885_v63 = vmax.f32 %v853_v59, 0.0  ;;  %v886_v0 = vmax.f32 %v854_v60, 0.0 }
 0x158   : > { %v887_v1 = vmax.f32 %v855_v61, 0.0  ;;  %v888_v2 = vmax.f32 %v856_v62, 0.0  ;;  %v612_v3 = vpop.f32.mrf.mxu2  ;;  %v641_v4 = vpop.f32.mrf.mxu3 }
 0x159   : > { %917 = vst [vmem:[%s1638_s23 + $0x10] sm:$0xff] %v885_v63  ;;  %v713_v5 = vmul.f32 %v675_v23, %v612_v3  ;;  %v714_v6 = vmul.f32 %v675_v23, %v641_v4  ;;  %v557_v7 = vpop.f32.mrf.mxu0  ;;  %v586_v8 = vpop.f32.mrf.mxu1 }
 0x15a   : > { %918 = vst [vmem:[%s1638_s23 + $0x18] sm:$0xff] %v886_v0  ;;  %v715_v11 = vmul.f32 %v1622_v22, %v557_v7  ;;  %v716_v12 = vmul.f32 %v1622_v22, %v586_v8  ;;  %v833_v0 = vld [vmem:[%s1519_s27 + $0x70] sm:$0xff]  ;;  %v770_v4 = vpop.permute.xlu0 %769  ;;  %v835_v7 = vld [vmem:[%s1519_s27 + $0x80] sm:$0xff]  ;;  %v836_v8 = vld [vmem:[%s1519_s27 + $0x88] sm:$0xff] }
 0x15b   : > { %919 = vst [vmem:[%s1638_s23 + $0x20] sm:$0xff] %v887_v1  ;;  %v793_v14 = vadd.f32 %v755_v52, %v713_v5  ;;  %v794_v15 = vadd.f32 %v755_v52, %v714_v6  ;;  %v834_v1 = vld [vmem:[%s1519_s27 + $0x78] sm:$0xff] }
 0x15c   : > { %920 = vst [vmem:[%s1638_s23 + $0x28] sm:$0xff] %v888_v2  ;;  %v795_v18 = vadd.f32 %v760_v13, %v715_v11  ;;  %v796_v19 = vadd.f32 %v760_v13, %v716_v12 }
 0x15d   : > { %v857_v20 = vadd.f32 %v825_v9, %v793_v14  ;;  %v858_v21 = vadd.f32 %v826_v10, %v794_v15 }
 0x15e   : > { %v859_v23 = vadd.f32 %v827_v16, %v795_v18  ;;  %v860_v28 = vadd.f32 %v828_v17, %v796_v19 }
 0x15f   : > { %v889_v29 = vmax.f32 %v857_v20, 0.0  ;;  %v890_v30 = vmax.f32 %v858_v21, 0.0 }
 0x160   : > { %v891_v31 = vmax.f32 %v859_v23, 0.0  ;;  %v892_v32 = vmax.f32 %v860_v28, 0.0  ;;  %v615_v33 = vpop.f32.mrf.mxu2  ;;  %v644_v34 = vpop.f32.mrf.mxu3 }
 0x161   : > { %921 = vst [vmem:[%s1638_s23 + $0x30] sm:$0xff] %v889_v29  ;;  %v717_v35 = vmul.f32 %v1622_v22, %v615_v33  ;;  %v718_v36 = vmul.f32 %v1622_v22, %v644_v34  ;;  %v559_v37 = vpop.f32.mrf.mxu0  ;;  %v588_v38 = vpop.f32.mrf.mxu1  ;;  %v837_v29 = vld [vmem:[%s1519_s27 + $0x90] sm:$0xff] }
 0x162   : > { %922 = vst [vmem:[%s1638_s23 + $0x38] sm:$0xff] %v890_v30  ;;  %v719_v42 = vmul.f32 %v1624_v24, %v559_v37  ;;  %v720_v43 = vmul.f32 %v1624_v24, %v588_v38  ;;  %v838_v30 = vld [vmem:[%s1519_s27 + $0x98] sm:$0xff]  ;;  %v775_v33 = vpop.permute.xlu1 %774  ;;  %v840_v37 = vld [vmem:[%s1519_s27 + $0xa8] sm:$0xff] }
 0x163   : > { %923 = vst [vmem:[%s1638_s23 + $0x40] sm:$0xff] %v891_v31  ;;  %v797_v45 = vadd.f32 %v760_v13, %v717_v35  ;;  %v798_v46 = vadd.f32 %v760_v13, %v718_v36  ;;  %v839_v36 = vld [vmem:[%s1519_s27 + $0xa0] sm:$0xff] }
 0x164   : > { %924 = vst [vmem:[%s1638_s23 + $0x48] sm:$0xff] %v892_v32  ;;  %v799_v49 = vadd.f32 %v765_v44, %v719_v42  ;;  %v800_v50 = vadd.f32 %v765_v44, %v720_v43 }
 0x165   : > { %v861_v22 = vadd.f32 %v829_v40, %v797_v45  ;;  %v862_v51 = vadd.f32 %v830_v41, %v798_v46 }
 0x166   : > { %v863_v52 = vadd.f32 %v831_v47, %v799_v49  ;;  %v864_v53 = vadd.f32 %v832_v48, %v800_v50 }
 0x167   : > { %v893_v54 = vmax.f32 %v861_v22, 0.0  ;;  %v894_v55 = vmax.f32 %v862_v51, 0.0 }
 0x168   : > { %v895_v56 = vmax.f32 %v863_v52, 0.0  ;;  %v896_v57 = vmax.f32 %v864_v53, 0.0  ;;  %v617_v58 = vpop.f32.mrf.mxu2  ;;  %v646_v59 = vpop.f32.mrf.mxu3  ;;  %v841_v53 = vld [vmem:[%s1519_s27 + $0xb0] sm:$0xff] }
 0x169   : > { %925 = vst [vmem:[%s1638_s23 + $0x50] sm:$0xff] %v893_v54  ;;  %v721_v60 = vmul.f32 %v1624_v24, %v617_v58  ;;  %v722_v61 = vmul.f32 %v1624_v24, %v646_v59  ;;  %v562_v62 = vpop.f32.mrf.mxu0  ;;  %v591_v63 = vpop.f32.mrf.mxu1  ;;  %v842_v54 = vld [vmem:[%s1519_s27 + $0xb8] sm:$0xff] }
 0x16a   : > { %926 = vst [vmem:[%s1638_s23 + $0x58] sm:$0xff] %v894_v55  ;;  %v723_v2 = vmul.f32 %v1628_v26, %v562_v62  ;;  %v724_v3 = vmul.f32 %v1628_v26, %v591_v63 }
 0x16b   : > { %927 = vst [vmem:[%s1638_s23 + $0x60] sm:$0xff] %v895_v56  ;;  %v801_v5 = vadd.f32 %v765_v44, %v721_v60  ;;  %v802_v6 = vadd.f32 %v765_v44, %v722_v61  ;;  %v843_v60 = vld [vmem:[%s1519_s27 + $0xc0] sm:$0xff]  ;;  %v844_v61 = vld [vmem:[%s1519_s27 + $0xc8] sm:$0xff] }
 0x16c   : > { %928 = vst [vmem:[%s1638_s23 + $0x68] sm:$0xff] %v896_v57  ;;  %v803_v9 = vadd.f32 %v770_v4, %v723_v2  ;;  %v804_v10 = vadd.f32 %v770_v4, %v724_v3  ;;  %v780_v57 = vpop.permute.xlu2 %779 }
 0x16d   : > { %v865_v24 = vadd.f32 %v833_v0, %v801_v5  ;;  %v866_v11 = vadd.f32 %v834_v1, %v802_v6 }
 0x16e   : > { %v867_v12 = vadd.f32 %v835_v7, %v803_v9  ;;  %v868_v13 = vadd.f32 %v836_v8, %v804_v10 }
 0x16f   : > { %v897_v14 = vmax.f32 %v865_v24, 0.0  ;;  %v898_v15 = vmax.f32 %v866_v11, 0.0 }
 0x170   : > { %v899_v16 = vmax.f32 %v867_v12, 0.0  ;;  %v900_v17 = vmax.f32 %v868_v13, 0.0  ;;  %v620_v18 = vpop.f32.mrf.mxu2  ;;  %v649_v19 = vpop.f32.mrf.mxu3  ;;  %v845_v12 = vld [vmem:[%s1519_s27 + $0xd0] sm:$0xff]  ;;  %v846_v13 = vld [vmem:[%s1519_s27 + $0xd8] sm:$0xff] }
 0x171   : > { %929 = vst [vmem:[%s1638_s23 + $0x70] sm:$0xff] %v897_v14  ;;  %v725_v20 = vmul.f32 %v1628_v26, %v620_v18  ;;  %v726_v21 = vmul.f32 %v1628_v26, %v649_v19  ;;  %v564_v23 = vpop.f32.mrf.mxu0  ;;  %v593_v28 = vpop.f32.mrf.mxu1  ;;  %v847_v19 = vld [vmem:[%s1519_s27 + $0xe0] sm:$0xff] }
 0x172   : > { %930 = vst [vmem:[%s1638_s23 + $0x78] sm:$0xff] %v898_v15  ;;  %v727_v31 = vmul.f32 %v1626_v25, %v564_v23  ;;  %v728_v32 = vmul.f32 %v1626_v25, %v593_v28 }
 0x173   : > { %931 = vst [vmem:[%s1638_s23 + $0x80] sm:$0xff] %v899_v16  ;;  %v805_v34 = vadd.f32 %v770_v4, %v725_v20  ;;  %v806_v35 = vadd.f32 %v770_v4, %v726_v21  ;;  %v785_v16 = vpop.permute.xlu0 %784  ;;  %v848_v20 = vld [vmem:[%s1519_s27 + $0xe8] sm:$0xff] }
 0x174   : > { %932 = vst [vmem:[%s1638_s23 + $0x88] sm:$0xff] %v900_v17  ;;  %v807_v38 = vadd.f32 %v775_v33, %v727_v31  ;;  %v808_v40 = vadd.f32 %v775_v33, %v728_v32 }
 0x175   : > { %v869_v26 = vadd.f32 %v837_v29, %v805_v34  ;;  %v870_v41 = vadd.f32 %v838_v30, %v806_v35 }
 0x176   : > { %v871_v42 = vadd.f32 %v839_v36, %v807_v38  ;;  %v872_v43 = vadd.f32 %v840_v37, %v808_v40  ;;  %v849_v40 = vld [vmem:[%s1519_s27 + $0xf0] sm:$0xff] }
 0x177   : > { %v901_v44 = vmax.f32 %v869_v26, 0.0  ;;  %v902_v45 = vmax.f32 %v870_v41, 0.0  ;;  %v850_v26 = vld [vmem:[%s1519_s27 + $0xf8] sm:$0xff] }
 0x178   : > { %v903_v46 = vmax.f32 %v871_v42, 0.0  ;;  %v904_v47 = vmax.f32 %v872_v43, 0.0  ;;  %v622_v48 = vpop.f32.mrf.mxu2  ;;  %v651_v49 = vpop.f32.mrf.mxu3 }
 0x179   : > { %933 = vst [vmem:[%s1638_s23 + $0x90] sm:$0xff] %v901_v44  ;;  %v729_v50 = vmul.f32 %v1626_v25, %v622_v48  ;;  %v730_v22 = vmul.f32 %v1626_v25, %v651_v49  ;;  %v567_v51 = vpop.f32.mrf.mxu0  ;;  %v596_v52 = vpop.f32.mrf.mxu1 }
 0x17a   : > { %934 = vst [vmem:[%s1638_s23 + $0x98] sm:$0xff] %v902_v45  ;;  %v731_v55 = vmul.f32 %v1630_v27, %v567_v51  ;;  %v732_v56 = vmul.f32 %v1630_v27, %v596_v52 }
 0x17b   : > { %935 = vst [vmem:[%s1638_s23 + $0xa0] sm:$0xff] %v903_v46  ;;  %v809_v58 = vadd.f32 %v775_v33, %v729_v50  ;;  %v810_v59 = vadd.f32 %v775_v33, %v730_v22 }
 0x17c   : > { %936 = vst [vmem:[%s1638_s23 + $0xa8] sm:$0xff] %v904_v47  ;;  %v811_v25 = vadd.f32 %v780_v57, %v731_v55  ;;  %v812_v62 = vadd.f32 %v780_v57, %v732_v56 }
 0x17d   : > { %v873_v63 = vadd.f32 %v841_v53, %v809_v58  ;;  %v874_v0 = vadd.f32 %v842_v54, %v810_v59 }
 0x17e   : > { %v875_v1 = vadd.f32 %v843_v60, %v811_v25  ;;  %v876_v2 = vadd.f32 %v844_v61, %v812_v62 }
 0x17f   : > { %v905_v3 = vmax.f32 %v873_v63, 0.0  ;;  %v906_v4 = vmax.f32 %v874_v0, 0.0 }
 0x180   : > { %v907_v5 = vmax.f32 %v875_v1, 0.0  ;;  %v908_v6 = vmax.f32 %v876_v2, 0.0  ;;  %v625_v7 = vpop.f32.mrf.mxu2  ;;  %v654_v8 = vpop.f32.mrf.mxu3 }
 0x181   : > { %937 = vst [vmem:[%s1638_s23 + $0xb0] sm:$0xff] %v905_v3  ;;  %v733_v9 = vmul.f32 %v1630_v27, %v625_v7  ;;  %v734_v10 = vmul.f32 %v1630_v27, %v654_v8  ;;  %v569_v24 = vpop.f32.mrf.mxu0  ;;  %v598_v11 = vpop.f32.mrf.mxu1 }
 0x182   : > { %938 = vst [vmem:[%s1638_s23 + $0xb8] sm:$0xff] %v906_v4  ;;  %v735_v14 = vmul.f32 %v1634_v39, %v569_v24  ;;  %v736_v15 = vmul.f32 %v1634_v39, %v598_v11 }
 0x183   : > { %939 = vst [vmem:[%s1638_s23 + $0xc0] sm:$0xff] %v907_v5  ;;  %v813_v17 = vadd.f32 %v780_v57, %v733_v9  ;;  %v814_v18 = vadd.f32 %v780_v57, %v734_v10 }
 0x184   : > { %940 = vst [vmem:[%s1638_s23 + $0xc8] sm:$0xff] %v908_v6  ;;  %v815_v21 = vadd.f32 %v785_v16, %v735_v14  ;;  %v816_v27 = vadd.f32 %v785_v16, %v736_v15 }
 0x185   : > { %v877_v23 = vadd.f32 %v845_v12, %v813_v17  ;;  %v878_v28 = vadd.f32 %v846_v13, %v814_v18 }
 0x186   : > { %v879_v29 = vadd.f32 %v847_v19, %v815_v21  ;;  %v880_v30 = vadd.f32 %v848_v20, %v816_v27 }
 0x187   : > { %v909_v31 = vmax.f32 %v877_v23, 0.0  ;;  %v910_v32 = vmax.f32 %v878_v28, 0.0 }
 0x188   : > { %v911_v33 = vmax.f32 %v879_v29, 0.0  ;;  %v912_v34 = vmax.f32 %v880_v30, 0.0  ;;  %v627_v35 = vpop.f32.mrf.mxu2  ;;  %v656_v36 = vpop.f32.mrf.mxu3 }
 0x189   : > { %941 = vst [vmem:[%s1638_s23 + $0xd0] sm:$0xff] %v909_v31  ;;  %v737_v37 = vmul.f32 %v1634_v39, %v627_v35  ;;  %v738_v38 = vmul.f32 %v1634_v39, %v656_v36 }
 0x18a   : > { %942 = vst [vmem:[%s1638_s23 + $0xd8] sm:$0xff] %v910_v32 }
 0x18b   : > { %943 = vst [vmem:[%s1638_s23 + $0xe0] sm:$0xff] %v911_v33  ;;  %v817_v41 = vadd.f32 %v785_v16, %v737_v37  ;;  %v818_v42 = vadd.f32 %v785_v16, %v738_v38 }
 0x18c   : > { %944 = vst [vmem:[%s1638_s23 + $0xe8] sm:$0xff] %v912_v34 }
 0x18d   : > { %v881_v43 = vadd.f32 %v849_v40, %v817_v41  ;;  %v882_v44 = vadd.f32 %v850_v26, %v818_v42 }
 0x18f   : > { %v913_v39 = vmax.f32 %v881_v43, 0.0  ;;  %v914_v45 = vmax.f32 %v882_v44, 0.0 }
 0x191   : > { %945 = vst [vmem:[%s1638_s23 + $0xf0] sm:$0xff] %v913_v39 }
 0x192   : > { %946 = vst [vmem:[%s1638_s23 + $0xf8] sm:$0xff] %v914_v45 }
 0x193   : > { %1287 = shalt.err (!%p1284_p11)
}
 0x194   : > { %s1364_s13 = smov 512   ;;  %s1365_s23 = smov 1024  }
 0x195   : > { %s1366_s9 = smov 32  }
 0x196   : > { %1151 = dma.vmem_to_hbm [thread:$0]  (%p1476_p9), %s963_s17, 4096, %s965_s15, %s948_s16, %s1364_s13, %s1365_s23, %s1366_s9  }
 0x197 PF: > { %s1804_s8 = sld [smem:[#allocation9_spill]]  ;;  %p1157_p13 = scmp.ge.s32.totalorder %s1358_s12, 2 }
 0x199   : > { %p1154_p0 = pnand %p1157_p13, %p1483_p12 }
 0x19b   : > { %p1155_p1 = pneg %p1154_p0 }
 0x19d   : > { %s979_s18 = sand.u32 1, %s1804_s8  }
 0x19e   : > { %s980_s26 = scalar_lea.sflag [#allocation5], %s979_s18 }
 0x19f   : > { %1325 = dma.done.wait (%p1155_p1), %s980_s26, 4096  }
 0x1a0   : > { %1327 = vsyncadd (%p1155_p1), %s980_s26, 4294963200  ;;  %s24_s12 = sadd.s32 1, %s1358_s12   ;;  %s1806_s19 = sld [smem:[#allocation15_spill]] }
 0x1a1   : > { %p21_p2 = scmp.ge.s32.totalorder %s24_s12, 10   ;;  %s1807_s17 = sld [smem:[#allocation11_spill]] }
 0x1a2   : > { %s1808_s21 = sld [smem:[#allocation12_spill]]  ;;  %s1809_s27 = smov %s1334_s28 }
 0x1a3   : > { %s1810_s28 = smov %s1338_s29  ;;  %s1812_s30 = smov %s1350_s10 }
 0x1a4   : > { %s1813_s9 = smov %s1354_s11  ;;  %23 = sbr.rel (!%p21_p2) target bundleno = 10 (0xa), region = 131 }
 0x1a6   : > { %s1811_s29 = smov %s1806_s19 }
 0x1a7   : > { %s1814_s10 = smov %s1807_s17 }
 0x1a8   : > { %s1815_s11 = smov %s1808_s21 }
 0x1a9   :  { %986 = vsyncpa [#allocation4], 1 }
 0x1aa   :  { %988 = vsyncpa [#allocation4 + $0x1], 1 }
 0x1ab   :  { %989 = vsyncpa [#allocation5], 1 }
 0x1ac   :  { %991 = vsyncpa [#allocation5 + $0x1], 1 }

</bundles_post_ra>
